<compile_context>
chip_gen: v6e
topology: v6e:2x2x1
jax: 0.10.0
libtpu: 0.0.40
codegen_flags: <defaults>
</compile_context>

<pallas_src>
import jax
import jax.numpy as jnp
from jax import lax
from jax.experimental import pallas as pl
from jax.experimental.pallas import tpu as pltpu

KH = KW = 5  # depthwise kernel size
PAD = 2      # padding=2


def blaze_block_kernel(x_ref, wdw_ref, wpw_ref, bias_ref, o_ref, xpad_scr):
    """One batch image per grid step.

    x_ref:    (1, C, H, W)     VMEM  input block (also the residual source)
    wdw_ref:  (C, KH*KW)       SMEM  depthwise weights, pre-scaled by BN1 scale
    wpw_ref:  (C, C)           SMEM  pointwise weights [cin, cout], pre-scaled by BN2 scale
    bias_ref: (C,)             SMEM  fully folded output bias
    o_ref:    (1, C, H, W)     VMEM  output block
    xpad_scr: (C, H+2P, W+2P)  VMEM  zero-bordered halo scratch
    """
    _, C, H, W = x_ref.shape

    # Build the 2-pixel halo in VMEM; no padded copy of the input ever exists in HBM.
    # (Re-zeroed every step so correctness does not depend on grid-axis scheduling.)
    xpad_scr[...] = jnp.zeros_like(xpad_scr)
    xpad_scr[:, PAD:PAD + H, PAD:PAD + W] = x_ref[0]

    # Depthwise 5x5 conv, stride 1: per channel, 25 scalar(SMEM) * plane FMAs on the
    # VPU (W on lanes, H on sublanes). Reads are offset window loads from the scratch
    # ref, so no materialized shifted copies of the whole tile are created.
    y1 = []
    for c in range(C):
        acc = None
        for k in range(KH * KW):
            ki, kj = divmod(k, KW)
            term = xpad_scr[c, ki:ki + H, kj:kj + W] * wdw_ref[c, k]
            acc = term if acc is None else acc + term
        y1.append(acc)

    # 1x1 pointwise conv as a VPU channel sum (C is far below the MXU width), then
    # folded bias + residual + ReLU, stored per output channel (full-plane stores).
    for co in range(C):
        acc = None
        for ci in range(C):
            term = y1[ci] * wpw_ref[ci, co]
            acc = term if acc is None else acc + term
        acc = acc + bias_ref[co] + x_ref[0, co]
        o_ref[0, co] = jnp.maximum(acc, 0.0).astype(o_ref.dtype)


def blaze_block_v1(x_nchw, params):
    """x_nchw: (N, C, H, W) float32.  Returns (N, C, H, W) float32."""
    (w_dw, b_dw, g1, beta1, mean1, var1,
     w_pw, b_pw, g2, beta2, mean2, var2) = params
    eps = 1e-5
    n, c, h, w = x_nchw.shape

    # Inference-mode BN folds (exact, done in f32 on tiny weight arrays).
    scale1 = g1 / jnp.sqrt(var1 + eps)                      # (C,)
    bias1 = (b_dw - mean1) * scale1 + beta1                 # (C,)
    scale2 = g2 / jnp.sqrt(var2 + eps)                      # (C,)
    bias2 = (b_pw - mean2) * scale2 + beta2                 # (C,)

    # Fold BN1 scale into the depthwise weights: (C,1,5,5) -> (C, 25).
    wdw = (w_dw[:, 0, :, :].reshape(c, KH * KW) * scale1[:, None]).astype(jnp.float32)
    # Fold BN2 scale into the pointwise weights, arranged (Cin, Cout).
    wpw_s = (jnp.transpose(w_pw[:, :, 0, 0], (1, 0)) * scale2[None, :]).astype(jnp.float32)
    # Fold bias1's contribution through the pointwise conv into one final bias.
    bias_final = (bias1 @ wpw_s + bias2).astype(jnp.float32)  # (C,)

    x = x_nchw.astype(jnp.float32)

    flops = n * h * w * c * (2 * KH * KW + 2 * c + 3)
    bytes_accessed = 2 * x.size * 4 + 4 * (wdw.size + wpw_s.size + bias_final.size)

    out = pl.pallas_call(
        blaze_block_kernel,
        out_shape=jax.ShapeDtypeStruct((n, c, h, w), jnp.float32),
        grid=(n,),
        in_specs=[
            pl.BlockSpec((1, c, h, w), lambda i: (i, 0, 0, 0)),
            pl.BlockSpec(memory_space=pltpu.MemorySpace.SMEM),
            pl.BlockSpec(memory_space=pltpu.MemorySpace.SMEM),
            pl.BlockSpec(memory_space=pltpu.MemorySpace.SMEM),
        ],
        out_specs=pl.BlockSpec((1, c, h, w), lambda i: (i, 0, 0, 0)),
        scratch_shapes=[pltpu.VMEM((c, h + 2 * PAD, w + 2 * PAD), jnp.float32)],
        compiler_params=pltpu.CompilerParams(
            dimension_semantics=("parallel",),
            vmem_limit_bytes=32 * 1024 * 1024,
        ),
        cost_estimate=pl.CostEstimate(
            flops=flops, transcendentals=0, bytes_accessed=bytes_accessed),
    )(x, wdw, wpw_s, bias_final)

    return out


def reference_blaze_block(x_nchw, params):
    """Pure-JAX reference matching the PyTorch module (inference-mode BN)."""
    (w_dw, b_dw, g1, beta1, mean1, var1,
     w_pw, b_pw, g2, beta2, mean2, var2) = params
    eps = 1e-5
    c = x_nchw.shape[1]

    x = jnp.transpose(x_nchw, (0, 2, 3, 1))  # NHWC
    kdw = jnp.transpose(w_dw, (2, 3, 1, 0))  # (5,5,1,C)
    y = lax.conv_general_dilated(
        x, kdw, window_strides=(1, 1), padding=((PAD, PAD), (PAD, PAD)),
        dimension_numbers=("NHWC", "HWIO", "NHWC"), feature_group_count=c)
    y = y + b_dw
    y = (y - mean1) / jnp.sqrt(var1 + eps) * g1 + beta1
    kpw = jnp.transpose(w_pw, (2, 3, 1, 0))  # (1,1,Cin,Cout)
    y = lax.conv_general_dilated(
        y, kpw, window_strides=(1, 1), padding="VALID",
        dimension_numbers=("NHWC", "HWIO", "NHWC"))
    y = y + b_pw
    y = (y - mean2) / jnp.sqrt(var2 + eps) * g2 + beta2
    out = jnp.maximum(y + x, 0.0)
    return jnp.transpose(out, (0, 3, 1, 2))


def make_params(key, in_channels, out_channels, mid_channels):
    ks = jax.random.split(key, 8)
    w_dw = jax.random.normal(ks[0], (mid_channels, 1, KH, KW), jnp.float32) * 0.1
    b_dw = jax.random.normal(ks[1], (mid_channels,), jnp.float32) * 0.05
    g1 = 1.0 + 0.1 * jax.random.normal(ks[2], (mid_channels,), jnp.float32)
    beta1 = 0.05 * jax.random.normal(ks[3], (mid_channels,), jnp.float32)
    mean1 = 0.1 * jax.random.normal(ks[4], (mid_channels,), jnp.float32)
    var1 = 1.0 + 0.1 * jnp.abs(jax.random.normal(ks[5], (mid_channels,), jnp.float32))
    w_pw = jax.random.normal(ks[6], (out_channels, mid_channels, 1, 1), jnp.float32) * 0.1
    b_pw = jax.random.normal(ks[7], (out_channels,), jnp.float32) * 0.05
    g2 = jnp.ones((out_channels,), jnp.float32) * 0.9
    beta2 = jnp.full((out_channels,), 0.02, jnp.float32)
    mean2 = jnp.full((out_channels,), 0.01, jnp.float32)
    var2 = jnp.ones((out_channels,), jnp.float32) * 1.1
    return (w_dw, b_dw, g1, beta1, mean1, var1,
            w_pw, b_pw, g2, beta2, mean2, var2)


if __name__ == "__main__":
    # stride=1 and in_channels == out_channels so the residual add is valid,
    # matching the PyTorch forward.
    N, C, H, W = 2, 4, 16, 16
    key = jax.random.PRNGKey(0)
    k_x, k_p = jax.random.split(key)
    x = jax.random.normal(k_x, (N, C, H, W), jnp.float32)
    params = make_params(k_p, in_channels=C, out_channels=C, mid_channels=C)

    out = jax.block_until_ready(jax.jit(blaze_block_v1)(x, params))
    ref = jax.block_until_ready(reference_blaze_block(x, params))

    assert out.shape == (N, C, H, W)
    assert jnp.allclose(out, ref, atol=1e-4, rtol=1e-4), "mismatch vs reference"
    print("KERNEL_OK")
</pallas_src>

<mosaic_0001>
module attributes {stable_mosaic.version = 11 : i64} {
  func.func @blaze_block_kernel(%arg0: i32, %arg1: memref<1x4x16x16xf32, #tpu.memory_space<vmem>>, %arg2: memref<4x25xf32, #tpu.memory_space<smem>>, %arg3: memref<4x4xf32, #tpu.memory_space<smem>>, %arg4: memref<4xf32, #tpu.memory_space<smem>>, %arg5: memref<1x4x16x16xf32, #tpu.memory_space<vmem>>, %arg6: memref<4x20x20xf32, #tpu.memory_space<vmem>>) attributes {dimension_semantics = [#tpu.dimension_semantics<parallel>], iteration_bounds = array<i64: 2>, scalar_prefetch = 0 : i64, scratch_operands = 1 : i64, tpu.core_type = #tpu.core_type<tc>, window_params = [{transform_indices = @transform_0, window_bounds = array<i64: 1, 4, 16, 16>}, {transform_indices = @transform_1, window_bounds = array<i64: 4, 25>}, {transform_indices = @transform_2, window_bounds = array<i64: 4, 4>}, {transform_indices = @transform_3, window_bounds = array<i64: 4>}, {transform_indices = @transform_4, window_bounds = array<i64: 1, 4, 16, 16>}]} {
    %cst = arith.constant 0.000000e+00 : f32
    %0 = vector.broadcast %cst : f32 to vector<4x20x20xf32>
    %c0 = arith.constant 0 : index
    %c0_0 = arith.constant 0 : index
    %c0_1 = arith.constant 0 : index
    %1 = vector.load %arg6[%c0, %c0_0, %c0_1] : memref<4x20x20xf32, #tpu.memory_space<vmem>>, vector<4x20x20xf32>
    tpu.vector_store %arg6[%c0, %c0_0, %c0_1], %0 {strides = array<i32>} : memref<4x20x20xf32, #tpu.memory_space<vmem>>, vector<4x20x20xf32>,
    %c0_2 = arith.constant 0 : index
    %c0_3 = arith.constant 0 : index
    %c0_4 = arith.constant 0 : index
    %c0_5 = arith.constant 0 : index
    %2 = vector.load %arg1[%c0_2, %c0_3, %c0_4, %c0_5] : memref<1x4x16x16xf32, #tpu.memory_space<vmem>>, vector<1x4x16x16xf32>
    %3 = vector.shape_cast %2 : vector<1x4x16x16xf32> to vector<4x16x16xf32>
    %c0_6 = arith.constant 0 : index
    %c2 = arith.constant 2 : index
    %c2_7 = arith.constant 2 : index
    %4 = vector.load %arg6[%c0_6, %c2, %c2_7] : memref<4x20x20xf32, #tpu.memory_space<vmem>>, vector<4x16x16xf32>
    tpu.vector_store %arg6[%c0_6, %c2, %c2_7], %3 {strides = array<i32>} : memref<4x20x20xf32, #tpu.memory_space<vmem>>, vector<4x16x16xf32>,
    %c0_8 = arith.constant 0 : index
    %c0_9 = arith.constant 0 : index
    %c0_10 = arith.constant 0 : index
    %5 = vector.load %arg6[%c0_8, %c0_9, %c0_10] : memref<4x20x20xf32, #tpu.memory_space<vmem>>, vector<1x16x16xf32>
    %6 = vector.shape_cast %5 : vector<1x16x16xf32> to vector<16x16xf32>
    %c0_11 = arith.constant 0 : index
    %c0_12 = arith.constant 0 : index
    %7 = memref.load %arg2[%c0_11, %c0_12] : memref<4x25xf32, #tpu.memory_space<smem>>
    %8 = vector.broadcast %7 : f32 to vector<16x16xf32>
    %9 = arith.mulf %6, %8 : vector<16x16xf32>
    %c0_13 = arith.constant 0 : index
    %c0_14 = arith.constant 0 : index
    %c1 = arith.constant 1 : index
    %10 = vector.load %arg6[%c0_13, %c0_14, %c1] : memref<4x20x20xf32, #tpu.memory_space<vmem>>, vector<1x16x16xf32>
    %11 = vector.shape_cast %10 : vector<1x16x16xf32> to vector<16x16xf32>
    %c0_15 = arith.constant 0 : index
    %c1_16 = arith.constant 1 : index
    %12 = memref.load %arg2[%c0_15, %c1_16] : memref<4x25xf32, #tpu.memory_space<smem>>
    %13 = vector.broadcast %12 : f32 to vector<16x16xf32>
    %14 = arith.mulf %11, %13 : vector<16x16xf32>
    %15 = arith.addf %9, %14 : vector<16x16xf32>
    %c0_17 = arith.constant 0 : index
    %c0_18 = arith.constant 0 : index
    %c2_19 = arith.constant 2 : index
    %16 = vector.load %arg6[%c0_17, %c0_18, %c2_19] : memref<4x20x20xf32, #tpu.memory_space<vmem>>, vector<1x16x16xf32>
    %17 = vector.shape_cast %16 : vector<1x16x16xf32> to vector<16x16xf32>
    %c0_20 = arith.constant 0 : index
    %c2_21 = arith.constant 2 : index
    %18 = memref.load %arg2[%c0_20, %c2_21] : memref<4x25xf32, #tpu.memory_space<smem>>
    %19 = vector.broadcast %18 : f32 to vector<16x16xf32>
    %20 = arith.mulf %17, %19 : vector<16x16xf32>
    %21 = arith.addf %15, %20 : vector<16x16xf32>
    %c0_22 = arith.constant 0 : index
    %c0_23 = arith.constant 0 : index
    %c3 = arith.constant 3 : index
    %22 = vector.load %arg6[%c0_22, %c0_23, %c3] : memref<4x20x20xf32, #tpu.memory_space<vmem>>, vector<1x16x16xf32>
    %23 = vector.shape_cast %22 : vector<1x16x16xf32> to vector<16x16xf32>
    %c0_24 = arith.constant 0 : index
    %c3_25 = arith.constant 3 : index
    %24 = memref.load %arg2[%c0_24, %c3_25] : memref<4x25xf32, #tpu.memory_space<smem>>
    %25 = vector.broadcast %24 : f32 to vector<16x16xf32>
    %26 = arith.mulf %23, %25 : vector<16x16xf32>
    %27 = arith.addf %21, %26 : vector<16x16xf32>
    %c0_26 = arith.constant 0 : index
    %c0_27 = arith.constant 0 : index
    %c4 = arith.constant 4 : index
    %28 = vector.load %arg6[%c0_26, %c0_27, %c4] : memref<4x20x20xf32, #tpu.memory_space<vmem>>, vector<1x16x16xf32>
    %29 = vector.shape_cast %28 : vector<1x16x16xf32> to vector<16x16xf32>
    %c0_28 = arith.constant 0 : index
    %c4_29 = arith.constant 4 : index
    %30 = memref.load %arg2[%c0_28, %c4_29] : memref<4x25xf32, #tpu.memory_space<smem>>
    %31 = vector.broadcast %30 : f32 to vector<16x16xf32>
    %32 = arith.mulf %29, %31 : vector<16x16xf32>
    %33 = arith.addf %27, %32 : vector<16x16xf32>
    %c0_30 = arith.constant 0 : index
    %c1_31 = arith.constant 1 : index
    %c0_32 = arith.constant 0 : index
    %34 = vector.load %arg6[%c0_30, %c1_31, %c0_32] : memref<4x20x20xf32, #tpu.memory_space<vmem>>, vector<1x16x16xf32>
    %35 = vector.shape_cast %34 : vector<1x16x16xf32> to vector<16x16xf32>
    %c0_33 = arith.constant 0 : index
    %c5 = arith.constant 5 : index
    %36 = memref.load %arg2[%c0_33, %c5] : memref<4x25xf32, #tpu.memory_space<smem>>
    %37 = vector.broadcast %36 : f32 to vector<16x16xf32>
    %38 = arith.mulf %35, %37 : vector<16x16xf32>
    %39 = arith.addf %33, %38 : vector<16x16xf32>
    %c0_34 = arith.constant 0 : index
    %c1_35 = arith.constant 1 : index
    %c1_36 = arith.constant 1 : index
    %40 = vector.load %arg6[%c0_34, %c1_35, %c1_36] : memref<4x20x20xf32, #tpu.memory_space<vmem>>, vector<1x16x16xf32>
    %41 = vector.shape_cast %40 : vector<1x16x16xf32> to vector<16x16xf32>
    %c0_37 = arith.constant 0 : index
    %c6 = arith.constant 6 : index
    %42 = memref.load %arg2[%c0_37, %c6] : memref<4x25xf32, #tpu.memory_space<smem>>
    %43 = vector.broadcast %42 : f32 to vector<16x16xf32>
    %44 = arith.mulf %41, %43 : vector<16x16xf32>
    %45 = arith.addf %39, %44 : vector<16x16xf32>
    %c0_38 = arith.constant 0 : index
    %c1_39 = arith.constant 1 : index
    %c2_40 = arith.constant 2 : index
    %46 = vector.load %arg6[%c0_38, %c1_39, %c2_40] : memref<4x20x20xf32, #tpu.memory_space<vmem>>, vector<1x16x16xf32>
    %47 = vector.shape_cast %46 : vector<1x16x16xf32> to vector<16x16xf32>
    %c0_41 = arith.constant 0 : index
    %c7 = arith.constant 7 : index
    %48 = memref.load %arg2[%c0_41, %c7] : memref<4x25xf32, #tpu.memory_space<smem>>
    %49 = vector.broadcast %48 : f32 to vector<16x16xf32>
    %50 = arith.mulf %47, %49 : vector<16x16xf32>
    %51 = arith.addf %45, %50 : vector<16x16xf32>
    %c0_42 = arith.constant 0 : index
    %c1_43 = arith.constant 1 : index
    %c3_44 = arith.constant 3 : index
    %52 = vector.load %arg6[%c0_42, %c1_43, %c3_44] : memref<4x20x20xf32, #tpu.memory_space<vmem>>, vector<1x16x16xf32>
    %53 = vector.shape_cast %52 : vector<1x16x16xf32> to vector<16x16xf32>
    %c0_45 = arith.constant 0 : index
    %c8 = arith.constant 8 : index
    %54 = memref.load %arg2[%c0_45, %c8] : memref<4x25xf32, #tpu.memory_space<smem>>
    %55 = vector.broadcast %54 : f32 to vector<16x16xf32>
    %56 = arith.mulf %53, %55 : vector<16x16xf32>
    %57 = arith.addf %51, %56 : vector<16x16xf32>
    %c0_46 = arith.constant 0 : index
    %c1_47 = arith.constant 1 : index
    %c4_48 = arith.constant 4 : index
    %58 = vector.load %arg6[%c0_46, %c1_47, %c4_48] : memref<4x20x20xf32, #tpu.memory_space<vmem>>, vector<1x16x16xf32>
    %59 = vector.shape_cast %58 : vector<1x16x16xf32> to vector<16x16xf32>
    %c0_49 = arith.constant 0 : index
    %c9 = arith.constant 9 : index
    %60 = memref.load %arg2[%c0_49, %c9] : memref<4x25xf32, #tpu.memory_space<smem>>
    %61 = vector.broadcast %60 : f32 to vector<16x16xf32>
    %62 = arith.mulf %59, %61 : vector<16x16xf32>
    %63 = arith.addf %57, %62 : vector<16x16xf32>
    %c0_50 = arith.constant 0 : index
    %c2_51 = arith.constant 2 : index
    %c0_52 = arith.constant 0 : index
    %64 = vector.load %arg6[%c0_50, %c2_51, %c0_52] : memref<4x20x20xf32, #tpu.memory_space<vmem>>, vector<1x16x16xf32>
    %65 = vector.shape_cast %64 : vector<1x16x16xf32> to vector<16x16xf32>
    %c0_53 = arith.constant 0 : index
    %c10 = arith.constant 10 : index
    %66 = memref.load %arg2[%c0_53, %c10] : memref<4x25xf32, #tpu.memory_space<smem>>
    %67 = vector.broadcast %66 : f32 to vector<16x16xf32>
    %68 = arith.mulf %65, %67 : vector<16x16xf32>
    %69 = arith.addf %63, %68 : vector<16x16xf32>
    %c0_54 = arith.constant 0 : index
    %c2_55 = arith.constant 2 : index
    %c1_56 = arith.constant 1 : index
    %70 = vector.load %arg6[%c0_54, %c2_55, %c1_56] : memref<4x20x20xf32, #tpu.memory_space<vmem>>, vector<1x16x16xf32>
    %71 = vector.shape_cast %70 : vector<1x16x16xf32> to vector<16x16xf32>
    %c0_57 = arith.constant 0 : index
    %c11 = arith.constant 11 : index
    %72 = memref.load %arg2[%c0_57, %c11] : memref<4x25xf32, #tpu.memory_space<smem>>
    %73 = vector.broadcast %72 : f32 to vector<16x16xf32>
    %74 = arith.mulf %71, %73 : vector<16x16xf32>
    %75 = arith.addf %69, %74 : vector<16x16xf32>
    %c0_58 = arith.constant 0 : index
    %c2_59 = arith.constant 2 : index
    %c2_60 = arith.constant 2 : index
    %76 = vector.load %arg6[%c0_58, %c2_59, %c2_60] : memref<4x20x20xf32, #tpu.memory_space<vmem>>, vector<1x16x16xf32>
    %77 = vector.shape_cast %76 : vector<1x16x16xf32> to vector<16x16xf32>
    %c0_61 = arith.constant 0 : index
    %c12 = arith.constant 12 : index
    %78 = memref.load %arg2[%c0_61, %c12] : memref<4x25xf32, #tpu.memory_space<smem>>
    %79 = vector.broadcast %78 : f32 to vector<16x16xf32>
    %80 = arith.mulf %77, %79 : vector<16x16xf32>
    %81 = arith.addf %75, %80 : vector<16x16xf32>
    %c0_62 = arith.constant 0 : index
    %c2_63 = arith.constant 2 : index
    %c3_64 = arith.constant 3 : index
    %82 = vector.load %arg6[%c0_62, %c2_63, %c3_64] : memref<4x20x20xf32, #tpu.memory_space<vmem>>, vector<1x16x16xf32>
    %83 = vector.shape_cast %82 : vector<1x16x16xf32> to vector<16x16xf32>
    %c0_65 = arith.constant 0 : index
    %c13 = arith.constant 13 : index
    %84 = memref.load %arg2[%c0_65, %c13] : memref<4x25xf32, #tpu.memory_space<smem>>
    %85 = vector.broadcast %84 : f32 to vector<16x16xf32>
    %86 = arith.mulf %83, %85 : vector<16x16xf32>
    %87 = arith.addf %81, %86 : vector<16x16xf32>
    %c0_66 = arith.constant 0 : index
    %c2_67 = arith.constant 2 : index
    %c4_68 = arith.constant 4 : index
    %88 = vector.load %arg6[%c0_66, %c2_67, %c4_68] : memref<4x20x20xf32, #tpu.memory_space<vmem>>, vector<1x16x16xf32>
    %89 = vector.shape_cast %88 : vector<1x16x16xf32> to vector<16x16xf32>
    %c0_69 = arith.constant 0 : index
    %c14 = arith.constant 14 : index
    %90 = memref.load %arg2[%c0_69, %c14] : memref<4x25xf32, #tpu.memory_space<smem>>
    %91 = vector.broadcast %90 : f32 to vector<16x16xf32>
    %92 = arith.mulf %89, %91 : vector<16x16xf32>
    %93 = arith.addf %87, %92 : vector<16x16xf32>
    %c0_70 = arith.constant 0 : index
    %c3_71 = arith.constant 3 : index
    %c0_72 = arith.constant 0 : index
    %94 = vector.load %arg6[%c0_70, %c3_71, %c0_72] : memref<4x20x20xf32, #tpu.memory_space<vmem>>, vector<1x16x16xf32>
    %95 = vector.shape_cast %94 : vector<1x16x16xf32> to vector<16x16xf32>
    %c0_73 = arith.constant 0 : index
    %c15 = arith.constant 15 : index
    %96 = memref.load %arg2[%c0_73, %c15] : memref<4x25xf32, #tpu.memory_space<smem>>
    %97 = vector.broadcast %96 : f32 to vector<16x16xf32>
    %98 = arith.mulf %95, %97 : vector<16x16xf32>
    %99 = arith.addf %93, %98 : vector<16x16xf32>
    %c0_74 = arith.constant 0 : index
    %c3_75 = arith.constant 3 : index
    %c1_76 = arith.constant 1 : index
    %100 = vector.load %arg6[%c0_74, %c3_75, %c1_76] : memref<4x20x20xf32, #tpu.memory_space<vmem>>, vector<1x16x16xf32>
    %101 = vector.shape_cast %100 : vector<1x16x16xf32> to vector<16x16xf32>
    %c0_77 = arith.constant 0 : index
    %c16 = arith.constant 16 : index
    %102 = memref.load %arg2[%c0_77, %c16] : memref<4x25xf32, #tpu.memory_space<smem>>
    %103 = vector.broadcast %102 : f32 to vector<16x16xf32>
    %104 = arith.mulf %101, %103 : vector<16x16xf32>
    %105 = arith.addf %99, %104 : vector<16x16xf32>
    %c0_78 = arith.constant 0 : index
    %c3_79 = arith.constant 3 : index
    %c2_80 = arith.constant 2 : index
    %106 = vector.load %arg6[%c0_78, %c3_79, %c2_80] : memref<4x20x20xf32, #tpu.memory_space<vmem>>, vector<1x16x16xf32>
    %107 = vector.shape_cast %106 : vector<1x16x16xf32> to vector<16x16xf32>
    %c0_81 = arith.constant 0 : index
    %c17 = arith.constant 17 : index
    %108 = memref.load %arg2[%c0_81, %c17] : memref<4x25xf32, #tpu.memory_space<smem>>
    %109 = vector.broadcast %108 : f32 to vector<16x16xf32>
    %110 = arith.mulf %107, %109 : vector<16x16xf32>
    %111 = arith.addf %105, %110 : vector<16x16xf32>
    %c0_82 = arith.constant 0 : index
    %c3_83 = arith.constant 3 : index
    %c3_84 = arith.constant 3 : index
    %112 = vector.load %arg6[%c0_82, %c3_83, %c3_84] : memref<4x20x20xf32, #tpu.memory_space<vmem>>, vector<1x16x16xf32>
    %113 = vector.shape_cast %112 : vector<1x16x16xf32> to vector<16x16xf32>
    %c0_85 = arith.constant 0 : index
    %c18 = arith.constant 18 : index
    %114 = memref.load %arg2[%c0_85, %c18] : memref<4x25xf32, #tpu.memory_space<smem>>
    %115 = vector.broadcast %114 : f32 to vector<16x16xf32>
    %116 = arith.mulf %113, %115 : vector<16x16xf32>
    %117 = arith.addf %111, %116 : vector<16x16xf32>
    %c0_86 = arith.constant 0 : index
    %c3_87 = arith.constant 3 : index
    %c4_88 = arith.constant 4 : index
    %118 = vector.load %arg6[%c0_86, %c3_87, %c4_88] : memref<4x20x20xf32, #tpu.memory_space<vmem>>, vector<1x16x16xf32>
    %119 = vector.shape_cast %118 : vector<1x16x16xf32> to vector<16x16xf32>
    %c0_89 = arith.constant 0 : index
    %c19 = arith.constant 19 : index
    %120 = memref.load %arg2[%c0_89, %c19] : memref<4x25xf32, #tpu.memory_space<smem>>
    %121 = vector.broadcast %120 : f32 to vector<16x16xf32>
    %122 = arith.mulf %119, %121 : vector<16x16xf32>
    %123 = arith.addf %117, %122 : vector<16x16xf32>
    %c0_90 = arith.constant 0 : index
    %c4_91 = arith.constant 4 : index
    %c0_92 = arith.constant 0 : index
    %124 = vector.load %arg6[%c0_90, %c4_91, %c0_92] : memref<4x20x20xf32, #tpu.memory_space<vmem>>, vector<1x16x16xf32>
    %125 = vector.shape_cast %124 : vector<1x16x16xf32> to vector<16x16xf32>
    %c0_93 = arith.constant 0 : index
    %c20 = arith.constant 20 : index
    %126 = memref.load %arg2[%c0_93, %c20] : memref<4x25xf32, #tpu.memory_space<smem>>
    %127 = vector.broadcast %126 : f32 to vector<16x16xf32>
    %128 = arith.mulf %125, %127 : vector<16x16xf32>
    %129 = arith.addf %123, %128 : vector<16x16xf32>
    %c0_94 = arith.constant 0 : index
    %c4_95 = arith.constant 4 : index
    %c1_96 = arith.constant 1 : index
    %130 = vector.load %arg6[%c0_94, %c4_95, %c1_96] : memref<4x20x20xf32, #tpu.memory_space<vmem>>, vector<1x16x16xf32>
    %131 = vector.shape_cast %130 : vector<1x16x16xf32> to vector<16x16xf32>
    %c0_97 = arith.constant 0 : index
    %c21 = arith.constant 21 : index
    %132 = memref.load %arg2[%c0_97, %c21] : memref<4x25xf32, #tpu.memory_space<smem>>
    %133 = vector.broadcast %132 : f32 to vector<16x16xf32>
    %134 = arith.mulf %131, %133 : vector<16x16xf32>
    %135 = arith.addf %129, %134 : vector<16x16xf32>
    %c0_98 = arith.constant 0 : index
    %c4_99 = arith.constant 4 : index
    %c2_100 = arith.constant 2 : index
    %136 = vector.load %arg6[%c0_98, %c4_99, %c2_100] : memref<4x20x20xf32, #tpu.memory_space<vmem>>, vector<1x16x16xf32>
    %137 = vector.shape_cast %136 : vector<1x16x16xf32> to vector<16x16xf32>
    %c0_101 = arith.constant 0 : index
    %c22 = arith.constant 22 : index
    %138 = memref.load %arg2[%c0_101, %c22] : memref<4x25xf32, #tpu.memory_space<smem>>
    %139 = vector.broadcast %138 : f32 to vector<16x16xf32>
    %140 = arith.mulf %137, %139 : vector<16x16xf32>
    %141 = arith.addf %135, %140 : vector<16x16xf32>
    %c0_102 = arith.constant 0 : index
    %c4_103 = arith.constant 4 : index
    %c3_104 = arith.constant 3 : index
    %142 = vector.load %arg6[%c0_102, %c4_103, %c3_104] : memref<4x20x20xf32, #tpu.memory_space<vmem>>, vector<1x16x16xf32>
    %143 = vector.shape_cast %142 : vector<1x16x16xf32> to vector<16x16xf32>
    %c0_105 = arith.constant 0 : index
    %c23 = arith.constant 23 : index
    %144 = memref.load %arg2[%c0_105, %c23] : memref<4x25xf32, #tpu.memory_space<smem>>
    %145 = vector.broadcast %144 : f32 to vector<16x16xf32>
    %146 = arith.mulf %143, %145 : vector<16x16xf32>
    %147 = arith.addf %141, %146 : vector<16x16xf32>
    %c0_106 = arith.constant 0 : index
    %c4_107 = arith.constant 4 : index
    %c4_108 = arith.constant 4 : index
    %148 = vector.load %arg6[%c0_106, %c4_107, %c4_108] : memref<4x20x20xf32, #tpu.memory_space<vmem>>, vector<1x16x16xf32>
    %149 = vector.shape_cast %148 : vector<1x16x16xf32> to vector<16x16xf32>
    %c0_109 = arith.constant 0 : index
    %c24 = arith.constant 24 : index
    %150 = memref.load %arg2[%c0_109, %c24] : memref<4x25xf32, #tpu.memory_space<smem>>
    %151 = vector.broadcast %150 : f32 to vector<16x16xf32>
    %152 = arith.mulf %149, %151 : vector<16x16xf32>
    %153 = arith.addf %147, %152 : vector<16x16xf32>
    %c1_110 = arith.constant 1 : index
    %c0_111 = arith.constant 0 : index
    %c0_112 = arith.constant 0 : index
    %154 = vector.load %arg6[%c1_110, %c0_111, %c0_112] : memref<4x20x20xf32, #tpu.memory_space<vmem>>, vector<1x16x16xf32>
    %155 = vector.shape_cast %154 : vector<1x16x16xf32> to vector<16x16xf32>
    %c1_113 = arith.constant 1 : index
    %c0_114 = arith.constant 0 : index
    %156 = memref.load %arg2[%c1_113, %c0_114] : memref<4x25xf32, #tpu.memory_space<smem>>
    %157 = vector.broadcast %156 : f32 to vector<16x16xf32>
    %158 = arith.mulf %155, %157 : vector<16x16xf32>
    %c1_115 = arith.constant 1 : index
    %c0_116 = arith.constant 0 : index
    %c1_117 = arith.constant 1 : index
    %159 = vector.load %arg6[%c1_115, %c0_116, %c1_117] : memref<4x20x20xf32, #tpu.memory_space<vmem>>, vector<1x16x16xf32>
    %160 = vector.shape_cast %159 : vector<1x16x16xf32> to vector<16x16xf32>
    %c1_118 = arith.constant 1 : index
    %c1_119 = arith.constant 1 : index
    %161 = memref.load %arg2[%c1_118, %c1_119] : memref<4x25xf32, #tpu.memory_space<smem>>
    %162 = vector.broadcast %161 : f32 to vector<16x16xf32>
    %163 = arith.mulf %160, %162 : vector<16x16xf32>
    %164 = arith.addf %158, %163 : vector<16x16xf32>
    %c1_120 = arith.constant 1 : index
    %c0_121 = arith.constant 0 : index
    %c2_122 = arith.constant 2 : index
    %165 = vector.load %arg6[%c1_120, %c0_121, %c2_122] : memref<4x20x20xf32, #tpu.memory_space<vmem>>, vector<1x16x16xf32>
    %166 = vector.shape_cast %165 : vector<1x16x16xf32> to vector<16x16xf32>
    %c1_123 = arith.constant 1 : index
    %c2_124 = arith.constant 2 : index
    %167 = memref.load %arg2[%c1_123, %c2_124] : memref<4x25xf32, #tpu.memory_space<smem>>
    %168 = vector.broadcast %167 : f32 to vector<16x16xf32>
    %169 = arith.mulf %166, %168 : vector<16x16xf32>
    %170 = arith.addf %164, %169 : vector<16x16xf32>
    %c1_125 = arith.constant 1 : index
    %c0_126 = arith.constant 0 : index
    %c3_127 = arith.constant 3 : index
    %171 = vector.load %arg6[%c1_125, %c0_126, %c3_127] : memref<4x20x20xf32, #tpu.memory_space<vmem>>, vector<1x16x16xf32>
    %172 = vector.shape_cast %171 : vector<1x16x16xf32> to vector<16x16xf32>
    %c1_128 = arith.constant 1 : index
    %c3_129 = arith.constant 3 : index
    %173 = memref.load %arg2[%c1_128, %c3_129] : memref<4x25xf32, #tpu.memory_space<smem>>
    %174 = vector.broadcast %173 : f32 to vector<16x16xf32>
    %175 = arith.mulf %172, %174 : vector<16x16xf32>
    %176 = arith.addf %170, %175 : vector<16x16xf32>
    %c1_130 = arith.constant 1 : index
    %c0_131 = arith.constant 0 : index
    %c4_132 = arith.constant 4 : index
    %177 = vector.load %arg6[%c1_130, %c0_131, %c4_132] : memref<4x20x20xf32, #tpu.memory_space<vmem>>, vector<1x16x16xf32>
    %178 = vector.shape_cast %177 : vector<1x16x16xf32> to vector<16x16xf32>
    %c1_133 = arith.constant 1 : index
    %c4_134 = arith.constant 4 : index
    %179 = memref.load %arg2[%c1_133, %c4_134] : memref<4x25xf32, #tpu.memory_space<smem>>
    %180 = vector.broadcast %179 : f32 to vector<16x16xf32>
    %181 = arith.mulf %178, %180 : vector<16x16xf32>
    %182 = arith.addf %176, %181 : vector<16x16xf32>
    %c1_135 = arith.constant 1 : index
    %c1_136 = arith.constant 1 : index
    %c0_137 = arith.constant 0 : index
    %183 = vector.load %arg6[%c1_135, %c1_136, %c0_137] : memref<4x20x20xf32, #tpu.memory_space<vmem>>, vector<1x16x16xf32>
    %184 = vector.shape_cast %183 : vector<1x16x16xf32> to vector<16x16xf32>
    %c1_138 = arith.constant 1 : index
    %c5_139 = arith.constant 5 : index
    %185 = memref.load %arg2[%c1_138, %c5_139] : memref<4x25xf32, #tpu.memory_space<smem>>
    %186 = vector.broadcast %185 : f32 to vector<16x16xf32>
    %187 = arith.mulf %184, %186 : vector<16x16xf32>
    %188 = arith.addf %182, %187 : vector<16x16xf32>
    %c1_140 = arith.constant 1 : index
    %c1_141 = arith.constant 1 : index
    %c1_142 = arith.constant 1 : index
    %189 = vector.load %arg6[%c1_140, %c1_141, %c1_142] : memref<4x20x20xf32, #tpu.memory_space<vmem>>, vector<1x16x16xf32>
    %190 = vector.shape_cast %189 : vector<1x16x16xf32> to vector<16x16xf32>
    %c1_143 = arith.constant 1 : index
    %c6_144 = arith.constant 6 : index
    %191 = memref.load %arg2[%c1_143, %c6_144] : memref<4x25xf32, #tpu.memory_space<smem>>
    %192 = vector.broadcast %191 : f32 to vector<16x16xf32>
    %193 = arith.mulf %190, %192 : vector<16x16xf32>
    %194 = arith.addf %188, %193 : vector<16x16xf32>
    %c1_145 = arith.constant 1 : index
    %c1_146 = arith.constant 1 : index
    %c2_147 = arith.constant 2 : index
    %195 = vector.load %arg6[%c1_145, %c1_146, %c2_147] : memref<4x20x20xf32, #tpu.memory_space<vmem>>, vector<1x16x16xf32>
    %196 = vector.shape_cast %195 : vector<1x16x16xf32> to vector<16x16xf32>
    %c1_148 = arith.constant 1 : index
    %c7_149 = arith.constant 7 : index
    %197 = memref.load %arg2[%c1_148, %c7_149] : memref<4x25xf32, #tpu.memory_space<smem>>
    %198 = vector.broadcast %197 : f32 to vector<16x16xf32>
    %199 = arith.mulf %196, %198 : vector<16x16xf32>
    %200 = arith.addf %194, %199 : vector<16x16xf32>
    %c1_150 = arith.constant 1 : index
    %c1_151 = arith.constant 1 : index
    %c3_152 = arith.constant 3 : index
    %201 = vector.load %arg6[%c1_150, %c1_151, %c3_152] : memref<4x20x20xf32, #tpu.memory_space<vmem>>, vector<1x16x16xf32>
    %202 = vector.shape_cast %201 : vector<1x16x16xf32> to vector<16x16xf32>
    %c1_153 = arith.constant 1 : index
    %c8_154 = arith.constant 8 : index
    %203 = memref.load %arg2[%c1_153, %c8_154] : memref<4x25xf32, #tpu.memory_space<smem>>
    %204 = vector.broadcast %203 : f32 to vector<16x16xf32>
    %205 = arith.mulf %202, %204 : vector<16x16xf32>
    %206 = arith.addf %200, %205 : vector<16x16xf32>
    %c1_155 = arith.constant 1 : index
    %c1_156 = arith.constant 1 : index
    %c4_157 = arith.constant 4 : index
    %207 = vector.load %arg6[%c1_155, %c1_156, %c4_157] : memref<4x20x20xf32, #tpu.memory_space<vmem>>, vector<1x16x16xf32>
    %208 = vector.shape_cast %207 : vector<1x16x16xf32> to vector<16x16xf32>
    %c1_158 = arith.constant 1 : index
    %c9_159 = arith.constant 9 : index
    %209 = memref.load %arg2[%c1_158, %c9_159] : memref<4x25xf32, #tpu.memory_space<smem>>
    %210 = vector.broadcast %209 : f32 to vector<16x16xf32>
    %211 = arith.mulf %208, %210 : vector<16x16xf32>
    %212 = arith.addf %206, %211 : vector<16x16xf32>
    %c1_160 = arith.constant 1 : index
    %c2_161 = arith.constant 2 : index
    %c0_162 = arith.constant 0 : index
    %213 = vector.load %arg6[%c1_160, %c2_161, %c0_162] : memref<4x20x20xf32, #tpu.memory_space<vmem>>, vector<1x16x16xf32>
    %214 = vector.shape_cast %213 : vector<1x16x16xf32> to vector<16x16xf32>
    %c1_163 = arith.constant 1 : index
    %c10_164 = arith.constant 10 : index
    %215 = memref.load %arg2[%c1_163, %c10_164] : memref<4x25xf32, #tpu.memory_space<smem>>
    %216 = vector.broadcast %215 : f32 to vector<16x16xf32>
    %217 = arith.mulf %214, %216 : vector<16x16xf32>
    %218 = arith.addf %212, %217 : vector<16x16xf32>
    %c1_165 = arith.constant 1 : index
    %c2_166 = arith.constant 2 : index
    %c1_167 = arith.constant 1 : index
    %219 = vector.load %arg6[%c1_165, %c2_166, %c1_167] : memref<4x20x20xf32, #tpu.memory_space<vmem>>, vector<1x16x16xf32>
    %220 = vector.shape_cast %219 : vector<1x16x16xf32> to vector<16x16xf32>
    %c1_168 = arith.constant 1 : index
    %c11_169 = arith.constant 11 : index
    %221 = memref.load %arg2[%c1_168, %c11_169] : memref<4x25xf32, #tpu.memory_space<smem>>
    %222 = vector.broadcast %221 : f32 to vector<16x16xf32>
    %223 = arith.mulf %220, %222 : vector<16x16xf32>
    %224 = arith.addf %218, %223 : vector<16x16xf32>
    %c1_170 = arith.constant 1 : index
    %c2_171 = arith.constant 2 : index
    %c2_172 = arith.constant 2 : index
    %225 = vector.load %arg6[%c1_170, %c2_171, %c2_172] : memref<4x20x20xf32, #tpu.memory_space<vmem>>, vector<1x16x16xf32>
    %226 = vector.shape_cast %225 : vector<1x16x16xf32> to vector<16x16xf32>
    %c1_173 = arith.constant 1 : index
    %c12_174 = arith.constant 12 : index
    %227 = memref.load %arg2[%c1_173, %c12_174] : memref<4x25xf32, #tpu.memory_space<smem>>
    %228 = vector.broadcast %227 : f32 to vector<16x16xf32>
    %229 = arith.mulf %226, %228 : vector<16x16xf32>
    %230 = arith.addf %224, %229 : vector<16x16xf32>
    %c1_175 = arith.constant 1 : index
    %c2_176 = arith.constant 2 : index
    %c3_177 = arith.constant 3 : index
    %231 = vector.load %arg6[%c1_175, %c2_176, %c3_177] : memref<4x20x20xf32, #tpu.memory_space<vmem>>, vector<1x16x16xf32>
    %232 = vector.shape_cast %231 : vector<1x16x16xf32> to vector<16x16xf32>
    %c1_178 = arith.constant 1 : index
    %c13_179 = arith.constant 13 : index
    %233 = memref.load %arg2[%c1_178, %c13_179] : memref<4x25xf32, #tpu.memory_space<smem>>
    %234 = vector.broadcast %233 : f32 to vector<16x16xf32>
    %235 = arith.mulf %232, %234 : vector<16x16xf32>
    %236 = arith.addf %230, %235 : vector<16x16xf32>
    %c1_180 = arith.constant 1 : index
    %c2_181 = arith.constant 2 : index
    %c4_182 = arith.constant 4 : index
    %237 = vector.load %arg6[%c1_180, %c2_181, %c4_182] : memref<4x20x20xf32, #tpu.memory_space<vmem>>, vector<1x16x16xf32>
    %238 = vector.shape_cast %237 : vector<1x16x16xf32> to vector<16x16xf32>
    %c1_183 = arith.constant 1 : index
    %c14_184 = arith.constant 14 : index
    %239 = memref.load %arg2[%c1_183, %c14_184] : memref<4x25xf32, #tpu.memory_space<smem>>
    %240 = vector.broadcast %239 : f32 to vector<16x16xf32>
    %241 = arith.mulf %238, %240 : vector<16x16xf32>
    %242 = arith.addf %236, %241 : vector<16x16xf32>
    %c1_185 = arith.constant 1 : index
    %c3_186 = arith.constant 3 : index
    %c0_187 = arith.constant 0 : index
    %243 = vector.load %arg6[%c1_185, %c3_186, %c0_187] : memref<4x20x20xf32, #tpu.memory_space<vmem>>, vector<1x16x16xf32>
    %244 = vector.shape_cast %243 : vector<1x16x16xf32> to vector<16x16xf32>
    %c1_188 = arith.constant 1 : index
    %c15_189 = arith.constant 15 : index
    %245 = memref.load %arg2[%c1_188, %c15_189] : memref<4x25xf32, #tpu.memory_space<smem>>
    %246 = vector.broadcast %245 : f32 to vector<16x16xf32>
    %247 = arith.mulf %244, %246 : vector<16x16xf32>
    %248 = arith.addf %242, %247 : vector<16x16xf32>
    %c1_190 = arith.constant 1 : index
    %c3_191 = arith.constant 3 : index
    %c1_192 = arith.constant 1 : index
    %249 = vector.load %arg6[%c1_190, %c3_191, %c1_192] : memref<4x20x20xf32, #tpu.memory_space<vmem>>, vector<1x16x16xf32>
    %250 = vector.shape_cast %249 : vector<1x16x16xf32> to vector<16x16xf32>
    %c1_193 = arith.constant 1 : index
    %c16_194 = arith.constant 16 : index
    %251 = memref.load %arg2[%c1_193, %c16_194] : memref<4x25xf32, #tpu.memory_space<smem>>
    %252 = vector.broadcast %251 : f32 to vector<16x16xf32>
    %253 = arith.mulf %250, %252 : vector<16x16xf32>
    %254 = arith.addf %248, %253 : vector<16x16xf32>
    %c1_195 = arith.constant 1 : index
    %c3_196 = arith.constant 3 : index
    %c2_197 = arith.constant 2 : index
    %255 = vector.load %arg6[%c1_195, %c3_196, %c2_197] : memref<4x20x20xf32, #tpu.memory_space<vmem>>, vector<1x16x16xf32>
    %256 = vector.shape_cast %255 : vector<1x16x16xf32> to vector<16x16xf32>
    %c1_198 = arith.constant 1 : index
    %c17_199 = arith.constant 17 : index
    %257 = memref.load %arg2[%c1_198, %c17_199] : memref<4x25xf32, #tpu.memory_space<smem>>
    %258 = vector.broadcast %257 : f32 to vector<16x16xf32>
    %259 = arith.mulf %256, %258 : vector<16x16xf32>
    %260 = arith.addf %254, %259 : vector<16x16xf32>
    %c1_200 = arith.constant 1 : index
    %c3_201 = arith.constant 3 : index
    %c3_202 = arith.constant 3 : index
    %261 = vector.load %arg6[%c1_200, %c3_201, %c3_202] : memref<4x20x20xf32, #tpu.memory_space<vmem>>, vector<1x16x16xf32>
    %262 = vector.shape_cast %261 : vector<1x16x16xf32> to vector<16x16xf32>
    %c1_203 = arith.constant 1 : index
    %c18_204 = arith.constant 18 : index
    %263 = memref.load %arg2[%c1_203, %c18_204] : memref<4x25xf32, #tpu.memory_space<smem>>
    %264 = vector.broadcast %263 : f32 to vector<16x16xf32>
    %265 = arith.mulf %262, %264 : vector<16x16xf32>
    %266 = arith.addf %260, %265 : vector<16x16xf32>
    %c1_205 = arith.constant 1 : index
    %c3_206 = arith.constant 3 : index
    %c4_207 = arith.constant 4 : index
    %267 = vector.load %arg6[%c1_205, %c3_206, %c4_207] : memref<4x20x20xf32, #tpu.memory_space<vmem>>, vector<1x16x16xf32>
    %268 = vector.shape_cast %267 : vector<1x16x16xf32> to vector<16x16xf32>
    %c1_208 = arith.constant 1 : index
    %c19_209 = arith.constant 19 : index
    %269 = memref.load %arg2[%c1_208, %c19_209] : memref<4x25xf32, #tpu.memory_space<smem>>
    %270 = vector.broadcast %269 : f32 to vector<16x16xf32>
    %271 = arith.mulf %268, %270 : vector<16x16xf32>
    %272 = arith.addf %266, %271 : vector<16x16xf32>
    %c1_210 = arith.constant 1 : index
    %c4_211 = arith.constant 4 : index
    %c0_212 = arith.constant 0 : index
    %273 = vector.load %arg6[%c1_210, %c4_211, %c0_212] : memref<4x20x20xf32, #tpu.memory_space<vmem>>, vector<1x16x16xf32>
    %274 = vector.shape_cast %273 : vector<1x16x16xf32> to vector<16x16xf32>
    %c1_213 = arith.constant 1 : index
    %c20_214 = arith.constant 20 : index
    %275 = memref.load %arg2[%c1_213, %c20_214] : memref<4x25xf32, #tpu.memory_space<smem>>
    %276 = vector.broadcast %275 : f32 to vector<16x16xf32>
    %277 = arith.mulf %274, %276 : vector<16x16xf32>
    %278 = arith.addf %272, %277 : vector<16x16xf32>
    %c1_215 = arith.constant 1 : index
    %c4_216 = arith.constant 4 : index
    %c1_217 = arith.constant 1 : index
    %279 = vector.load %arg6[%c1_215, %c4_216, %c1_217] : memref<4x20x20xf32, #tpu.memory_space<vmem>>, vector<1x16x16xf32>
    %280 = vector.shape_cast %279 : vector<1x16x16xf32> to vector<16x16xf32>
    %c1_218 = arith.constant 1 : index
    %c21_219 = arith.constant 21 : index
    %281 = memref.load %arg2[%c1_218, %c21_219] : memref<4x25xf32, #tpu.memory_space<smem>>
    %282 = vector.broadcast %281 : f32 to vector<16x16xf32>
    %283 = arith.mulf %280, %282 : vector<16x16xf32>
    %284 = arith.addf %278, %283 : vector<16x16xf32>
    %c1_220 = arith.constant 1 : index
    %c4_221 = arith.constant 4 : index
    %c2_222 = arith.constant 2 : index
    %285 = vector.load %arg6[%c1_220, %c4_221, %c2_222] : memref<4x20x20xf32, #tpu.memory_space<vmem>>, vector<1x16x16xf32>
    %286 = vector.shape_cast %285 : vector<1x16x16xf32> to vector<16x16xf32>
    %c1_223 = arith.constant 1 : index
    %c22_224 = arith.constant 22 : index
    %287 = memref.load %arg2[%c1_223, %c22_224] : memref<4x25xf32, #tpu.memory_space<smem>>
    %288 = vector.broadcast %287 : f32 to vector<16x16xf32>
    %289 = arith.mulf %286, %288 : vector<16x16xf32>
    %290 = arith.addf %284, %289 : vector<16x16xf32>
    %c1_225 = arith.constant 1 : index
    %c4_226 = arith.constant 4 : index
    %c3_227 = arith.constant 3 : index
    %291 = vector.load %arg6[%c1_225, %c4_226, %c3_227] : memref<4x20x20xf32, #tpu.memory_space<vmem>>, vector<1x16x16xf32>
    %292 = vector.shape_cast %291 : vector<1x16x16xf32> to vector<16x16xf32>
    %c1_228 = arith.constant 1 : index
    %c23_229 = arith.constant 23 : index
    %293 = memref.load %arg2[%c1_228, %c23_229] : memref<4x25xf32, #tpu.memory_space<smem>>
    %294 = vector.broadcast %293 : f32 to vector<16x16xf32>
    %295 = arith.mulf %292, %294 : vector<16x16xf32>
    %296 = arith.addf %290, %295 : vector<16x16xf32>
    %c1_230 = arith.constant 1 : index
    %c4_231 = arith.constant 4 : index
    %c4_232 = arith.constant 4 : index
    %297 = vector.load %arg6[%c1_230, %c4_231, %c4_232] : memref<4x20x20xf32, #tpu.memory_space<vmem>>, vector<1x16x16xf32>
    %298 = vector.shape_cast %297 : vector<1x16x16xf32> to vector<16x16xf32>
    %c1_233 = arith.constant 1 : index
    %c24_234 = arith.constant 24 : index
    %299 = memref.load %arg2[%c1_233, %c24_234] : memref<4x25xf32, #tpu.memory_space<smem>>
    %300 = vector.broadcast %299 : f32 to vector<16x16xf32>
    %301 = arith.mulf %298, %300 : vector<16x16xf32>
    %302 = arith.addf %296, %301 : vector<16x16xf32>
    %c2_235 = arith.constant 2 : index
    %c0_236 = arith.constant 0 : index
    %c0_237 = arith.constant 0 : index
    %303 = vector.load %arg6[%c2_235, %c0_236, %c0_237] : memref<4x20x20xf32, #tpu.memory_space<vmem>>, vector<1x16x16xf32>
    %304 = vector.shape_cast %303 : vector<1x16x16xf32> to vector<16x16xf32>
    %c2_238 = arith.constant 2 : index
    %c0_239 = arith.constant 0 : index
    %305 = memref.load %arg2[%c2_238, %c0_239] : memref<4x25xf32, #tpu.memory_space<smem>>
    %306 = vector.broadcast %305 : f32 to vector<16x16xf32>
    %307 = arith.mulf %304, %306 : vector<16x16xf32>
    %c2_240 = arith.constant 2 : index
    %c0_241 = arith.constant 0 : index
    %c1_242 = arith.constant 1 : index
    %308 = vector.load %arg6[%c2_240, %c0_241, %c1_242] : memref<4x20x20xf32, #tpu.memory_space<vmem>>, vector<1x16x16xf32>
    %309 = vector.shape_cast %308 : vector<1x16x16xf32> to vector<16x16xf32>
    %c2_243 = arith.constant 2 : index
    %c1_244 = arith.constant 1 : index
    %310 = memref.load %arg2[%c2_243, %c1_244] : memref<4x25xf32, #tpu.memory_space<smem>>
    %311 = vector.broadcast %310 : f32 to vector<16x16xf32>
    %312 = arith.mulf %309, %311 : vector<16x16xf32>
    %313 = arith.addf %307, %312 : vector<16x16xf32>
    %c2_245 = arith.constant 2 : index
    %c0_246 = arith.constant 0 : index
    %c2_247 = arith.constant 2 : index
    %314 = vector.load %arg6[%c2_245, %c0_246, %c2_247] : memref<4x20x20xf32, #tpu.memory_space<vmem>>, vector<1x16x16xf32>
    %315 = vector.shape_cast %314 : vector<1x16x16xf32> to vector<16x16xf32>
    %c2_248 = arith.constant 2 : index
    %c2_249 = arith.constant 2 : index
    %316 = memref.load %arg2[%c2_248, %c2_249] : memref<4x25xf32, #tpu.memory_space<smem>>
    %317 = vector.broadcast %316 : f32 to vector<16x16xf32>
    %318 = arith.mulf %315, %317 : vector<16x16xf32>
    %319 = arith.addf %313, %318 : vector<16x16xf32>
    %c2_250 = arith.constant 2 : index
    %c0_251 = arith.constant 0 : index
    %c3_252 = arith.constant 3 : index
    %320 = vector.load %arg6[%c2_250, %c0_251, %c3_252] : memref<4x20x20xf32, #tpu.memory_space<vmem>>, vector<1x16x16xf32>
    %321 = vector.shape_cast %320 : vector<1x16x16xf32> to vector<16x16xf32>
    %c2_253 = arith.constant 2 : index
    %c3_254 = arith.constant 3 : index
    %322 = memref.load %arg2[%c2_253, %c3_254] : memref<4x25xf32, #tpu.memory_space<smem>>
    %323 = vector.broadcast %322 : f32 to vector<16x16xf32>
    %324 = arith.mulf %321, %323 : vector<16x16xf32>
    %325 = arith.addf %319, %324 : vector<16x16xf32>
    %c2_255 = arith.constant 2 : index
    %c0_256 = arith.constant 0 : index
    %c4_257 = arith.constant 4 : index
    %326 = vector.load %arg6[%c2_255, %c0_256, %c4_257] : memref<4x20x20xf32, #tpu.memory_space<vmem>>, vector<1x16x16xf32>
    %327 = vector.shape_cast %326 : vector<1x16x16xf32> to vector<16x16xf32>
    %c2_258 = arith.constant 2 : index
    %c4_259 = arith.constant 4 : index
    %328 = memref.load %arg2[%c2_258, %c4_259] : memref<4x25xf32, #tpu.memory_space<smem>>
    %329 = vector.broadcast %328 : f32 to vector<16x16xf32>
    %330 = arith.mulf %327, %329 : vector<16x16xf32>
    %331 = arith.addf %325, %330 : vector<16x16xf32>
    %c2_260 = arith.constant 2 : index
    %c1_261 = arith.constant 1 : index
    %c0_262 = arith.constant 0 : index
    %332 = vector.load %arg6[%c2_260, %c1_261, %c0_262] : memref<4x20x20xf32, #tpu.memory_space<vmem>>, vector<1x16x16xf32>
    %333 = vector.shape_cast %332 : vector<1x16x16xf32> to vector<16x16xf32>
    %c2_263 = arith.constant 2 : index
    %c5_264 = arith.constant 5 : index
    %334 = memref.load %arg2[%c2_263, %c5_264] : memref<4x25xf32, #tpu.memory_space<smem>>
    %335 = vector.broadcast %334 : f32 to vector<16x16xf32>
    %336 = arith.mulf %333, %335 : vector<16x16xf32>
    %337 = arith.addf %331, %336 : vector<16x16xf32>
    %c2_265 = arith.constant 2 : index
    %c1_266 = arith.constant 1 : index
    %c1_267 = arith.constant 1 : index
    %338 = vector.load %arg6[%c2_265, %c1_266, %c1_267] : memref<4x20x20xf32, #tpu.memory_space<vmem>>, vector<1x16x16xf32>
    %339 = vector.shape_cast %338 : vector<1x16x16xf32> to vector<16x16xf32>
    %c2_268 = arith.constant 2 : index
    %c6_269 = arith.constant 6 : index
    %340 = memref.load %arg2[%c2_268, %c6_269] : memref<4x25xf32, #tpu.memory_space<smem>>
    %341 = vector.broadcast %340 : f32 to vector<16x16xf32>
    %342 = arith.mulf %339, %341 : vector<16x16xf32>
    %343 = arith.addf %337, %342 : vector<16x16xf32>
    %c2_270 = arith.constant 2 : index
    %c1_271 = arith.constant 1 : index
    %c2_272 = arith.constant 2 : index
    %344 = vector.load %arg6[%c2_270, %c1_271, %c2_272] : memref<4x20x20xf32, #tpu.memory_space<vmem>>, vector<1x16x16xf32>
    %345 = vector.shape_cast %344 : vector<1x16x16xf32> to vector<16x16xf32>
    %c2_273 = arith.constant 2 : index
    %c7_274 = arith.constant 7 : index
    %346 = memref.load %arg2[%c2_273, %c7_274] : memref<4x25xf32, #tpu.memory_space<smem>>
    %347 = vector.broadcast %346 : f32 to vector<16x16xf32>
    %348 = arith.mulf %345, %347 : vector<16x16xf32>
    %349 = arith.addf %343, %348 : vector<16x16xf32>
    %c2_275 = arith.constant 2 : index
    %c1_276 = arith.constant 1 : index
    %c3_277 = arith.constant 3 : index
    %350 = vector.load %arg6[%c2_275, %c1_276, %c3_277] : memref<4x20x20xf32, #tpu.memory_space<vmem>>, vector<1x16x16xf32>
    %351 = vector.shape_cast %350 : vector<1x16x16xf32> to vector<16x16xf32>
    %c2_278 = arith.constant 2 : index
    %c8_279 = arith.constant 8 : index
    %352 = memref.load %arg2[%c2_278, %c8_279] : memref<4x25xf32, #tpu.memory_space<smem>>
    %353 = vector.broadcast %352 : f32 to vector<16x16xf32>
    %354 = arith.mulf %351, %353 : vector<16x16xf32>
    %355 = arith.addf %349, %354 : vector<16x16xf32>
    %c2_280 = arith.constant 2 : index
    %c1_281 = arith.constant 1 : index
    %c4_282 = arith.constant 4 : index
    %356 = vector.load %arg6[%c2_280, %c1_281, %c4_282] : memref<4x20x20xf32, #tpu.memory_space<vmem>>, vector<1x16x16xf32>
    %357 = vector.shape_cast %356 : vector<1x16x16xf32> to vector<16x16xf32>
    %c2_283 = arith.constant 2 : index
    %c9_284 = arith.constant 9 : index
    %358 = memref.load %arg2[%c2_283, %c9_284] : memref<4x25xf32, #tpu.memory_space<smem>>
    %359 = vector.broadcast %358 : f32 to vector<16x16xf32>
    %360 = arith.mulf %357, %359 : vector<16x16xf32>
    %361 = arith.addf %355, %360 : vector<16x16xf32>
    %c2_285 = arith.constant 2 : index
    %c2_286 = arith.constant 2 : index
    %c0_287 = arith.constant 0 : index
    %362 = vector.load %arg6[%c2_285, %c2_286, %c0_287] : memref<4x20x20xf32, #tpu.memory_space<vmem>>, vector<1x16x16xf32>
    %363 = vector.shape_cast %362 : vector<1x16x16xf32> to vector<16x16xf32>
    %c2_288 = arith.constant 2 : index
    %c10_289 = arith.constant 10 : index
    %364 = memref.load %arg2[%c2_288, %c10_289] : memref<4x25xf32, #tpu.memory_space<smem>>
    %365 = vector.broadcast %364 : f32 to vector<16x16xf32>
    %366 = arith.mulf %363, %365 : vector<16x16xf32>
    %367 = arith.addf %361, %366 : vector<16x16xf32>
    %c2_290 = arith.constant 2 : index
    %c2_291 = arith.constant 2 : index
    %c1_292 = arith.constant 1 : index
    %368 = vector.load %arg6[%c2_290, %c2_291, %c1_292] : memref<4x20x20xf32, #tpu.memory_space<vmem>>, vector<1x16x16xf32>
    %369 = vector.shape_cast %368 : vector<1x16x16xf32> to vector<16x16xf32>
    %c2_293 = arith.constant 2 : index
    %c11_294 = arith.constant 11 : index
    %370 = memref.load %arg2[%c2_293, %c11_294] : memref<4x25xf32, #tpu.memory_space<smem>>
    %371 = vector.broadcast %370 : f32 to vector<16x16xf32>
    %372 = arith.mulf %369, %371 : vector<16x16xf32>
    %373 = arith.addf %367, %372 : vector<16x16xf32>
    %c2_295 = arith.constant 2 : index
    %c2_296 = arith.constant 2 : index
    %c2_297 = arith.constant 2 : index
    %374 = vector.load %arg6[%c2_295, %c2_296, %c2_297] : memref<4x20x20xf32, #tpu.memory_space<vmem>>, vector<1x16x16xf32>
    %375 = vector.shape_cast %374 : vector<1x16x16xf32> to vector<16x16xf32>
    %c2_298 = arith.constant 2 : index
    %c12_299 = arith.constant 12 : index
    %376 = memref.load %arg2[%c2_298, %c12_299] : memref<4x25xf32, #tpu.memory_space<smem>>
    %377 = vector.broadcast %376 : f32 to vector<16x16xf32>
    %378 = arith.mulf %375, %377 : vector<16x16xf32>
    %379 = arith.addf %373, %378 : vector<16x16xf32>
    %c2_300 = arith.constant 2 : index
    %c2_301 = arith.constant 2 : index
    %c3_302 = arith.constant 3 : index
    %380 = vector.load %arg6[%c2_300, %c2_301, %c3_302] : memref<4x20x20xf32, #tpu.memory_space<vmem>>, vector<1x16x16xf32>
    %381 = vector.shape_cast %380 : vector<1x16x16xf32> to vector<16x16xf32>
    %c2_303 = arith.constant 2 : index
    %c13_304 = arith.constant 13 : index
    %382 = memref.load %arg2[%c2_303, %c13_304] : memref<4x25xf32, #tpu.memory_space<smem>>
    %383 = vector.broadcast %382 : f32 to vector<16x16xf32>
    %384 = arith.mulf %381, %383 : vector<16x16xf32>
    %385 = arith.addf %379, %384 : vector<16x16xf32>
    %c2_305 = arith.constant 2 : index
    %c2_306 = arith.constant 2 : index
    %c4_307 = arith.constant 4 : index
    %386 = vector.load %arg6[%c2_305, %c2_306, %c4_307] : memref<4x20x20xf32, #tpu.memory_space<vmem>>, vector<1x16x16xf32>
    %387 = vector.shape_cast %386 : vector<1x16x16xf32> to vector<16x16xf32>
    %c2_308 = arith.constant 2 : index
    %c14_309 = arith.constant 14 : index
    %388 = memref.load %arg2[%c2_308, %c14_309] : memref<4x25xf32, #tpu.memory_space<smem>>
    %389 = vector.broadcast %388 : f32 to vector<16x16xf32>
    %390 = arith.mulf %387, %389 : vector<16x16xf32>
    %391 = arith.addf %385, %390 : vector<16x16xf32>
    %c2_310 = arith.constant 2 : index
    %c3_311 = arith.constant 3 : index
    %c0_312 = arith.constant 0 : index
    %392 = vector.load %arg6[%c2_310, %c3_311, %c0_312] : memref<4x20x20xf32, #tpu.memory_space<vmem>>, vector<1x16x16xf32>
    %393 = vector.shape_cast %392 : vector<1x16x16xf32> to vector<16x16xf32>
    %c2_313 = arith.constant 2 : index
    %c15_314 = arith.constant 15 : index
    %394 = memref.load %arg2[%c2_313, %c15_314] : memref<4x25xf32, #tpu.memory_space<smem>>
    %395 = vector.broadcast %394 : f32 to vector<16x16xf32>
    %396 = arith.mulf %393, %395 : vector<16x16xf32>
    %397 = arith.addf %391, %396 : vector<16x16xf32>
    %c2_315 = arith.constant 2 : index
    %c3_316 = arith.constant 3 : index
    %c1_317 = arith.constant 1 : index
    %398 = vector.load %arg6[%c2_315, %c3_316, %c1_317] : memref<4x20x20xf32, #tpu.memory_space<vmem>>, vector<1x16x16xf32>
    %399 = vector.shape_cast %398 : vector<1x16x16xf32> to vector<16x16xf32>
    %c2_318 = arith.constant 2 : index
    %c16_319 = arith.constant 16 : index
    %400 = memref.load %arg2[%c2_318, %c16_319] : memref<4x25xf32, #tpu.memory_space<smem>>
    %401 = vector.broadcast %400 : f32 to vector<16x16xf32>
    %402 = arith.mulf %399, %401 : vector<16x16xf32>
    %403 = arith.addf %397, %402 : vector<16x16xf32>
    %c2_320 = arith.constant 2 : index
    %c3_321 = arith.constant 3 : index
    %c2_322 = arith.constant 2 : index
    %404 = vector.load %arg6[%c2_320, %c3_321, %c2_322] : memref<4x20x20xf32, #tpu.memory_space<vmem>>, vector<1x16x16xf32>
    %405 = vector.shape_cast %404 : vector<1x16x16xf32> to vector<16x16xf32>
    %c2_323 = arith.constant 2 : index
    %c17_324 = arith.constant 17 : index
    %406 = memref.load %arg2[%c2_323, %c17_324] : memref<4x25xf32, #tpu.memory_space<smem>>
    %407 = vector.broadcast %406 : f32 to vector<16x16xf32>
    %408 = arith.mulf %405, %407 : vector<16x16xf32>
    %409 = arith.addf %403, %408 : vector<16x16xf32>
    %c2_325 = arith.constant 2 : index
    %c3_326 = arith.constant 3 : index
    %c3_327 = arith.constant 3 : index
    %410 = vector.load %arg6[%c2_325, %c3_326, %c3_327] : memref<4x20x20xf32, #tpu.memory_space<vmem>>, vector<1x16x16xf32>
    %411 = vector.shape_cast %410 : vector<1x16x16xf32> to vector<16x16xf32>
    %c2_328 = arith.constant 2 : index
    %c18_329 = arith.constant 18 : index
    %412 = memref.load %arg2[%c2_328, %c18_329] : memref<4x25xf32, #tpu.memory_space<smem>>
    %413 = vector.broadcast %412 : f32 to vector<16x16xf32>
    %414 = arith.mulf %411, %413 : vector<16x16xf32>
    %415 = arith.addf %409, %414 : vector<16x16xf32>
    %c2_330 = arith.constant 2 : index
    %c3_331 = arith.constant 3 : index
    %c4_332 = arith.constant 4 : index
    %416 = vector.load %arg6[%c2_330, %c3_331, %c4_332] : memref<4x20x20xf32, #tpu.memory_space<vmem>>, vector<1x16x16xf32>
    %417 = vector.shape_cast %416 : vector<1x16x16xf32> to vector<16x16xf32>
    %c2_333 = arith.constant 2 : index
    %c19_334 = arith.constant 19 : index
    %418 = memref.load %arg2[%c2_333, %c19_334] : memref<4x25xf32, #tpu.memory_space<smem>>
    %419 = vector.broadcast %418 : f32 to vector<16x16xf32>
    %420 = arith.mulf %417, %419 : vector<16x16xf32>
    %421 = arith.addf %415, %420 : vector<16x16xf32>
    %c2_335 = arith.constant 2 : index
    %c4_336 = arith.constant 4 : index
    %c0_337 = arith.constant 0 : index
    %422 = vector.load %arg6[%c2_335, %c4_336, %c0_337] : memref<4x20x20xf32, #tpu.memory_space<vmem>>, vector<1x16x16xf32>
    %423 = vector.shape_cast %422 : vector<1x16x16xf32> to vector<16x16xf32>
    %c2_338 = arith.constant 2 : index
    %c20_339 = arith.constant 20 : index
    %424 = memref.load %arg2[%c2_338, %c20_339] : memref<4x25xf32, #tpu.memory_space<smem>>
    %425 = vector.broadcast %424 : f32 to vector<16x16xf32>
    %426 = arith.mulf %423, %425 : vector<16x16xf32>
    %427 = arith.addf %421, %426 : vector<16x16xf32>
    %c2_340 = arith.constant 2 : index
    %c4_341 = arith.constant 4 : index
    %c1_342 = arith.constant 1 : index
    %428 = vector.load %arg6[%c2_340, %c4_341, %c1_342] : memref<4x20x20xf32, #tpu.memory_space<vmem>>, vector<1x16x16xf32>
    %429 = vector.shape_cast %428 : vector<1x16x16xf32> to vector<16x16xf32>
    %c2_343 = arith.constant 2 : index
    %c21_344 = arith.constant 21 : index
    %430 = memref.load %arg2[%c2_343, %c21_344] : memref<4x25xf32, #tpu.memory_space<smem>>
    %431 = vector.broadcast %430 : f32 to vector<16x16xf32>
    %432 = arith.mulf %429, %431 : vector<16x16xf32>
    %433 = arith.addf %427, %432 : vector<16x16xf32>
    %c2_345 = arith.constant 2 : index
    %c4_346 = arith.constant 4 : index
    %c2_347 = arith.constant 2 : index
    %434 = vector.load %arg6[%c2_345, %c4_346, %c2_347] : memref<4x20x20xf32, #tpu.memory_space<vmem>>, vector<1x16x16xf32>
    %435 = vector.shape_cast %434 : vector<1x16x16xf32> to vector<16x16xf32>
    %c2_348 = arith.constant 2 : index
    %c22_349 = arith.constant 22 : index
    %436 = memref.load %arg2[%c2_348, %c22_349] : memref<4x25xf32, #tpu.memory_space<smem>>
    %437 = vector.broadcast %436 : f32 to vector<16x16xf32>
    %438 = arith.mulf %435, %437 : vector<16x16xf32>
    %439 = arith.addf %433, %438 : vector<16x16xf32>
    %c2_350 = arith.constant 2 : index
    %c4_351 = arith.constant 4 : index
    %c3_352 = arith.constant 3 : index
    %440 = vector.load %arg6[%c2_350, %c4_351, %c3_352] : memref<4x20x20xf32, #tpu.memory_space<vmem>>, vector<1x16x16xf32>
    %441 = vector.shape_cast %440 : vector<1x16x16xf32> to vector<16x16xf32>
    %c2_353 = arith.constant 2 : index
    %c23_354 = arith.constant 23 : index
    %442 = memref.load %arg2[%c2_353, %c23_354] : memref<4x25xf32, #tpu.memory_space<smem>>
    %443 = vector.broadcast %442 : f32 to vector<16x16xf32>
    %444 = arith.mulf %441, %443 : vector<16x16xf32>
    %445 = arith.addf %439, %444 : vector<16x16xf32>
    %c2_355 = arith.constant 2 : index
    %c4_356 = arith.constant 4 : index
    %c4_357 = arith.constant 4 : index
    %446 = vector.load %arg6[%c2_355, %c4_356, %c4_357] : memref<4x20x20xf32, #tpu.memory_space<vmem>>, vector<1x16x16xf32>
    %447 = vector.shape_cast %446 : vector<1x16x16xf32> to vector<16x16xf32>
    %c2_358 = arith.constant 2 : index
    %c24_359 = arith.constant 24 : index
    %448 = memref.load %arg2[%c2_358, %c24_359] : memref<4x25xf32, #tpu.memory_space<smem>>
    %449 = vector.broadcast %448 : f32 to vector<16x16xf32>
    %450 = arith.mulf %447, %449 : vector<16x16xf32>
    %451 = arith.addf %445, %450 : vector<16x16xf32>
    %c3_360 = arith.constant 3 : index
    %c0_361 = arith.constant 0 : index
    %c0_362 = arith.constant 0 : index
    %452 = vector.load %arg6[%c3_360, %c0_361, %c0_362] : memref<4x20x20xf32, #tpu.memory_space<vmem>>, vector<1x16x16xf32>
    %453 = vector.shape_cast %452 : vector<1x16x16xf32> to vector<16x16xf32>
    %c3_363 = arith.constant 3 : index
    %c0_364 = arith.constant 0 : index
    %454 = memref.load %arg2[%c3_363, %c0_364] : memref<4x25xf32, #tpu.memory_space<smem>>
    %455 = vector.broadcast %454 : f32 to vector<16x16xf32>
    %456 = arith.mulf %453, %455 : vector<16x16xf32>
    %c3_365 = arith.constant 3 : index
    %c0_366 = arith.constant 0 : index
    %c1_367 = arith.constant 1 : index
    %457 = vector.load %arg6[%c3_365, %c0_366, %c1_367] : memref<4x20x20xf32, #tpu.memory_space<vmem>>, vector<1x16x16xf32>
    %458 = vector.shape_cast %457 : vector<1x16x16xf32> to vector<16x16xf32>
    %c3_368 = arith.constant 3 : index
    %c1_369 = arith.constant 1 : index
    %459 = memref.load %arg2[%c3_368, %c1_369] : memref<4x25xf32, #tpu.memory_space<smem>>
    %460 = vector.broadcast %459 : f32 to vector<16x16xf32>
    %461 = arith.mulf %458, %460 : vector<16x16xf32>
    %462 = arith.addf %456, %461 : vector<16x16xf32>
    %c3_370 = arith.constant 3 : index
    %c0_371 = arith.constant 0 : index
    %c2_372 = arith.constant 2 : index
    %463 = vector.load %arg6[%c3_370, %c0_371, %c2_372] : memref<4x20x20xf32, #tpu.memory_space<vmem>>, vector<1x16x16xf32>
    %464 = vector.shape_cast %463 : vector<1x16x16xf32> to vector<16x16xf32>
    %c3_373 = arith.constant 3 : index
    %c2_374 = arith.constant 2 : index
    %465 = memref.load %arg2[%c3_373, %c2_374] : memref<4x25xf32, #tpu.memory_space<smem>>
    %466 = vector.broadcast %465 : f32 to vector<16x16xf32>
    %467 = arith.mulf %464, %466 : vector<16x16xf32>
    %468 = arith.addf %462, %467 : vector<16x16xf32>
    %c3_375 = arith.constant 3 : index
    %c0_376 = arith.constant 0 : index
    %c3_377 = arith.constant 3 : index
    %469 = vector.load %arg6[%c3_375, %c0_376, %c3_377] : memref<4x20x20xf32, #tpu.memory_space<vmem>>, vector<1x16x16xf32>
    %470 = vector.shape_cast %469 : vector<1x16x16xf32> to vector<16x16xf32>
    %c3_378 = arith.constant 3 : index
    %c3_379 = arith.constant 3 : index
    %471 = memref.load %arg2[%c3_378, %c3_379] : memref<4x25xf32, #tpu.memory_space<smem>>
    %472 = vector.broadcast %471 : f32 to vector<16x16xf32>
    %473 = arith.mulf %470, %472 : vector<16x16xf32>
    %474 = arith.addf %468, %473 : vector<16x16xf32>
    %c3_380 = arith.constant 3 : index
    %c0_381 = arith.constant 0 : index
    %c4_382 = arith.constant 4 : index
    %475 = vector.load %arg6[%c3_380, %c0_381, %c4_382] : memref<4x20x20xf32, #tpu.memory_space<vmem>>, vector<1x16x16xf32>
    %476 = vector.shape_cast %475 : vector<1x16x16xf32> to vector<16x16xf32>
    %c3_383 = arith.constant 3 : index
    %c4_384 = arith.constant 4 : index
    %477 = memref.load %arg2[%c3_383, %c4_384] : memref<4x25xf32, #tpu.memory_space<smem>>
    %478 = vector.broadcast %477 : f32 to vector<16x16xf32>
    %479 = arith.mulf %476, %478 : vector<16x16xf32>
    %480 = arith.addf %474, %479 : vector<16x16xf32>
    %c3_385 = arith.constant 3 : index
    %c1_386 = arith.constant 1 : index
    %c0_387 = arith.constant 0 : index
    %481 = vector.load %arg6[%c3_385, %c1_386, %c0_387] : memref<4x20x20xf32, #tpu.memory_space<vmem>>, vector<1x16x16xf32>
    %482 = vector.shape_cast %481 : vector<1x16x16xf32> to vector<16x16xf32>
    %c3_388 = arith.constant 3 : index
    %c5_389 = arith.constant 5 : index
    %483 = memref.load %arg2[%c3_388, %c5_389] : memref<4x25xf32, #tpu.memory_space<smem>>
    %484 = vector.broadcast %483 : f32 to vector<16x16xf32>
    %485 = arith.mulf %482, %484 : vector<16x16xf32>
    %486 = arith.addf %480, %485 : vector<16x16xf32>
    %c3_390 = arith.constant 3 : index
    %c1_391 = arith.constant 1 : index
    %c1_392 = arith.constant 1 : index
    %487 = vector.load %arg6[%c3_390, %c1_391, %c1_392] : memref<4x20x20xf32, #tpu.memory_space<vmem>>, vector<1x16x16xf32>
    %488 = vector.shape_cast %487 : vector<1x16x16xf32> to vector<16x16xf32>
    %c3_393 = arith.constant 3 : index
    %c6_394 = arith.constant 6 : index
    %489 = memref.load %arg2[%c3_393, %c6_394] : memref<4x25xf32, #tpu.memory_space<smem>>
    %490 = vector.broadcast %489 : f32 to vector<16x16xf32>
    %491 = arith.mulf %488, %490 : vector<16x16xf32>
    %492 = arith.addf %486, %491 : vector<16x16xf32>
    %c3_395 = arith.constant 3 : index
    %c1_396 = arith.constant 1 : index
    %c2_397 = arith.constant 2 : index
    %493 = vector.load %arg6[%c3_395, %c1_396, %c2_397] : memref<4x20x20xf32, #tpu.memory_space<vmem>>, vector<1x16x16xf32>
    %494 = vector.shape_cast %493 : vector<1x16x16xf32> to vector<16x16xf32>
    %c3_398 = arith.constant 3 : index
    %c7_399 = arith.constant 7 : index
    %495 = memref.load %arg2[%c3_398, %c7_399] : memref<4x25xf32, #tpu.memory_space<smem>>
    %496 = vector.broadcast %495 : f32 to vector<16x16xf32>
    %497 = arith.mulf %494, %496 : vector<16x16xf32>
    %498 = arith.addf %492, %497 : vector<16x16xf32>
    %c3_400 = arith.constant 3 : index
    %c1_401 = arith.constant 1 : index
    %c3_402 = arith.constant 3 : index
    %499 = vector.load %arg6[%c3_400, %c1_401, %c3_402] : memref<4x20x20xf32, #tpu.memory_space<vmem>>, vector<1x16x16xf32>
    %500 = vector.shape_cast %499 : vector<1x16x16xf32> to vector<16x16xf32>
    %c3_403 = arith.constant 3 : index
    %c8_404 = arith.constant 8 : index
    %501 = memref.load %arg2[%c3_403, %c8_404] : memref<4x25xf32, #tpu.memory_space<smem>>
    %502 = vector.broadcast %501 : f32 to vector<16x16xf32>
    %503 = arith.mulf %500, %502 : vector<16x16xf32>
    %504 = arith.addf %498, %503 : vector<16x16xf32>
    %c3_405 = arith.constant 3 : index
    %c1_406 = arith.constant 1 : index
    %c4_407 = arith.constant 4 : index
    %505 = vector.load %arg6[%c3_405, %c1_406, %c4_407] : memref<4x20x20xf32, #tpu.memory_space<vmem>>, vector<1x16x16xf32>
    %506 = vector.shape_cast %505 : vector<1x16x16xf32> to vector<16x16xf32>
    %c3_408 = arith.constant 3 : index
    %c9_409 = arith.constant 9 : index
    %507 = memref.load %arg2[%c3_408, %c9_409] : memref<4x25xf32, #tpu.memory_space<smem>>
    %508 = vector.broadcast %507 : f32 to vector<16x16xf32>
    %509 = arith.mulf %506, %508 : vector<16x16xf32>
    %510 = arith.addf %504, %509 : vector<16x16xf32>
    %c3_410 = arith.constant 3 : index
    %c2_411 = arith.constant 2 : index
    %c0_412 = arith.constant 0 : index
    %511 = vector.load %arg6[%c3_410, %c2_411, %c0_412] : memref<4x20x20xf32, #tpu.memory_space<vmem>>, vector<1x16x16xf32>
    %512 = vector.shape_cast %511 : vector<1x16x16xf32> to vector<16x16xf32>
    %c3_413 = arith.constant 3 : index
    %c10_414 = arith.constant 10 : index
    %513 = memref.load %arg2[%c3_413, %c10_414] : memref<4x25xf32, #tpu.memory_space<smem>>
    %514 = vector.broadcast %513 : f32 to vector<16x16xf32>
    %515 = arith.mulf %512, %514 : vector<16x16xf32>
    %516 = arith.addf %510, %515 : vector<16x16xf32>
    %c3_415 = arith.constant 3 : index
    %c2_416 = arith.constant 2 : index
    %c1_417 = arith.constant 1 : index
    %517 = vector.load %arg6[%c3_415, %c2_416, %c1_417] : memref<4x20x20xf32, #tpu.memory_space<vmem>>, vector<1x16x16xf32>
    %518 = vector.shape_cast %517 : vector<1x16x16xf32> to vector<16x16xf32>
    %c3_418 = arith.constant 3 : index
    %c11_419 = arith.constant 11 : index
    %519 = memref.load %arg2[%c3_418, %c11_419] : memref<4x25xf32, #tpu.memory_space<smem>>
    %520 = vector.broadcast %519 : f32 to vector<16x16xf32>
    %521 = arith.mulf %518, %520 : vector<16x16xf32>
    %522 = arith.addf %516, %521 : vector<16x16xf32>
    %c3_420 = arith.constant 3 : index
    %c2_421 = arith.constant 2 : index
    %c2_422 = arith.constant 2 : index
    %523 = vector.load %arg6[%c3_420, %c2_421, %c2_422] : memref<4x20x20xf32, #tpu.memory_space<vmem>>, vector<1x16x16xf32>
    %524 = vector.shape_cast %523 : vector<1x16x16xf32> to vector<16x16xf32>
    %c3_423 = arith.constant 3 : index
    %c12_424 = arith.constant 12 : index
    %525 = memref.load %arg2[%c3_423, %c12_424] : memref<4x25xf32, #tpu.memory_space<smem>>
    %526 = vector.broadcast %525 : f32 to vector<16x16xf32>
    %527 = arith.mulf %524, %526 : vector<16x16xf32>
    %528 = arith.addf %522, %527 : vector<16x16xf32>
    %c3_425 = arith.constant 3 : index
    %c2_426 = arith.constant 2 : index
    %c3_427 = arith.constant 3 : index
    %529 = vector.load %arg6[%c3_425, %c2_426, %c3_427] : memref<4x20x20xf32, #tpu.memory_space<vmem>>, vector<1x16x16xf32>
    %530 = vector.shape_cast %529 : vector<1x16x16xf32> to vector<16x16xf32>
    %c3_428 = arith.constant 3 : index
    %c13_429 = arith.constant 13 : index
    %531 = memref.load %arg2[%c3_428, %c13_429] : memref<4x25xf32, #tpu.memory_space<smem>>
    %532 = vector.broadcast %531 : f32 to vector<16x16xf32>
    %533 = arith.mulf %530, %532 : vector<16x16xf32>
    %534 = arith.addf %528, %533 : vector<16x16xf32>
    %c3_430 = arith.constant 3 : index
    %c2_431 = arith.constant 2 : index
    %c4_432 = arith.constant 4 : index
    %535 = vector.load %arg6[%c3_430, %c2_431, %c4_432] : memref<4x20x20xf32, #tpu.memory_space<vmem>>, vector<1x16x16xf32>
    %536 = vector.shape_cast %535 : vector<1x16x16xf32> to vector<16x16xf32>
    %c3_433 = arith.constant 3 : index
    %c14_434 = arith.constant 14 : index
    %537 = memref.load %arg2[%c3_433, %c14_434] : memref<4x25xf32, #tpu.memory_space<smem>>
    %538 = vector.broadcast %537 : f32 to vector<16x16xf32>
    %539 = arith.mulf %536, %538 : vector<16x16xf32>
    %540 = arith.addf %534, %539 : vector<16x16xf32>
    %c3_435 = arith.constant 3 : index
    %c3_436 = arith.constant 3 : index
    %c0_437 = arith.constant 0 : index
    %541 = vector.load %arg6[%c3_435, %c3_436, %c0_437] : memref<4x20x20xf32, #tpu.memory_space<vmem>>, vector<1x16x16xf32>
    %542 = vector.shape_cast %541 : vector<1x16x16xf32> to vector<16x16xf32>
    %c3_438 = arith.constant 3 : index
    %c15_439 = arith.constant 15 : index
    %543 = memref.load %arg2[%c3_438, %c15_439] : memref<4x25xf32, #tpu.memory_space<smem>>
    %544 = vector.broadcast %543 : f32 to vector<16x16xf32>
    %545 = arith.mulf %542, %544 : vector<16x16xf32>
    %546 = arith.addf %540, %545 : vector<16x16xf32>
    %c3_440 = arith.constant 3 : index
    %c3_441 = arith.constant 3 : index
    %c1_442 = arith.constant 1 : index
    %547 = vector.load %arg6[%c3_440, %c3_441, %c1_442] : memref<4x20x20xf32, #tpu.memory_space<vmem>>, vector<1x16x16xf32>
    %548 = vector.shape_cast %547 : vector<1x16x16xf32> to vector<16x16xf32>
    %c3_443 = arith.constant 3 : index
    %c16_444 = arith.constant 16 : index
    %549 = memref.load %arg2[%c3_443, %c16_444] : memref<4x25xf32, #tpu.memory_space<smem>>
    %550 = vector.broadcast %549 : f32 to vector<16x16xf32>
    %551 = arith.mulf %548, %550 : vector<16x16xf32>
    %552 = arith.addf %546, %551 : vector<16x16xf32>
    %c3_445 = arith.constant 3 : index
    %c3_446 = arith.constant 3 : index
    %c2_447 = arith.constant 2 : index
    %553 = vector.load %arg6[%c3_445, %c3_446, %c2_447] : memref<4x20x20xf32, #tpu.memory_space<vmem>>, vector<1x16x16xf32>
    %554 = vector.shape_cast %553 : vector<1x16x16xf32> to vector<16x16xf32>
    %c3_448 = arith.constant 3 : index
    %c17_449 = arith.constant 17 : index
    %555 = memref.load %arg2[%c3_448, %c17_449] : memref<4x25xf32, #tpu.memory_space<smem>>
    %556 = vector.broadcast %555 : f32 to vector<16x16xf32>
    %557 = arith.mulf %554, %556 : vector<16x16xf32>
    %558 = arith.addf %552, %557 : vector<16x16xf32>
    %c3_450 = arith.constant 3 : index
    %c3_451 = arith.constant 3 : index
    %c3_452 = arith.constant 3 : index
    %559 = vector.load %arg6[%c3_450, %c3_451, %c3_452] : memref<4x20x20xf32, #tpu.memory_space<vmem>>, vector<1x16x16xf32>
    %560 = vector.shape_cast %559 : vector<1x16x16xf32> to vector<16x16xf32>
    %c3_453 = arith.constant 3 : index
    %c18_454 = arith.constant 18 : index
    %561 = memref.load %arg2[%c3_453, %c18_454] : memref<4x25xf32, #tpu.memory_space<smem>>
    %562 = vector.broadcast %561 : f32 to vector<16x16xf32>
    %563 = arith.mulf %560, %562 : vector<16x16xf32>
    %564 = arith.addf %558, %563 : vector<16x16xf32>
    %c3_455 = arith.constant 3 : index
    %c3_456 = arith.constant 3 : index
    %c4_457 = arith.constant 4 : index
    %565 = vector.load %arg6[%c3_455, %c3_456, %c4_457] : memref<4x20x20xf32, #tpu.memory_space<vmem>>, vector<1x16x16xf32>
    %566 = vector.shape_cast %565 : vector<1x16x16xf32> to vector<16x16xf32>
    %c3_458 = arith.constant 3 : index
    %c19_459 = arith.constant 19 : index
    %567 = memref.load %arg2[%c3_458, %c19_459] : memref<4x25xf32, #tpu.memory_space<smem>>
    %568 = vector.broadcast %567 : f32 to vector<16x16xf32>
    %569 = arith.mulf %566, %568 : vector<16x16xf32>
    %570 = arith.addf %564, %569 : vector<16x16xf32>
    %c3_460 = arith.constant 3 : index
    %c4_461 = arith.constant 4 : index
    %c0_462 = arith.constant 0 : index
    %571 = vector.load %arg6[%c3_460, %c4_461, %c0_462] : memref<4x20x20xf32, #tpu.memory_space<vmem>>, vector<1x16x16xf32>
    %572 = vector.shape_cast %571 : vector<1x16x16xf32> to vector<16x16xf32>
    %c3_463 = arith.constant 3 : index
    %c20_464 = arith.constant 20 : index
    %573 = memref.load %arg2[%c3_463, %c20_464] : memref<4x25xf32, #tpu.memory_space<smem>>
    %574 = vector.broadcast %573 : f32 to vector<16x16xf32>
    %575 = arith.mulf %572, %574 : vector<16x16xf32>
    %576 = arith.addf %570, %575 : vector<16x16xf32>
    %c3_465 = arith.constant 3 : index
    %c4_466 = arith.constant 4 : index
    %c1_467 = arith.constant 1 : index
    %577 = vector.load %arg6[%c3_465, %c4_466, %c1_467] : memref<4x20x20xf32, #tpu.memory_space<vmem>>, vector<1x16x16xf32>
    %578 = vector.shape_cast %577 : vector<1x16x16xf32> to vector<16x16xf32>
    %c3_468 = arith.constant 3 : index
    %c21_469 = arith.constant 21 : index
    %579 = memref.load %arg2[%c3_468, %c21_469] : memref<4x25xf32, #tpu.memory_space<smem>>
    %580 = vector.broadcast %579 : f32 to vector<16x16xf32>
    %581 = arith.mulf %578, %580 : vector<16x16xf32>
    %582 = arith.addf %576, %581 : vector<16x16xf32>
    %c3_470 = arith.constant 3 : index
    %c4_471 = arith.constant 4 : index
    %c2_472 = arith.constant 2 : index
    %583 = vector.load %arg6[%c3_470, %c4_471, %c2_472] : memref<4x20x20xf32, #tpu.memory_space<vmem>>, vector<1x16x16xf32>
    %584 = vector.shape_cast %583 : vector<1x16x16xf32> to vector<16x16xf32>
    %c3_473 = arith.constant 3 : index
    %c22_474 = arith.constant 22 : index
    %585 = memref.load %arg2[%c3_473, %c22_474] : memref<4x25xf32, #tpu.memory_space<smem>>
    %586 = vector.broadcast %585 : f32 to vector<16x16xf32>
    %587 = arith.mulf %584, %586 : vector<16x16xf32>
    %588 = arith.addf %582, %587 : vector<16x16xf32>
    %c3_475 = arith.constant 3 : index
    %c4_476 = arith.constant 4 : index
    %c3_477 = arith.constant 3 : index
    %589 = vector.load %arg6[%c3_475, %c4_476, %c3_477] : memref<4x20x20xf32, #tpu.memory_space<vmem>>, vector<1x16x16xf32>
    %590 = vector.shape_cast %589 : vector<1x16x16xf32> to vector<16x16xf32>
    %c3_478 = arith.constant 3 : index
    %c23_479 = arith.constant 23 : index
    %591 = memref.load %arg2[%c3_478, %c23_479] : memref<4x25xf32, #tpu.memory_space<smem>>
    %592 = vector.broadcast %591 : f32 to vector<16x16xf32>
    %593 = arith.mulf %590, %592 : vector<16x16xf32>
    %594 = arith.addf %588, %593 : vector<16x16xf32>
    %c3_480 = arith.constant 3 : index
    %c4_481 = arith.constant 4 : index
    %c4_482 = arith.constant 4 : index
    %595 = vector.load %arg6[%c3_480, %c4_481, %c4_482] : memref<4x20x20xf32, #tpu.memory_space<vmem>>, vector<1x16x16xf32>
    %596 = vector.shape_cast %595 : vector<1x16x16xf32> to vector<16x16xf32>
    %c3_483 = arith.constant 3 : index
    %c24_484 = arith.constant 24 : index
    %597 = memref.load %arg2[%c3_483, %c24_484] : memref<4x25xf32, #tpu.memory_space<smem>>
    %598 = vector.broadcast %597 : f32 to vector<16x16xf32>
    %599 = arith.mulf %596, %598 : vector<16x16xf32>
    %600 = arith.addf %594, %599 : vector<16x16xf32>
    %c0_485 = arith.constant 0 : index
    %c0_486 = arith.constant 0 : index
    %601 = memref.load %arg3[%c0_485, %c0_486] : memref<4x4xf32, #tpu.memory_space<smem>>
    %602 = vector.broadcast %601 : f32 to vector<16x16xf32>
    %603 = arith.mulf %153, %602 : vector<16x16xf32>
    %c1_487 = arith.constant 1 : index
    %c0_488 = arith.constant 0 : index
    %604 = memref.load %arg3[%c1_487, %c0_488] : memref<4x4xf32, #tpu.memory_space<smem>>
    %605 = vector.broadcast %604 : f32 to vector<16x16xf32>
    %606 = arith.mulf %302, %605 : vector<16x16xf32>
    %607 = arith.addf %603, %606 : vector<16x16xf32>
    %c2_489 = arith.constant 2 : index
    %c0_490 = arith.constant 0 : index
    %608 = memref.load %arg3[%c2_489, %c0_490] : memref<4x4xf32, #tpu.memory_space<smem>>
    %609 = vector.broadcast %608 : f32 to vector<16x16xf32>
    %610 = arith.mulf %451, %609 : vector<16x16xf32>
    %611 = arith.addf %607, %610 : vector<16x16xf32>
    %c3_491 = arith.constant 3 : index
    %c0_492 = arith.constant 0 : index
    %612 = memref.load %arg3[%c3_491, %c0_492] : memref<4x4xf32, #tpu.memory_space<smem>>
    %613 = vector.broadcast %612 : f32 to vector<16x16xf32>
    %614 = arith.mulf %600, %613 : vector<16x16xf32>
    %615 = arith.addf %611, %614 : vector<16x16xf32>
    %c0_493 = arith.constant 0 : index
    %616 = memref.load %arg4[%c0_493] : memref<4xf32, #tpu.memory_space<smem>>
    %617 = vector.broadcast %616 : f32 to vector<16x16xf32>
    %618 = arith.addf %615, %617 : vector<16x16xf32>
    %c0_494 = arith.constant 0 : index
    %c0_495 = arith.constant 0 : index
    %c0_496 = arith.constant 0 : index
    %c0_497 = arith.constant 0 : index
    %619 = vector.load %arg1[%c0_494, %c0_495, %c0_496, %c0_497] : memref<1x4x16x16xf32, #tpu.memory_space<vmem>>, vector<1x1x16x16xf32>
    %620 = vector.shape_cast %619 : vector<1x1x16x16xf32> to vector<16x16xf32>
    %621 = arith.addf %618, %620 : vector<16x16xf32>
    %cst_498 = arith.constant 0.000000e+00 : f32
    %622 = vector.broadcast %cst_498 : f32 to vector<16x16xf32>
    %623 = arith.maximumf %621, %622 : vector<16x16xf32>
    %c0_499 = arith.constant 0 : index
    %c0_500 = arith.constant 0 : index
    %c0_501 = arith.constant 0 : index
    %c0_502 = arith.constant 0 : index
    %624 = vector.load %arg5[%c0_499, %c0_500, %c0_501, %c0_502] : memref<1x4x16x16xf32, #tpu.memory_space<vmem>>, vector<1x1x16x16xf32>
    %625 = vector.shape_cast %624 : vector<1x1x16x16xf32> to vector<16x16xf32>
    %626 = vector.shape_cast %623 : vector<16x16xf32> to vector<1x1x16x16xf32>
    tpu.vector_store %arg5[%c0_499, %c0_500, %c0_501, %c0_502], %626 {strides = array<i32>} : memref<1x4x16x16xf32, #tpu.memory_space<vmem>>, vector<1x1x16x16xf32>,
    %c0_503 = arith.constant 0 : index
    %c1_504 = arith.constant 1 : index
    %627 = memref.load %arg3[%c0_503, %c1_504] : memref<4x4xf32, #tpu.memory_space<smem>>
    %628 = vector.broadcast %627 : f32 to vector<16x16xf32>
    %629 = arith.mulf %153, %628 : vector<16x16xf32>
    %c1_505 = arith.constant 1 : index
    %c1_506 = arith.constant 1 : index
    %630 = memref.load %arg3[%c1_505, %c1_506] : memref<4x4xf32, #tpu.memory_space<smem>>
    %631 = vector.broadcast %630 : f32 to vector<16x16xf32>
    %632 = arith.mulf %302, %631 : vector<16x16xf32>
    %633 = arith.addf %629, %632 : vector<16x16xf32>
    %c2_507 = arith.constant 2 : index
    %c1_508 = arith.constant 1 : index
    %634 = memref.load %arg3[%c2_507, %c1_508] : memref<4x4xf32, #tpu.memory_space<smem>>
    %635 = vector.broadcast %634 : f32 to vector<16x16xf32>
    %636 = arith.mulf %451, %635 : vector<16x16xf32>
    %637 = arith.addf %633, %636 : vector<16x16xf32>
    %c3_509 = arith.constant 3 : index
    %c1_510 = arith.constant 1 : index
    %638 = memref.load %arg3[%c3_509, %c1_510] : memref<4x4xf32, #tpu.memory_space<smem>>
    %639 = vector.broadcast %638 : f32 to vector<16x16xf32>
    %640 = arith.mulf %600, %639 : vector<16x16xf32>
    %641 = arith.addf %637, %640 : vector<16x16xf32>
    %c1_511 = arith.constant 1 : index
    %642 = memref.load %arg4[%c1_511] : memref<4xf32, #tpu.memory_space<smem>>
    %643 = vector.broadcast %642 : f32 to vector<16x16xf32>
    %644 = arith.addf %641, %643 : vector<16x16xf32>
    %c0_512 = arith.constant 0 : index
    %c1_513 = arith.constant 1 : index
    %c0_514 = arith.constant 0 : index
    %c0_515 = arith.constant 0 : index
    %645 = vector.load %arg1[%c0_512, %c1_513, %c0_514, %c0_515] : memref<1x4x16x16xf32, #tpu.memory_space<vmem>>, vector<1x1x16x16xf32>
    %646 = vector.shape_cast %645 : vector<1x1x16x16xf32> to vector<16x16xf32>
    %647 = arith.addf %644, %646 : vector<16x16xf32>
    %cst_516 = arith.constant 0.000000e+00 : f32
    %648 = vector.broadcast %cst_516 : f32 to vector<16x16xf32>
    %649 = arith.maximumf %647, %648 : vector<16x16xf32>
    %c0_517 = arith.constant 0 : index
    %c1_518 = arith.constant 1 : index
    %c0_519 = arith.constant 0 : index
    %c0_520 = arith.constant 0 : index
    %650 = vector.load %arg5[%c0_517, %c1_518, %c0_519, %c0_520] : memref<1x4x16x16xf32, #tpu.memory_space<vmem>>, vector<1x1x16x16xf32>
    %651 = vector.shape_cast %650 : vector<1x1x16x16xf32> to vector<16x16xf32>
    %652 = vector.shape_cast %649 : vector<16x16xf32> to vector<1x1x16x16xf32>
    tpu.vector_store %arg5[%c0_517, %c1_518, %c0_519, %c0_520], %652 {strides = array<i32>} : memref<1x4x16x16xf32, #tpu.memory_space<vmem>>, vector<1x1x16x16xf32>,
    %c0_521 = arith.constant 0 : index
    %c2_522 = arith.constant 2 : index
    %653 = memref.load %arg3[%c0_521, %c2_522] : memref<4x4xf32, #tpu.memory_space<smem>>
    %654 = vector.broadcast %653 : f32 to vector<16x16xf32>
    %655 = arith.mulf %153, %654 : vector<16x16xf32>
    %c1_523 = arith.constant 1 : index
    %c2_524 = arith.constant 2 : index
    %656 = memref.load %arg3[%c1_523, %c2_524] : memref<4x4xf32, #tpu.memory_space<smem>>
    %657 = vector.broadcast %656 : f32 to vector<16x16xf32>
    %658 = arith.mulf %302, %657 : vector<16x16xf32>
    %659 = arith.addf %655, %658 : vector<16x16xf32>
    %c2_525 = arith.constant 2 : index
    %c2_526 = arith.constant 2 : index
    %660 = memref.load %arg3[%c2_525, %c2_526] : memref<4x4xf32, #tpu.memory_space<smem>>
    %661 = vector.broadcast %660 : f32 to vector<16x16xf32>
    %662 = arith.mulf %451, %661 : vector<16x16xf32>
    %663 = arith.addf %659, %662 : vector<16x16xf32>
    %c3_527 = arith.constant 3 : index
    %c2_528 = arith.constant 2 : index
    %664 = memref.load %arg3[%c3_527, %c2_528] : memref<4x4xf32, #tpu.memory_space<smem>>
    %665 = vector.broadcast %664 : f32 to vector<16x16xf32>
    %666 = arith.mulf %600, %665 : vector<16x16xf32>
    %667 = arith.addf %663, %666 : vector<16x16xf32>
    %c2_529 = arith.constant 2 : index
    %668 = memref.load %arg4[%c2_529] : memref<4xf32, #tpu.memory_space<smem>>
    %669 = vector.broadcast %668 : f32 to vector<16x16xf32>
    %670 = arith.addf %667, %669 : vector<16x16xf32>
    %c0_530 = arith.constant 0 : index
    %c2_531 = arith.constant 2 : index
    %c0_532 = arith.constant 0 : index
    %c0_533 = arith.constant 0 : index
    %671 = vector.load %arg1[%c0_530, %c2_531, %c0_532, %c0_533] : memref<1x4x16x16xf32, #tpu.memory_space<vmem>>, vector<1x1x16x16xf32>
    %672 = vector.shape_cast %671 : vector<1x1x16x16xf32> to vector<16x16xf32>
    %673 = arith.addf %670, %672 : vector<16x16xf32>
    %cst_534 = arith.constant 0.000000e+00 : f32
    %674 = vector.broadcast %cst_534 : f32 to vector<16x16xf32>
    %675 = arith.maximumf %673, %674 : vector<16x16xf32>
    %c0_535 = arith.constant 0 : index
    %c2_536 = arith.constant 2 : index
    %c0_537 = arith.constant 0 : index
    %c0_538 = arith.constant 0 : index
    %676 = vector.load %arg5[%c0_535, %c2_536, %c0_537, %c0_538] : memref<1x4x16x16xf32, #tpu.memory_space<vmem>>, vector<1x1x16x16xf32>
    %677 = vector.shape_cast %676 : vector<1x1x16x16xf32> to vector<16x16xf32>
    %678 = vector.shape_cast %675 : vector<16x16xf32> to vector<1x1x16x16xf32>
    tpu.vector_store %arg5[%c0_535, %c2_536, %c0_537, %c0_538], %678 {strides = array<i32>} : memref<1x4x16x16xf32, #tpu.memory_space<vmem>>, vector<1x1x16x16xf32>,
    %c0_539 = arith.constant 0 : index
    %c3_540 = arith.constant 3 : index
    %679 = memref.load %arg3[%c0_539, %c3_540] : memref<4x4xf32, #tpu.memory_space<smem>>
    %680 = vector.broadcast %679 : f32 to vector<16x16xf32>
    %681 = arith.mulf %153, %680 : vector<16x16xf32>
    %c1_541 = arith.constant 1 : index
    %c3_542 = arith.constant 3 : index
    %682 = memref.load %arg3[%c1_541, %c3_542] : memref<4x4xf32, #tpu.memory_space<smem>>
    %683 = vector.broadcast %682 : f32 to vector<16x16xf32>
    %684 = arith.mulf %302, %683 : vector<16x16xf32>
    %685 = arith.addf %681, %684 : vector<16x16xf32>
    %c2_543 = arith.constant 2 : index
    %c3_544 = arith.constant 3 : index
    %686 = memref.load %arg3[%c2_543, %c3_544] : memref<4x4xf32, #tpu.memory_space<smem>>
    %687 = vector.broadcast %686 : f32 to vector<16x16xf32>
    %688 = arith.mulf %451, %687 : vector<16x16xf32>
    %689 = arith.addf %685, %688 : vector<16x16xf32>
    %c3_545 = arith.constant 3 : index
    %c3_546 = arith.constant 3 : index
    %690 = memref.load %arg3[%c3_545, %c3_546] : memref<4x4xf32, #tpu.memory_space<smem>>
    %691 = vector.broadcast %690 : f32 to vector<16x16xf32>
    %692 = arith.mulf %600, %691 : vector<16x16xf32>
    %693 = arith.addf %689, %692 : vector<16x16xf32>
    %c3_547 = arith.constant 3 : index
    %694 = memref.load %arg4[%c3_547] : memref<4xf32, #tpu.memory_space<smem>>
    %695 = vector.broadcast %694 : f32 to vector<16x16xf32>
    %696 = arith.addf %693, %695 : vector<16x16xf32>
    %c0_548 = arith.constant 0 : index
    %c3_549 = arith.constant 3 : index
    %c0_550 = arith.constant 0 : index
    %c0_551 = arith.constant 0 : index
    %697 = vector.load %arg1[%c0_548, %c3_549, %c0_550, %c0_551] : memref<1x4x16x16xf32, #tpu.memory_space<vmem>>, vector<1x1x16x16xf32>
    %698 = vector.shape_cast %697 : vector<1x1x16x16xf32> to vector<16x16xf32>
    %699 = arith.addf %696, %698 : vector<16x16xf32>
    %cst_552 = arith.constant 0.000000e+00 : f32
    %700 = vector.broadcast %cst_552 : f32 to vector<16x16xf32>
    %701 = arith.maximumf %699, %700 : vector<16x16xf32>
    %c0_553 = arith.constant 0 : index
    %c3_554 = arith.constant 3 : index
    %c0_555 = arith.constant 0 : index
    %c0_556 = arith.constant 0 : index
    %702 = vector.load %arg5[%c0_553, %c3_554, %c0_555, %c0_556] : memref<1x4x16x16xf32, #tpu.memory_space<vmem>>, vector<1x1x16x16xf32>
    %703 = vector.shape_cast %702 : vector<1x1x16x16xf32> to vector<16x16xf32>
    %704 = vector.shape_cast %701 : vector<16x16xf32> to vector<1x1x16x16xf32>
    tpu.vector_store %arg5[%c0_553, %c3_554, %c0_555, %c0_556], %704 {strides = array<i32>} : memref<1x4x16x16xf32, #tpu.memory_space<vmem>>, vector<1x1x16x16xf32>,
    return
  }
  func.func @transform_0(%arg0: i32) -> (i32, i32, i32, i32) {
    %c0_i32 = arith.constant 0 : i32
    %c0_i32_0 = arith.constant 0 : i32
    %c0_i32_1 = arith.constant 0 : i32
    %c0_i32_2 = arith.constant 0 : i32
    return %arg0, %c0_i32, %c0_i32_0, %c0_i32_1 : i32, i32, i32, i32
  }
  func.func @transform_1(%arg0: i32) -> (i32, i32) {
    %c0_i32 = arith.constant 0 : i32
    %c0_i32_0 = arith.constant 0 : i32
    %c0_i32_1 = arith.constant 0 : i32
    return %c0_i32, %c0_i32_0 : i32, i32
  }
  func.func @transform_2(%arg0: i32) -> (i32, i32) {
    %c0_i32 = arith.constant 0 : i32
    %c0_i32_0 = arith.constant 0 : i32
    %c0_i32_1 = arith.constant 0 : i32
    return %c0_i32, %c0_i32_0 : i32, i32
  }
  func.func @transform_3(%arg0: i32) -> i32 {
    %c0_i32 = arith.constant 0 : i32
    %c0_i32_0 = arith.constant 0 : i32
    return %c0_i32 : i32
  }
  func.func @transform_4(%arg0: i32) -> (i32, i32, i32, i32) {
    %c0_i32 = arith.constant 0 : i32
    %c0_i32_0 = arith.constant 0 : i32
    %c0_i32_1 = arith.constant 0 : i32
    %c0_i32_2 = arith.constant 0 : i32
    return %arg0, %c0_i32, %c0_i32_0, %c0_i32_1 : i32, i32, i32, i32
  }
}

</mosaic_0001>

<bundles_post_ra>
// kernel: squeeze.2
= control target key start
LH: loop header
LB: loop body
LE: loop exit
PB: predicated region body
PF: predicated region fallthrough
CT: control target
= control target key end

     0   :  { %s45_s8 = smov 20   ;;  %s46_s13 = smov 10   ;;  %vm3_vm0 = vcmask 39936   ;;  %vm9_vm1 = vcmask 203936   ;;  %vm15_vm2 = vcmask 162936   ;;  %vm21_vm3 = vcmask 121936   ;;  %s77_s0 = inlined_call_operand.vmem [shape: f32[4,5,5], index: 0, kind: input, shape index: {}]   ;;  %s78_s1 = inlined_call_operand.vmem [shape: f32[4,25], index: 1, kind: output, shape index: {}]  }
   0x1   :  { %v37_v0 = vld [vmem:[%s77_s0 + $0x4] ss:$8 sm:$0xf]   ;;  %v39_v1 = vld [vmem:[%s77_s0 + $0x2] ss:$8 sm:$0xf]  }
   0x2   :  { %7 = vrot.lane.b32.xlu0 %v37_v0, %s45_s8  ;;  %v38_v2 = vld [vmem:[%s77_s0 + $0x3] ss:$8 sm:$0xf]   ;;  %19 = vrot.lane.b32.xlu1 %v39_v1, %s46_s13  ;;  %v40_v3 = vld [vmem:[%s77_s0 + $0x1] ss:$8 sm:$0xf]  }
   0x3   :  { %v2_v4 = vld [vmem:[%s77_s0] ss:$8 sm:$0xf]   ;;  %s47_s0 = smov 15   ;;  %s48_s18 = smov 5   ;;  %vm27_vm4 = vcmask 80936  }
   0x4   :  { %4 = vst.msk [vmem:[#allocation0] sm:$0xf] %vm3_vm0, %v2_v4  }
   0x6   :  { %13 = vrot.lane.b32.xlu0 %v38_v2, %s47_s0  ;;  %25 = vrot.lane.b32.xlu1 %v40_v3, %s48_s18 }
  0x74   :  { %v8_v5 = vpop.permute.xlu0 %7   ;;  %v20_v6 = vpop.permute.xlu1 %19  }
  0x75   :  { %10 = vst.msk [vmem:[#allocation0] sm:$0xf] %vm9_vm1, %v8_v5  }
  0x78   :  { %v14_v7 = vpop.permute.xlu0 %13   ;;  %v26_v8 = vpop.permute.xlu1 %25  }
  0x79   :  { %16 = vst.msk [vmem:[#allocation0] sm:$0xf] %vm15_vm2, %v14_v7  }
  0x7a   :  { %22 = vst.msk [vmem:[#allocation0] sm:$0xf] %vm21_vm3, %v20_v6  }
  0x7b   :  { %28 = vst.msk [vmem:[#allocation0] sm:$0xf] %vm27_vm4, %v26_v8  }
  0x82   :  { %v33_v9 = vld [vmem:[#allocation0] sm:$0xf] }
  0x83   :  { %36 = vst [vmem:[%s78_s1] sm:$0xf] %v33_v9 }

// kernel: blaze_block_v1.1
= control target key start
LH: loop header
LB: loop body
LE: loop exit
PB: predicated region body
PF: predicated region fallthrough
CT: control target
= control target key end

     0   :  { %9 = vsyncpa [#allocation5], 0  ;;  %s3152_s0 = inlined_call_operand.vmem [shape: f32[2,4,16,16], index: 0, kind: input, shape index: {}]   ;;  %s3153_s1 = inlined_call_operand.vmem [shape: f32[4,25], index: 1, kind: input, shape index: {}]   ;;  %s3154_s2 = inlined_call_operand.vmem [shape: f32[4,4], index: 2, kind: input, shape index: {}]   ;;  %s3155_s3 = inlined_call_operand.vmem [shape: f32[4], index: 3, kind: input, shape index: {}]   ;;  %s3156_s4 = inlined_call_operand.hbm [shape: f32[2,4,16,16], index: 4, kind: output, shape index: {}]  }
   0x1   :  { %10 = vsyncpa [#allocation7], 0 }
   0x2   :  { %11 = vsyncpa [#allocation4], 0 }
   0x3   :  { %13 = vsyncpa [#allocation4 + $0x1], 0  ;;  %s2202_s15 = smov 0   ;;  %s2204_s16 = smov 0  }
   0x4   :  { %s2206_s17 = smov 0   ;;  %s2208_s18 = smov 0  }
   0x5 LB: > { %s2223_s19 = sadd.s32 4294967295, %s2163_s18   ;;  %s1823_s20 = sadd.s32 4294967294, %s2163_s18   ;;  %s2163_s18 = sphi %s2208_s18, %s3174_s18   ;;  %s2159_s17 = sphi %s2206_s17, %s3173_s17   ;;  %s2155_s16 = sphi %s2204_s16, %s3172_s16   ;;  %s2151_s15 = sphi %s2202_s15, %s3171_s15  }
   0x6   : > { %s2227_s21 = sadd.s32 1, %s2163_s18   ;;  %s115_s22 = sadd.s32 1, %s2159_s17 }
   0x7   : > { %s112_s23 = ssub.s32 %s2163_s18, %s2227_s21  ;;  %p125_p0 = scmp.ne.s32.totalorder %s2159_s17, %s2155_s16 }
   0x8   : > { %p113_p1 = scmp.eq.s32.totalorder %s112_s23, 0  ;;  %p126_p2 = scmp.eq.s32.totalorder %s2223_s19, 1 }
   0x9   : > { %p131_p3 = scmp.ne.s32.totalorder %s2155_s16, %s2151_s15  ;;  %p132_p4 = scmp.eq.s32.totalorder %s1823_s20, 1 }
   0xa   : > { %s2238_s24 = scalar_select %p113_p1, %s2159_s17, %s115_s22  }
   0xb   : > { %p2240_p5 = por %p126_p2, %p125_p0  ;;  %p2244_p6 = por %p132_p4, %p131_p3 }
   0xc   : > { %p1824_p7 = scmp.ge.s32.totalorder %s2163_s18, 1  ;;  %p139_p8 = scmp.lt.s32.totalorder %s2163_s18, 3 }
   0xd   : > { %s3160_s25 = scalar_select %p2240_p5, 1, 0 }
   0xe   : > { %s3161_s26 = scalar_select %p2244_p6, 1, 0 }
   0xf   : > { %p3157_p9 = scmp.eq.s32.totalorder %s2223_s19, 0  ;;  %p2251_p10 = pnand %p1824_p7, %p139_p8 }
  0x10   : > { %s163_s30 = sshll.u32 %s3154_s2, 4  ;;  %s152_s7 = sshll.u32 %s3153_s1, 4  ;;  %s164_s30 = int_to_ptr.vmem [resolvable:$true] %s163_s30  ;;  %s153_s7 = int_to_ptr.vmem [resolvable:$true] %s152_s7 }
  0x11   : > { %s3162_s27 = scalar_select %p2251_p10, 1, 0 }
  0x12   : > { %p1986_p11 = pneg %p2251_p10  ;;  %s174_s11 = sshll.u32 %s3155_s3, 4  ;;  %s2272_s11 = int_to_ptr.vmem [resolvable:$true] %s174_s11 }
  0x13   : > { %s2050_s12 = scalar_lea.vmem %s164_s30, 64  ;;  %p2058_p3 = scmp.lt.s32.totalorder %s164_s30, %s164_s30 }
  0x14   : > { %p2265_p12 = pnand %p3157_p9, %p1986_p11  ;;  %p2051_p13 = scmp.ne.s32.totalorder %s164_s30, %s2050_s12 }
  0x15   : > { %p2059_p4 = scmp.lt.s32.totalorder %s2050_s12, %s2050_s12 }
  0x16   : > { %p2052_p0 = pneg %p2265_p12 }
  0x17   : > { %p2060_p7 = por %p2059_p4, %p2058_p3 }
  0x18   : > { %p2053_p1 = pnand %p2052_p0, %p2051_p13 }
  0x1a   : > { %p2054_p2 = pneg %p2053_p1 }
  0x1c   : > { %p2061_p8 = pnand %p2060_p7, %p2054_p2 }
  0x1e   : > { %2064 = shalt.err (!%p2061_p8)
}
  0x1f   : > { %s2165_s13 = smov [#allocation6]   ;;  %s2065_s14 = scalar_lea.vmem %s153_s7, 64 }
  0x20   : > { %1992 = dma.vmem_to_smem (!%p2265_p12), %s164_s30, 64, %s2165_s13, [#allocation7]  }
  0x21   : > { %p2066_p11 = scmp.ne.s32.totalorder %s153_s7, %s2065_s14  ;;  %p2073_p5 = scmp.lt.s32.totalorder %s153_s7, %s153_s7 }
  0x22   : > { %p2074_p10 = scmp.lt.s32.totalorder %s2065_s14, %s2065_s14 }
  0x23   : > { %p2068_p9 = pnand %p2066_p11, %p2052_p0 }
  0x24   : > { %p2075_p13 = por %p2074_p10, %p2073_p5 }
  0x25   : > { %p2069_p6 = pneg %p2068_p9 }
  0x27   : > { %p2076_p1 = pnand %p2075_p13, %p2069_p6 }
  0x29   : > { %2079 = shalt.err (!%p2076_p1)
}
  0x2a   : > { %s2166_s20 = smov [#allocation3]   ;;  %s2080_s22 = scalar_lea.vmem %s2272_s11, 16 }
  0x2b   : > { %1989 = dma.vmem_to_smem (!%p2265_p12), %s153_s7, 64, %s2166_s20, [#allocation5]  }
  0x2c   : > { %p2081_p2 = scmp.ne.s32.totalorder %s2272_s11, %s2080_s22  ;;  %p2088_p9 = scmp.lt.s32.totalorder %s2272_s11, %s2272_s11 }
  0x2d   : > { %p2089_p7 = scmp.lt.s32.totalorder %s2080_s22, %s2080_s22 }
  0x2e   : > { %p2083_p3 = pnand %p2081_p2, %p2052_p0 }
  0x2f   : > { %p2090_p5 = por %p2089_p7, %p2088_p9 }
  0x30   : > { %p2084_p4 = pneg %p2083_p3 }
  0x32   : > { %p2091_p6 = pnand %p2090_p5, %p2084_p4 }
  0x34   : > { %2094 = shalt.err (!%p2091_p6)
}
  0x35   : > { %s2167_s23 = smov [#allocation8]   ;;  %p3164_p10 = scmp.ne.s32.totalorder %s3162_s27, 0 }
  0x36   : > { %1995 = dma.vmem_to_smem (!%p2265_p12), %s2272_s11, 16, %s2167_s23, [#allocation7]  }
  0x37   : > { %195 = sbr.rel (%p3164_p10) target bundleno = 661 (0x295), region = 36  ;;  %p3165_p8 = scmp.eq.s32.totalorder (!%p3164_p10), %s2223_s19, 0 }
  0x3c   : > { %2138 = dma.done.wait (%p3165_p8), [#allocation5], 64   ;;  %p3166_p0 = pmov %p3165_p8 }
  0x3e   : > { %2140 = vsyncadd (%p3166_p0), [#allocation5], 4294967232  ;;  %p3167_p11 = pmov %p3166_p0 }
  0x3f   : > { %p3168_p13 = pmov %p3166_p0 }
  0x40   : > { %2142 = dma.done.wait (%p3167_p11), [#allocation7], 80  }
  0x41   : > { %2144 = vsyncadd (%p3168_p13), [#allocation7], 4294967216 }
  0x42   : > { %209 = sfence }
  0x43   : > { %p230_p1 = scmp.lt.s32.totalorder %s2223_s19, 1  ;;  %vm235_vm0 = vcmask 162816   ;;  %vm238_vm1 = vcmask 158720   ;;  %v2168_v0 = vmov 0.0   ;;  %s2169_s6 = smov 2   ;;  %vm289_vm2 = vcmask 146448  }
  0x44   : > { %236 = vst.msk [vmem:[#allocation2] sm:$0xff] %vm235_vm0, %v2168_v0  ;;  %237 = vst.msk [vmem:[#allocation2 + $0x8] sm:$0xff] %vm235_vm0, %v2168_v0  ;;  %s1836_s7 = sld [smem:[#allocation3 + $0x1]]  ;;  %s2170_s11 = smov 127   ;;  %vm1605_vm3 = vcmask 130048  }
  0x45   : > { %240 = vst.msk [vmem:[#allocation2 + $0x18] sm:$0xff] %vm235_vm0, %v2168_v0  ;;  %241 = vst.msk [vmem:[#allocation2 + $0x20] sm:$0xff] %vm235_vm0, %v2168_v0  ;;  %s231_s27 = scalar_select %p230_p1, %s2223_s19, 1 }
  0x46   : > { %243 = vst.msk [vmem:[#allocation2 + $0x30] sm:$0xff] %vm235_vm0, %v2168_v0  ;;  %244 = vst.msk [vmem:[#allocation2 + $0x38] sm:$0xff] %vm235_vm0, %v2168_v0  ;;  %s1837_s8 = sld [smem:[#allocation3 + $0x2]]  ;;  %s2171_s13 = smov 126  }
  0x47   : > { %246 = vst.msk [vmem:[#allocation2 + $0x48] sm:$0xff] %vm235_vm0, %v2168_v0  ;;  %247 = vst.msk [vmem:[#allocation2 + $0x50] sm:$0xff] %vm235_vm0, %v2168_v0  ;;  %s1970_s28 = sshll.u32 %s231_s27, 6  ;;  %s2327_s9 = sld [smem:[#allocation3 + $0x3]] }
  0x48   : > { %239 = vst.msk [vmem:[#allocation2 + $0x10] sm:$0xf] %vm238_vm1, %v2168_v0  ;;  %242 = vst.msk [vmem:[#allocation2 + $0x28] sm:$0xf] %vm238_vm1, %v2168_v0  ;;  %s2313_s5 = scalar_lea.vmem %s3152_s0, %s1970_s28  ;;  %s2334_s10 = sld [smem:[#allocation3 + $0x4]] }
  0x49   : > { %245 = vst.msk [vmem:[#allocation2 + $0x40] sm:$0xf] %vm238_vm1, %v2168_v0  ;;  %248 = vst.msk [vmem:[#allocation2 + $0x58] sm:$0xf] %vm238_vm1, %v2168_v0  ;;  %v249_v1 = vld [vmem:[%s2313_s5] sm:$0xff]  ;;  %v251_v2 = vld [vmem:[%s2313_s5 + $0x10] sm:$0xff] }
  0x4a   : > { %265 = vrot.lane.b32.xlu0 %v249_v1, %s2169_s6  ;;  %269 = vrot.lane.b32.xlu1 %v251_v2, %s2169_s6  ;;  %v250_v3 = vld [vmem:[%s2313_s5 + $0x8] sm:$0xff]  ;;  %v252_v4 = vld [vmem:[%s2313_s5 + $0x18] sm:$0xff]  ;;  %s1841_s12 = sld [smem:[#allocation3 + $0x6]]  ;;  %s2172_s20 = smov 125  }
  0x4b   : > { %v253_v5 = vld [vmem:[%s2313_s5 + $0x20] sm:$0xff]  ;;  %v254_v6 = vld [vmem:[%s2313_s5 + $0x28] sm:$0xff]  ;;  %v255_v7 = vld [vmem:[%s2313_s5 + $0x30] sm:$0xff]  ;;  %v305_v13 = vstv %s1836_s7  ;;  %s1842_s14 = sld [smem:[#allocation3 + $0x7]]  ;;  %s2173_s23 = smov 124  }
  0x4c   : > { %v256_v8 = vld [vmem:[%s2313_s5 + $0x38] sm:$0xff]  ;;  %v319_v18 = vstv %s1837_s8  ;;  %s1843_s22 = sld [smem:[#allocation3 + $0x8]]  ;;  %p3169_p2 = scmp.ne.s32.totalorder %s3160_s25, 0 }
  0x4d   : > { %v333_v24 = vstv %s2327_s9  ;;  %s1844_s27 = sld [smem:[#allocation3 + $0x9]] }
  0x4e   : > { %267 = vrot.lane.b32.xlu0 %v250_v3, %s2169_s6  ;;  %271 = vrot.lane.b32.xlu1 %v252_v4, %s2169_s6  ;;  %v347_v27 = vstv %s2334_s10  ;;  %s1846_s28 = sld [smem:[#allocation3 + $0xb]] }
  0x4f   : > { %s1847_s29 = sld [smem:[#allocation3 + $0xc]] }
  0x50   : > { %v369_v31 = vstv %s1841_s12  ;;  %s1848_s30 = sld [smem:[#allocation3 + $0xd]] }
  0x51   : > { %v383_v34 = vstv %s1842_s14  ;;  %s1851_s7 = sld [smem:[#allocation3 + $0x10]] }
  0x52   : > { %273 = vrot.lane.b32.xlu0 %v253_v5, %s2169_s6  ;;  %275 = vrot.lane.b32.xlu1 %v254_v6, %s2169_s6  ;;  %v397_v38 = vstv %s1843_s22  ;;  %s1852_s8 = sld [smem:[#allocation3 + $0x11]] }
  0x53   : > { %v411_v41 = vstv %s1844_s27  ;;  %s1853_s9 = sld [smem:[#allocation3 + $0x12]] }
  0x54   : > { %v433_v45 = vstv %s1846_s28  ;;  %s1854_s10 = sld [smem:[#allocation3 + $0x13]] }
  0x55   : > { %v447_v48 = vstv %s1847_s29  ;;  %s1856_s12 = sld [smem:[#allocation3 + $0x15]] }
  0x56   : > { %277 = vrot.lane.b32.xlu0 %v255_v7, %s2169_s6  ;;  %279 = vrot.lane.b32.xlu1 %v256_v8, %s2169_s6  ;;  %s1849_s6 = sld [smem:[#allocation3 + $0xe]]  ;;  %v461_v52 = vstv %s1848_s30 }
  0x57   : > { %v497_v59 = vstv %s1851_s7  ;;  %s1857_s14 = sld [smem:[#allocation3 + $0x16]] }
  0x58   : > { %v511_v62 = vstv %s1852_s8  ;;  %s1858_s22 = sld [smem:[#allocation3 + $0x17]] }
  0x59   : > { %v525_v2 = vstv %s1853_s9  ;;  %s1859_s27 = sld [smem:[#allocation3 + $0x18]] }
  0x5a   : > { %v539_v5 = vstv %s1854_s10  ;;  %s1861_s28 = sld [smem:[#allocation3 + $0x81]] }
  0x5b   : > { %s1862_s29 = sld [smem:[#allocation3 + $0x82]] }
  0x5c   : > { %v475_v55 = vstv %s1849_s6  ;;  %s1863_s30 = sld [smem:[#allocation3 + $0x83]] }
  0x5d   : > { %s1864_s6 = sld [smem:[#allocation3 + $0x84]] }
  0x5e   : > { %s1866_s7 = sld [smem:[#allocation3 + $0x86]] }
  0x5f   : > { %s1867_s8 = sld [smem:[#allocation3 + $0x87]] }
  0x60   : > { %s1868_s9 = sld [smem:[#allocation3 + $0x88]] }
  0x61   : > { %s1869_s10 = sld [smem:[#allocation3 + $0x89]] }
  0xbc   : > { %v266_v9 = vpop.permute.xlu0 %265  ;;  %v270_v10 = vpop.permute.xlu1 %269 }
  0xbd   : > { %290 = vst.msk [vmem:[#allocation2 + $0x2] sm:$0xff] %vm289_vm2, %v266_v9  ;;  %292 = vst.msk [vmem:[#allocation2 + $0x1a] sm:$0xff] %vm289_vm2, %v270_v10  ;;  %v561_v9 = vstv %s1856_s12  ;;  %s1871_s12 = sld [smem:[#allocation3 + $0x8b]] }
  0xc0   : > { %v268_v11 = vpop.permute.xlu0 %267  ;;  %v272_v12 = vpop.permute.xlu1 %271 }
  0xc1   : > { %291 = vst.msk [vmem:[#allocation2 + $0xa] sm:$0xff] %vm289_vm2, %v268_v11  ;;  %293 = vst.msk [vmem:[#allocation2 + $0x22] sm:$0xff] %vm289_vm2, %v272_v12  ;;  %v575_v12 = vstv %s1857_s14  ;;  %s1872_s14 = sld [smem:[#allocation3 + $0x8c]] }
  0xc4   : > { %v2329_v14 = vld [vmem:[#allocation2] sm:$0xff]  ;;  %v274_v15 = vpop.permute.xlu0 %273  ;;  %v276_v16 = vpop.permute.xlu1 %275 }
  0xc5   : > { %v306_v17 = vmul.f32 %v305_v13, %v2329_v14  ;;  %294 = vst.msk [vmem:[#allocation2 + $0x32] sm:$0xff] %vm289_vm2, %v274_v15  ;;  %295 = vst.msk [vmem:[#allocation2 + $0x3a] sm:$0xff] %vm289_vm2, %v276_v16  ;;  %v320_v22 = vmul.f32 %v319_v18, %v2329_v14  ;;  %v334_v25 = vmul.f32 %v333_v24, %v2329_v14  ;;  %v2353_v30 = vld [vmem:[#allocation2 + $0x1] sm:$0xff] }
  0xc6   : > { %v348_v28 = vmul.f32 %v347_v27, %v2329_v14  ;;  %v370_v32 = vmul.f32 %v369_v31, %v2353_v30  ;;  %v384_v36 = vmul.f32 %v383_v34, %v2353_v30  ;;  %v398_v39 = vmul.f32 %v397_v38, %v2353_v30  ;;  %v2373_v44 = vld [vmem:[#allocation2 + $0x2] sm:$0xff] }
  0xc7   : > { %310 = vrot.lane.b32.xlu0 %v306_v17, %s2170_s11  ;;  %v412_v42 = vmul.f32 %v411_v41, %v2353_v30  ;;  %v434_v46 = vmul.f32 %v433_v45, %v2373_v44  ;;  %v448_v50 = vmul.f32 %v447_v48, %v2373_v44  ;;  %v462_v53 = vmul.f32 %v461_v52, %v2373_v44 }
  0xc8   : > { %v2337_v19 = vld [vmem:[#allocation2 + $0x8] sm:$0xff]  ;;  %v278_v20 = vpop.permute.xlu0 %277  ;;  %v280_v21 = vpop.permute.xlu1 %279  ;;  %v476_v56 = vmul.f32 %v475_v55, %v2373_v44  ;;  %v589_v17 = vstv %s1858_s22  ;;  %s2475_s22 = sld [smem:[#allocation3 + $0x8d]] }
  0xc9   : > { %v307_v23 = vmul.f32 %v305_v13, %v2337_v19  ;;  %296 = vst.msk [vmem:[#allocation2 + $0x4a] sm:$0xff] %vm289_vm2, %v278_v20  ;;  %297 = vst.msk [vmem:[#allocation2 + $0x52] sm:$0xff] %vm289_vm2, %v280_v21  ;;  %v321_v26 = vmul.f32 %v319_v18, %v2337_v19  ;;  %v335_v29 = vmul.f32 %v333_v24, %v2337_v19  ;;  %v2359_v35 = vld [vmem:[#allocation2 + $0x9] sm:$0xff]  ;;  %v603_v21 = vstv %s1859_s27  ;;  %s2479_s27 = sld [smem:[#allocation3]] }
  0xca   : > { %v349_v33 = vmul.f32 %v347_v27, %v2337_v19  ;;  %v371_v37 = vmul.f32 %v369_v31, %v2359_v35  ;;  %v385_v40 = vmul.f32 %v383_v34, %v2359_v35  ;;  %v399_v43 = vmul.f32 %v397_v38, %v2359_v35  ;;  %v2379_v49 = vld [vmem:[#allocation2 + $0xa] sm:$0xff] }
  0xcb   : > { %324 = vrot.lane.b32.xlu0 %v320_v22, %s2171_s13  ;;  %312 = vrot.lane.b32.xlu1 %v307_v23, %s2170_s11  ;;  %v413_v47 = vmul.f32 %v411_v41, %v2359_v35  ;;  %v435_v51 = vmul.f32 %v433_v45, %v2379_v49  ;;  %v449_v54 = vmul.f32 %v447_v48, %v2379_v49  ;;  %v2393_v58 = vld [vmem:[#allocation2 + $0x3] sm:$0xff]  ;;  %v2399_v63 = vld [vmem:[#allocation2 + $0xb] sm:$0xff]  ;;  %v2431_v22 = vld [vmem:[#allocation2 + $0x18] sm:$0xff]  ;;  %v624_v23 = vstv %s1861_s28  ;;  %s2485_s28 = sld [smem:[#allocation3 + $0x8e]] }
  0xcc   : > { %v463_v57 = vmul.f32 %v461_v52, %v2379_v49  ;;  %v498_v60 = vmul.f32 %v497_v59, %v2393_v58  ;;  %v477_v61 = vmul.f32 %v475_v55, %v2379_v49  ;;  %v512_v0 = vmul.f32 %v511_v62, %v2393_v58  ;;  %v2413_v8 = vld [vmem:[#allocation2 + $0x4] sm:$0xff]  ;;  %v2419_v13 = vld [vmem:[#allocation2 + $0xc] sm:$0xff] }
  0xcd   : > { %v499_v1 = vmul.f32 %v497_v59, %v2399_v63  ;;  %v526_v3 = vmul.f32 %v525_v2, %v2393_v58  ;;  %v513_v4 = vmul.f32 %v511_v62, %v2399_v63  ;;  %v540_v6 = vmul.f32 %v539_v5, %v2393_v58  ;;  %v2483_v62 = vld [vmem:[#allocation2 + $0x22] sm:$0xff] }
  0xce   : > { %v527_v7 = vmul.f32 %v525_v2, %v2399_v63  ;;  %v562_v10 = vmul.f32 %v561_v9, %v2413_v8  ;;  %v541_v11 = vmul.f32 %v539_v5, %v2399_v63  ;;  %v576_v15 = vmul.f32 %v575_v12, %v2413_v8 }
  0xcf   : > { %338 = vrot.lane.b32.xlu0 %v334_v25, %s2172_s20  ;;  %326 = vrot.lane.b32.xlu1 %v321_v26, %s2171_s13  ;;  %v563_v16 = vmul.f32 %v561_v9, %v2419_v13  ;;  %v590_v18 = vmul.f32 %v589_v17, %v2413_v8  ;;  %v577_v20 = vmul.f32 %v575_v12, %v2419_v13  ;;  %v688_v41 = vstv %s1866_s7  ;;  %s2513_s7 = sld [smem:[#allocation3 + $0x92]] }
  0xd0   : > { %v604_v24 = vmul.f32 %v603_v21, %v2413_v8  ;;  %v591_v25 = vmul.f32 %v589_v17, %v2419_v13  ;;  %v625_v26 = vmul.f32 %v624_v23, %v2431_v22  ;;  %v605_v27 = vmul.f32 %v603_v21, %v2419_v13 }
  0xd1   : > { %v702_v45 = vstv %s1867_s8  ;;  %s2524_s8 = sld [smem:[#allocation3 + $0x93]] }
  0xd3   : > { %352 = vrot.lane.b32.xlu0 %v348_v28, %s2173_s23  ;;  %340 = vrot.lane.b32.xlu1 %v335_v29, %s2172_s20  ;;  %v638_v28 = vstv %s1862_s29  ;;  %v2439_v29 = vld [vmem:[#allocation2 + $0x20] sm:$0xff]  ;;  %s2492_s29 = sld [smem:[#allocation3 + $0x90]] }
  0xd4   : > { %v639_v31 = vmul.f32 %v638_v28, %v2431_v22 }
  0xd7   : > { %374 = vrot.lane.b32.xlu0 %v370_v32, %s2170_s11  ;;  %354 = vrot.lane.b32.xlu1 %v349_v33, %s2173_s23  ;;  %v626_v32 = vmul.f32 %v624_v23, %v2439_v29  ;;  %v652_v33 = vstv %s1863_s30  ;;  %s2497_s30 = sld [smem:[#allocation3 + $0x5]] }
  0xd8   : > { %v653_v34 = vmul.f32 %v652_v33, %v2431_v22 }
  0xd9   : > { %v816_v23 = vstv %s2492_s29  ;;  %s2578_s29 = sld [smem:[#allocation3 + $0x102]] }
  0xdb   : > { %388 = vrot.lane.b32.xlu0 %v384_v36, %s2171_s13  ;;  %376 = vrot.lane.b32.xlu1 %v371_v37, %s2170_s11  ;;  %v640_v36 = vmul.f32 %v638_v28, %v2439_v29  ;;  %v666_v37 = vstv %s1864_s6  ;;  %s2503_s6 = sld [smem:[#allocation3 + $0x91]] }
  0xdc   : > { %v667_v38 = vmul.f32 %v666_v37, %v2431_v22 }
  0xdf   : > { %402 = vrot.lane.b32.xlu0 %v398_v39, %s2172_s20  ;;  %390 = vrot.lane.b32.xlu1 %v385_v40, %s2171_s13  ;;  %v654_v39 = vmul.f32 %v652_v33, %v2439_v29  ;;  %v2453_v40 = vld [vmem:[#allocation2 + $0x19] sm:$0xff] }
  0xe3   : > { %416 = vrot.lane.b32.xlu0 %v412_v42, %s2173_s23  ;;  %404 = vrot.lane.b32.xlu1 %v399_v43, %s2172_s20  ;;  %v689_v42 = vmul.f32 %v688_v41, %v2453_v40  ;;  %v668_v43 = vmul.f32 %v666_v37, %v2439_v29  ;;  %v2522_v37 = vld [vmem:[#allocation2 + $0x23] sm:$0xff] }
  0xe7   : > { %438 = vrot.lane.b32.xlu0 %v434_v46, %s2170_s11  ;;  %418 = vrot.lane.b32.xlu1 %v413_v47, %s2173_s23  ;;  %v2459_v46 = vld [vmem:[#allocation2 + $0x21] sm:$0xff]  ;;  %v703_v47 = vmul.f32 %v702_v45, %v2453_v40 }
  0xe8   : > { %v690_v48 = vmul.f32 %v688_v41, %v2459_v46  ;;  %v704_v52 = vmul.f32 %v702_v45, %v2459_v46  ;;  %v818_v45 = vmul.f32 %v816_v23, %v2522_v37 }
  0xeb   : > { %452 = vrot.lane.b32.xlu0 %v448_v50, %s2171_s13  ;;  %440 = vrot.lane.b32.xlu1 %v435_v51, %s2170_s11  ;;  %v716_v50 = vstv %s1868_s9  ;;  %s2532_s9 = sld [smem:[#allocation3 + $0x95]] }
  0xec   : > { %v717_v51 = vmul.f32 %v716_v50, %v2453_v40  ;;  %v718_v55 = vmul.f32 %v716_v50, %v2459_v46 }
  0xef   : > { %466 = vrot.lane.b32.xlu0 %v462_v53, %s2172_s20  ;;  %454 = vrot.lane.b32.xlu1 %v449_v54, %s2171_s13  ;;  %v730_v53 = vstv %s1869_s10  ;;  %s2536_s10 = sld [smem:[#allocation3 + $0xa]] }
  0xf0   : > { %v731_v54 = vmul.f32 %v730_v53, %v2453_v40 }
  0xf3   : > { %480 = vrot.lane.b32.xlu0 %v476_v56, %s2173_s23  ;;  %468 = vrot.lane.b32.xlu1 %v463_v57, %s2172_s20  ;;  %v2473_v56 = vld [vmem:[#allocation2 + $0x1a] sm:$0xff]  ;;  %v752_v57 = vstv %s1871_s12  ;;  %s2541_s12 = sld [smem:[#allocation3 + $0x96]] }
  0xf4   : > { %v753_v59 = vmul.f32 %v752_v57, %v2473_v56  ;;  %v754_v2 = vmul.f32 %v752_v57, %v2483_v62 }
  0xf7   : > { %502 = vrot.lane.b32.xlu0 %v498_v60, %s2170_s11  ;;  %482 = vrot.lane.b32.xlu1 %v477_v61, %s2173_s23  ;;  %v732_v60 = vmul.f32 %v730_v53, %v2459_v46  ;;  %v766_v61 = vstv %s1872_s14  ;;  %s2550_s14 = sld [smem:[#allocation3 + $0x97]] }
  0xf8   : > { %v768_v9 = vmul.f32 %v766_v61, %v2483_v62 }
  0xfb   : > { %516 = vrot.lane.b32.xlu0 %v512_v0, %s2171_s13  ;;  %504 = vrot.lane.b32.xlu1 %v499_v1, %s2170_s11  ;;  %v767_v1 = vmul.f32 %v766_v61, %v2473_v56 }
  0xff   : > { %530 = vrot.lane.b32.xlu0 %v526_v3, %s2172_s20  ;;  %518 = vrot.lane.b32.xlu1 %v513_v4, %s2171_s13  ;;  %v780_v3 = vstv %s2475_s22  ;;  %v301_v4 = vstv %s2479_s27  ;;  %s2561_s22 = sld [smem:[#allocation3 + $0x98]] }
 0x100   : > { %s2569_s27 = sld [smem:[#allocation3 + $0x101]] }
 0x103   : > { %544 = vrot.lane.b32.xlu0 %v540_v6, %s2173_s23  ;;  %532 = vrot.lane.b32.xlu1 %v527_v7, %s2172_s20  ;;  %v781_v7 = vmul.f32 %v780_v3, %v2473_v56 }
 0x107   : > { %566 = vrot.lane.b32.xlu0 %v562_v10, %s2170_s11  ;;  %546 = vrot.lane.b32.xlu1 %v541_v11, %s2173_s23  ;;  %v302_v10 = vmul.f32 %v301_v4, %v2329_v14  ;;  %v794_v11 = vstv %s2485_s28  ;;  %v2510_v14 = vld [vmem:[#allocation2 + $0x1b] sm:$0xff]  ;;  %s2573_s28 = sld [smem:[#allocation3 + $0xf]] }
 0x108   : > { %v795_v17 = vmul.f32 %v794_v11, %v2473_v56 }
 0x10b   : > { %580 = vrot.lane.b32.xlu0 %v576_v15, %s2171_s13  ;;  %568 = vrot.lane.b32.xlu1 %v563_v16, %s2170_s11 }
 0x10f   : > { %594 = vrot.lane.b32.xlu0 %v590_v18, %s2172_s20  ;;  %582 = vrot.lane.b32.xlu1 %v577_v20, %s2171_s13  ;;  %v782_v18 = vmul.f32 %v780_v3, %v2483_v62  ;;  %v303_v20 = vmul.f32 %v301_v4, %v2337_v19  ;;  %v796_v19 = vmul.f32 %v794_v11, %v2483_v62  ;;  %v427_v3 = vstv %s2536_s10  ;;  %s2624_s10 = sld [smem:[#allocation3 + $0x108]] }
 0x113   : > { %608 = vrot.lane.b32.xlu0 %v604_v24, %s2173_s23  ;;  %596 = vrot.lane.b32.xlu1 %v591_v25, %s2172_s20  ;;  %v363_v24 = vstv %s2497_s30  ;;  %s2587_s30 = sld [smem:[#allocation3 + $0x103]] }
 0x117   : > { %629 = vrot.lane.b32.xlu0 %v625_v26, %s2170_s11  ;;  %610 = vrot.lane.b32.xlu1 %v605_v27, %s2173_s23 }
 0x11b   : > { %643 = vrot.lane.b32.xlu0 %v639_v31, %s2171_s13  ;;  %631 = vrot.lane.b32.xlu1 %v626_v32, %s2170_s11  ;;  %v817_v31 = vmul.f32 %v816_v23, %v2510_v14 }
 0x11f   : > { %657 = vrot.lane.b32.xlu0 %v653_v34, %s2172_s20  ;;  %645 = vrot.lane.b32.xlu1 %v640_v36, %s2171_s13  ;;  %v364_v34 = vmul.f32 %v363_v24, %v2353_v30  ;;  %v830_v36 = vstv %s2503_s6  ;;  %v365_v30 = vmul.f32 %v363_v24, %v2359_v35  ;;  %s2598_s6 = sld [smem:[#allocation3 + $0x104]] }
 0x123   : > { %671 = vrot.lane.b32.xlu0 %v667_v38, %s2173_s23  ;;  %659 = vrot.lane.b32.xlu1 %v654_v39, %s2172_s20 }
 0x127   : > { %693 = vrot.lane.b32.xlu0 %v689_v42, %s2170_s11  ;;  %673 = vrot.lane.b32.xlu1 %v668_v43, %s2173_s23  ;;  %v831_v43 = vmul.f32 %v830_v36, %v2510_v14 }
 0x12b   : > { %707 = vrot.lane.b32.xlu0 %v703_v47, %s2171_s13  ;;  %695 = vrot.lane.b32.xlu1 %v690_v48, %s2170_s11  ;;  %v844_v48 = vstv %s2513_s7  ;;  %s2606_s7 = sld [smem:[#allocation3 + $0x106]] }
 0x12c   : > { %v845_v53 = vmul.f32 %v844_v48, %v2510_v14  ;;  %v846_v61 = vmul.f32 %v844_v48, %v2522_v37 }
 0x12f   : > { %721 = vrot.lane.b32.xlu0 %v717_v51, %s2172_s20  ;;  %709 = vrot.lane.b32.xlu1 %v704_v52, %s2171_s13 }
 0x133   : > { %735 = vrot.lane.b32.xlu0 %v731_v54, %s2173_s23  ;;  %723 = vrot.lane.b32.xlu1 %v718_v55, %s2172_s20  ;;  %v832_v54 = vmul.f32 %v830_v36, %v2522_v37  ;;  %v858_v55 = vstv %s2524_s8  ;;  %s2610_s8 = sld [smem:[#allocation3 + $0x14]] }
 0x137   : > { %757 = vrot.lane.b32.xlu0 %v753_v59, %s2170_s11  ;;  %737 = vrot.lane.b32.xlu1 %v732_v60, %s2173_s23  ;;  %v859_v60 = vmul.f32 %v858_v55, %v2510_v14 }
 0x139   : > { %v311_v0 = vpop.permute.xlu0 %310 }
 0x13a   : > { %v316_v12 = vadd.f32 %v311_v0, %v302_v10  ;;  %v860_v10 = vmul.f32 %v858_v55, %v2522_v37 }
 0x13b   : > { %771 = vrot.lane.b32.xlu0 %v767_v1, %s2171_s13  ;;  %759 = vrot.lane.b32.xlu1 %v754_v2, %s2170_s11  ;;  %v2547_v1 = vld [vmem:[#allocation2 + $0x1c] sm:$0xff]  ;;  %v880_v2 = vstv %s2532_s9  ;;  %s2615_s9 = sld [smem:[#allocation3 + $0x107]] }
 0x13d   : > { %v313_v5 = vpop.permute.xlu1 %312  ;;  %v325_v6 = vpop.permute.xlu0 %324 }
 0x13e   : > { %v330_v21 = vadd.f32 %v325_v6, %v316_v12  ;;  %v317_v25 = vadd.f32 %v313_v5, %v303_v20 }
 0x13f   : > { %785 = vrot.lane.b32.xlu0 %v781_v7, %s2172_s20  ;;  %773 = vrot.lane.b32.xlu1 %v768_v9, %s2171_s13  ;;  %v881_v9 = vmul.f32 %v880_v2, %v2547_v1 }
 0x141   : > { %v327_v15 = vpop.permute.xlu1 %326  ;;  %v339_v16 = vpop.permute.xlu0 %338 }
 0x142   : > { %v344_v26 = vadd.f32 %v339_v16, %v330_v21  ;;  %v331_v32 = vadd.f32 %v327_v15, %v317_v25  ;;  %v428_v15 = vmul.f32 %v427_v3, %v2373_v44  ;;  %v894_v16 = vstv %s2541_s12  ;;  %s2635_s12 = sld [smem:[#allocation3 + $0x109]] }
 0x143   : > { %799 = vrot.lane.b32.xlu0 %v795_v17, %s2173_s23  ;;  %787 = vrot.lane.b32.xlu1 %v782_v18, %s2172_s20  ;;  %v2559_v17 = vld [vmem:[#allocation2 + $0x24] sm:$0xff]  ;;  %v895_v24 = vmul.f32 %v894_v16, %v2547_v1  ;;  %v429_v44 = vmul.f32 %v427_v3, %v2379_v49 }
 0x144   : > { %v882_v25 = vmul.f32 %v880_v2, %v2559_v17 }
 0x145   : > { %v341_v27 = vpop.permute.xlu1 %340  ;;  %v353_v28 = vpop.permute.xlu0 %352 }
 0x146   : > { %v358_v33 = vadd.f32 %v353_v28, %v344_v26  ;;  %v345_v38 = vadd.f32 %v341_v27, %v331_v32  ;;  %v908_v27 = vstv %s2550_s14  ;;  %s2647_s14 = sld [smem:[#allocation3 + $0x10b]] }
 0x147   : > { %821 = vrot.lane.b32.xlu0 %v817_v31, %s2170_s11  ;;  %801 = vrot.lane.b32.xlu1 %v796_v19, %s2173_s23  ;;  %v909_v32 = vmul.f32 %v908_v27, %v2547_v1 }
 0x148   : > { %v366_v39 = vadd.f32 %v364_v34, %v358_v33  ;;  %v896_v33 = vmul.f32 %v894_v16, %v2559_v17  ;;  %v922_v34 = vstv %s2561_s22  ;;  %s2660_s22 = sld [smem:[#allocation3 + $0x10c]] }
 0x149   : > { %v355_v41 = vpop.permute.xlu1 %354  ;;  %v375_v42 = vpop.permute.xlu0 %374 }
 0x14a   : > { %v359_v47 = vadd.f32 %v355_v41, %v345_v38  ;;  %v380_v35 = vadd.f32 %v375_v42, %v366_v39  ;;  %v923_v39 = vmul.f32 %v922_v34, %v2547_v1  ;;  %v910_v41 = vmul.f32 %v908_v27, %v2559_v17 }
 0x14b   : > { %835 = vrot.lane.b32.xlu0 %v831_v43, %s2171_s13  ;;  %823 = vrot.lane.b32.xlu1 %v818_v45, %s2170_s11  ;;  %v2584_v43 = vld [vmem:[#allocation2 + $0x30] sm:$0xff]  ;;  %v943_v45 = vstv %s2569_s27  ;;  %s2673_s27 = sld [smem:[#allocation3 + $0x10d]] }
 0x14c   : > { %v367_v50 = vadd.f32 %v365_v30, %v359_v47  ;;  %v491_v47 = vstv %s2573_s28  ;;  %s2677_s28 = sld [smem:[#allocation3 + $0x80]] }
 0x14d   : > { %v377_v51 = vpop.permute.xlu1 %376  ;;  %v389_v52 = vpop.permute.xlu0 %388 }
 0x14e   : > { %v394_v0 = vadd.f32 %v389_v52, %v380_v35  ;;  %v381_v4 = vadd.f32 %v377_v51, %v367_v50  ;;  %v924_v52 = vmul.f32 %v922_v34, %v2559_v17  ;;  %v492_v35 = vmul.f32 %v491_v47, %v2393_v58 }
 0x14f   : > { %849 = vrot.lane.b32.xlu0 %v845_v53, %s2172_s20  ;;  %837 = vrot.lane.b32.xlu1 %v832_v54, %s2171_s13  ;;  %v944_v53 = vmul.f32 %v943_v45, %v2584_v43  ;;  %v493_v58 = vmul.f32 %v491_v47, %v2399_v63 }
 0x151   : > { %v391_v57 = vpop.permute.xlu1 %390  ;;  %v403_v59 = vpop.permute.xlu0 %402 }
 0x152   : > { %v408_v5 = vadd.f32 %v403_v59, %v394_v0  ;;  %v395_v11 = vadd.f32 %v391_v57, %v381_v4  ;;  %v2595_v57 = vld [vmem:[#allocation2 + $0x38] sm:$0xff]  ;;  %v957_v59 = vstv %s2578_s29  ;;  %s2688_s29 = sld [smem:[#allocation3 + $0x181]] }
 0x153   : > { %863 = vrot.lane.b32.xlu0 %v859_v60, %s2173_s23  ;;  %851 = vrot.lane.b32.xlu1 %v846_v61, %s2172_s20  ;;  %v945_v3 = vmul.f32 %v943_v45, %v2595_v57  ;;  %v958_v4 = vmul.f32 %v957_v59, %v2584_v43 }
 0x155   : > { %v405_v6 = vpop.permute.xlu1 %404  ;;  %v417_v7 = vpop.permute.xlu0 %416 }
 0x156   : > { %v422_v12 = vadd.f32 %v417_v7, %v408_v5  ;;  %v409_v18 = vadd.f32 %v405_v6, %v395_v11  ;;  %v971_v6 = vstv %s2587_s30  ;;  %v959_v11 = vmul.f32 %v957_v59, %v2595_v57  ;;  %s2697_s30 = sld [smem:[#allocation3 + $0x182]] }
 0x157   : > { %885 = vrot.lane.b32.xlu0 %v881_v9, %s2170_s11  ;;  %865 = vrot.lane.b32.xlu1 %v860_v10, %s2173_s23 }
 0x158   : > { %v430_v20 = vadd.f32 %v428_v15, %v422_v12  ;;  %v972_v12 = vmul.f32 %v971_v6, %v2584_v43  ;;  %v985_v15 = vstv %s2598_s6  ;;  %s2702_s6 = sld [smem:[#allocation3 + $0x85]] }
 0x159   : > { %v419_v21 = vpop.permute.xlu1 %418  ;;  %v439_v23 = vpop.permute.xlu0 %438 }
 0x15a   : > { %v423_v26 = vadd.f32 %v419_v21, %v409_v18  ;;  %v444_v49 = vadd.f32 %v439_v23, %v430_v20  ;;  %v973_v20 = vmul.f32 %v971_v6, %v2595_v57  ;;  %v986_v21 = vmul.f32 %v985_v15, %v2584_v43  ;;  %v2685_v6 = vld [vmem:[#allocation2 + $0x3a] sm:$0xff] }
 0x15b   : > { %899 = vrot.lane.b32.xlu0 %v895_v24, %s2171_s13  ;;  %887 = vrot.lane.b32.xlu1 %v882_v25, %s2170_s11  ;;  %v2621_v24 = vld [vmem:[#allocation2 + $0x31] sm:$0xff]  ;;  %v1007_v25 = vstv %s2606_s7  ;;  %s2710_s7 = sld [smem:[#allocation3 + $0x183]] }
 0x15c   : > { %v431_v28 = vadd.f32 %v429_v44, %v423_v26  ;;  %v555_v26 = vstv %s2610_s8  ;;  %s2720_s8 = sld [smem:[#allocation3 + $0x184]] }
 0x15d   : > { %v441_v31 = vpop.permute.xlu1 %440  ;;  %v453_v19 = vpop.permute.xlu0 %452 }
 0x15e   : > { %v458_v42 = vadd.f32 %v453_v19, %v444_v49  ;;  %v445_v30 = vadd.f32 %v441_v31, %v431_v28  ;;  %v987_v19 = vmul.f32 %v985_v15, %v2595_v57  ;;  %v556_v49 = vmul.f32 %v555_v26, %v2413_v8 }
 0x15f   : > { %913 = vrot.lane.b32.xlu0 %v909_v32, %s2172_s20  ;;  %901 = vrot.lane.b32.xlu1 %v896_v33, %s2171_s13  ;;  %v1008_v32 = vmul.f32 %v1007_v25, %v2621_v24  ;;  %v1099_v15 = vstv %s2673_s27  ;;  %s2766_s27 = sld [smem:[#allocation3 + $0x18b]] }
 0x161   : > { %v455_v36 = vpop.permute.xlu1 %454  ;;  %v467_v38 = vpop.permute.xlu0 %466 }
 0x162   : > { %v472_v48 = vadd.f32 %v467_v38, %v458_v42  ;;  %v459_v54 = vadd.f32 %v455_v36, %v445_v30  ;;  %v2632_v36 = vld [vmem:[#allocation2 + $0x39] sm:$0xff]  ;;  %v1021_v38 = vstv %s2615_s9  ;;  %s2729_s9 = sld [smem:[#allocation3 + $0x186]] }
 0x163   : > { %927 = vrot.lane.b32.xlu0 %v923_v39, %s2173_s23  ;;  %915 = vrot.lane.b32.xlu1 %v910_v41, %s2172_s20  ;;  %v1009_v47 = vmul.f32 %v1007_v25, %v2632_v36  ;;  %v1022_v8 = vmul.f32 %v1021_v38, %v2621_v24  ;;  %v2707_v25 = vld [vmem:[#allocation2 + $0x48] sm:$0xff] }
 0x165   : > { %v469_v50 = vpop.permute.xlu1 %468  ;;  %v481_v51 = vpop.permute.xlu0 %480 }
 0x166   : > { %v486_v55 = vadd.f32 %v481_v51, %v472_v48  ;;  %v473_v60 = vadd.f32 %v469_v50, %v459_v54  ;;  %v557_v48 = vmul.f32 %v555_v26, %v2419_v13  ;;  %v1035_v50 = vstv %s2624_s10  ;;  %s2737_s10 = sld [smem:[#allocation3 + $0x187]] }
 0x167   : > { %929 = vrot.lane.b32.xlu1 %v924_v52, %s2173_s23  ;;  %948 = vrot.lane.b32.xlu0 %v944_v53, %s2170_s11  ;;  %v1023_v54 = vmul.f32 %v1021_v38, %v2632_v36  ;;  %v1262_v26 = vstv %s2688_s29  ;;  %s2778_s29 = sld [smem:[#allocation3 + $0x8f]] }
 0x168   : > { %v494_v61 = vadd.f32 %v492_v35, %v486_v55  ;;  %v1036_v55 = vmul.f32 %v1035_v50, %v2621_v24  ;;  %v1049_v35 = vstv %s2635_s12  ;;  %s2741_s12 = sld [smem:[#allocation3 + $0x8a]] }
 0x169   : > { %v483_v0 = vpop.permute.xlu1 %482  ;;  %v503_v2 = vpop.permute.xlu0 %502 }
 0x16a   : > { %v487_v5 = vadd.f32 %v483_v0, %v473_v60  ;;  %v508_v63 = vadd.f32 %v503_v2, %v494_v61  ;;  %v1037_v60 = vmul.f32 %v1035_v50, %v2632_v36  ;;  %v1050_v61 = vmul.f32 %v1049_v35, %v2621_v24  ;;  %v2670_v0 = vld [vmem:[#allocation2 + $0x32] sm:$0xff] }
 0x16b   : > { %950 = vrot.lane.b32.xlu1 %v945_v3, %s2170_s11  ;;  %962 = vrot.lane.b32.xlu0 %v958_v4, %s2171_s13  ;;  %v1071_v2 = vstv %s2647_s14  ;;  %s2748_s14 = sld [smem:[#allocation3 + $0x188]] }
 0x16c   : > { %v495_v7 = vadd.f32 %v493_v58, %v487_v5  ;;  %v1051_v5 = vmul.f32 %v1049_v35, %v2632_v36  ;;  %v1072_v58 = vmul.f32 %v1071_v2, %v2670_v0 }
 0x16d   : > { %v505_v9 = vpop.permute.xlu1 %504  ;;  %v517_v10 = vpop.permute.xlu0 %516 }
 0x16e   : > { %v522_v23 = vadd.f32 %v517_v10, %v508_v63  ;;  %v509_v44 = vadd.f32 %v505_v9, %v495_v7  ;;  %v1085_v7 = vstv %s2660_s22  ;;  %v620_v63 = vstv %s2677_s28  ;;  %s2757_s22 = sld [smem:[#allocation3 + $0x189]] }
 0x16f   : > { %964 = vrot.lane.b32.xlu1 %v959_v11, %s2171_s13  ;;  %976 = vrot.lane.b32.xlu0 %v972_v12, %s2172_s20  ;;  %v1073_v11 = vmul.f32 %v1071_v2, %v2685_v6  ;;  %v1086_v12 = vmul.f32 %v1085_v7, %v2670_v0  ;;  %s2774_s28 = sld [smem:[#allocation3 + $0x18c]] }
 0x171   : > { %v519_v16 = vpop.permute.xlu1 %518  ;;  %v531_v18 = vpop.permute.xlu0 %530 }
 0x172   : > { %v536_v27 = vadd.f32 %v531_v18, %v522_v23  ;;  %v523_v33 = vadd.f32 %v519_v16, %v509_v44  ;;  %v621_v23 = vmul.f32 %v620_v63, %v2431_v22 }
 0x173   : > { %978 = vrot.lane.b32.xlu1 %v973_v20, %s2172_s20  ;;  %990 = vrot.lane.b32.xlu0 %v986_v21, %s2173_s23  ;;  %v1087_v20 = vmul.f32 %v1085_v7, %v2685_v6  ;;  %v1100_v21 = vmul.f32 %v1099_v15, %v2670_v0 }
 0x175   : > { %v533_v28 = vpop.permute.xlu1 %532  ;;  %v545_v31 = vpop.permute.xlu0 %544 }
 0x176   : > { %v550_v34 = vadd.f32 %v545_v31, %v536_v27  ;;  %v537_v39 = vadd.f32 %v533_v28, %v523_v33  ;;  %v1101_v31 = vmul.f32 %v1099_v15, %v2685_v6  ;;  %v2717_v33 = vld [vmem:[#allocation2 + $0x50] sm:$0xff] }
 0x177   : > { %992 = vrot.lane.b32.xlu1 %v987_v19, %s2173_s23  ;;  %1012 = vrot.lane.b32.xlu0 %v1008_v32, %s2170_s11  ;;  %v1263_v19 = vmul.f32 %v1262_v26, %v2707_v25  ;;  %v622_v32 = vmul.f32 %v620_v63, %v2439_v29 }
 0x178   : > { %v2639_v41 = vadd.f32 %v556_v49, %v550_v34  ;;  %v1276_v34 = vstv %s2697_s30  ;;  %v682_v49 = vstv %s2702_s6  ;;  %s2785_s30 = sld [smem:[#allocation3 + $0x10e]] }
 0x179   : > { %v547_v42 = vpop.permute.xlu1 %546  ;;  %v2641_v45 = vpop.permute.xlu0 %566  ;;  %v1277_v29 = vmul.f32 %v1276_v34, %v2707_v25  ;;  %v683_v50 = vmul.f32 %v682_v49, %v2453_v40  ;;  %v1278_v2 = vmul.f32 %v1276_v34, %v2717_v33  ;;  %v684_v7 = vmul.f32 %v682_v49, %v2459_v46  ;;  %s2794_s6 = sld [smem:[#allocation3 + $0x18d]] }
 0x17a   : > { %v551_v30 = vadd.f32 %v547_v42, %v537_v39  ;;  %v1304_v40 = vstv %s2720_s8  ;;  %v1326_v46 = vstv %s2729_s9  ;;  %s2811_s8 = sld [smem:[#allocation3 + $0x110]] }
 0x17b   : > { %1014 = vrot.lane.b32.xlu1 %v1009_v47, %s2170_s11  ;;  %1026 = vrot.lane.b32.xlu0 %v1022_v8, %s2171_s13  ;;  %v1264_v8 = vmul.f32 %v1262_v26, %v2717_v33  ;;  %v1305_v63 = vmul.f32 %v1304_v40, %v2707_v25  ;;  %s2815_s9 = sld [smem:[#allocation3 + $0x94]] }
 0x17c   : > { %v2651_v51 = vadd.f32 %v557_v48, %v551_v30 }
 0x17d   : > { %v2653_v52 = vpop.permute.xlu1 %568  ;;  %v2655_v53 = vpop.permute.xlu0 %580 }
 0x17f   : > { %1028 = vrot.lane.b32.xlu1 %v1023_v54, %s2171_s13  ;;  %1040 = vrot.lane.b32.xlu0 %v1036_v55, %s2172_s20  ;;  %v1290_v54 = vstv %s2710_s7  ;;  %s2803_s7 = sld [smem:[#allocation3 + $0x18e]] }
 0x180   : > { %v1292_v15 = vmul.f32 %v1290_v54, %v2717_v33 }
 0x181   : > { %v2664_v13 = vpop.permute.xlu1 %582  ;;  %v2666_v59 = vpop.permute.xlu0 %594 }
 0x183   : > { %1042 = vrot.lane.b32.xlu1 %v1037_v60, %s2172_s20  ;;  %1054 = vrot.lane.b32.xlu0 %v1050_v61, %s2173_s23 }
 0x185   : > { %v2679_v3 = vpop.permute.xlu1 %596  ;;  %v2681_v4 = vpop.permute.xlu0 %608 }
 0x187   : > { %1056 = vrot.lane.b32.xlu1 %v1051_v5, %s2173_s23  ;;  %1076 = vrot.lane.b32.xlu0 %v1072_v58, %s2170_s11  ;;  %v1291_v5 = vmul.f32 %v1290_v54, %v2707_v25 }
 0x189   : > { %v2692_v9 = vpop.permute.xlu1 %610  ;;  %v630_v10 = vpop.permute.xlu0 %629 }
 0x18a   : > { %v635_v44 = vadd.f32 %v630_v10, %v621_v23  ;;  %v1306_v23 = vmul.f32 %v1304_v40, %v2717_v33  ;;  %v2782_v40 = vld [vmem:[#allocation2 + $0x4a] sm:$0xff] }
 0x18b   : > { %1078 = vrot.lane.b32.xlu1 %v1073_v11, %s2170_s11  ;;  %1090 = vrot.lane.b32.xlu0 %v1086_v12, %s2171_s13 }
 0x18d   : > { %v632_v16 = vpop.permute.xlu1 %631  ;;  %v644_v18 = vpop.permute.xlu0 %643 }
 0x18e   : > { %v649_v22 = vadd.f32 %v644_v18, %v635_v44  ;;  %v636_v38 = vadd.f32 %v632_v16, %v622_v32  ;;  %v2745_v16 = vld [vmem:[#allocation2 + $0x49] sm:$0xff] }
 0x18f   : > { %1092 = vrot.lane.b32.xlu1 %v1087_v20, %s2171_s13  ;;  %1104 = vrot.lane.b32.xlu0 %v1100_v21, %s2172_s20  ;;  %v1327_v26 = vmul.f32 %v1326_v46, %v2745_v16 }
 0x191   : > { %v646_v27 = vpop.permute.xlu1 %645  ;;  %v658_v28 = vpop.permute.xlu0 %657 }
 0x192   : > { %v663_v39 = vadd.f32 %v658_v28, %v649_v22  ;;  %v650_v30 = vadd.f32 %v646_v27, %v636_v38  ;;  %v2754_v27 = vld [vmem:[#allocation2 + $0x51] sm:$0xff]  ;;  %v1340_v28 = vstv %s2737_s10  ;;  %s2820_s10 = sld [smem:[#allocation3 + $0x111]] }
 0x193   : > { %1106 = vrot.lane.b32.xlu1 %v1101_v31, %s2172_s20  ;;  %1267 = vrot.lane.b32.xlu0 %v1263_v19, %s2170_s11  ;;  %v746_v31 = vstv %s2741_s12  ;;  %v1328_v49 = vmul.f32 %v1326_v46, %v2754_v27  ;;  %v1341_v38 = vmul.f32 %v1340_v28, %v2745_v16  ;;  %v1342_v54 = vmul.f32 %v1340_v28, %v2754_v27  ;;  %s2826_s12 = sld [smem:[#allocation3 + $0x190]] }
 0x195   : > { %v660_v42 = vpop.permute.xlu1 %659  ;;  %v672_v47 = vpop.permute.xlu0 %671 }
 0x196   : > { %v677_v48 = vadd.f32 %v672_v47, %v663_v39  ;;  %v664_v55 = vadd.f32 %v660_v42, %v650_v30  ;;  %v747_v47 = vmul.f32 %v746_v31, %v2473_v56  ;;  %v1368_v56 = vstv %s2757_s22  ;;  %s2836_s22 = sld [smem:[#allocation3 + $0x191]] }
 0x197   : > { %1269 = vrot.lane.b32.xlu1 %v1264_v8, %s2170_s11  ;;  %1281 = vrot.lane.b32.xlu0 %v1277_v29, %s2171_s13  ;;  %v1354_v8 = vstv %s2748_s14  ;;  %s2831_s14 = sld [smem:[#allocation3 + $0x112]] }
 0x198   : > { %v685_v35 = vadd.f32 %v683_v50, %v677_v48 }
 0x199   : > { %v674_v60 = vpop.permute.xlu1 %673  ;;  %v694_v61 = vpop.permute.xlu0 %693 }
 0x19a   : > { %v678_v58 = vadd.f32 %v674_v60, %v664_v55  ;;  %v699_v18 = vadd.f32 %v694_v61, %v685_v35  ;;  %v1355_v55 = vmul.f32 %v1354_v8, %v2745_v16  ;;  %v748_v60 = vmul.f32 %v746_v31, %v2483_v62 }
 0x19b   : > { %1283 = vrot.lane.b32.xlu1 %v1278_v2, %s2171_s13  ;;  %1295 = vrot.lane.b32.xlu0 %v1291_v5, %s2172_s20  ;;  %v1390_v62 = vstv %s2766_s27  ;;  %s2838_s27 = sld [smem:[#allocation3 + $0x100]] }
 0x19c   : > { %v686_v10 = vadd.f32 %v684_v7, %v678_v58  ;;  %v1356_v58 = vmul.f32 %v1354_v8, %v2754_v27  ;;  %v1369_v7 = vmul.f32 %v1368_v56, %v2745_v16 }
 0x19d   : > { %v696_v11 = vpop.permute.xlu1 %695  ;;  %v708_v12 = vpop.permute.xlu0 %707 }
 0x19e   : > { %v713_v44 = vadd.f32 %v708_v12, %v699_v18  ;;  %v700_v19 = vadd.f32 %v696_v11, %v686_v10  ;;  %v2791_v18 = vld [vmem:[#allocation2 + $0x52] sm:$0xff] }
 0x19f   : > { %1297 = vrot.lane.b32.xlu1 %v1292_v15, %s2172_s20  ;;  %1309 = vrot.lane.b32.xlu0 %v1305_v63, %s2173_s23  ;;  %v1370_v15 = vmul.f32 %v1368_v56, %v2754_v27  ;;  %v1391_v63 = vmul.f32 %v1390_v62, %v2782_v40  ;;  %v1392_v31 = vmul.f32 %v1390_v62, %v2791_v18 }
 0x1a1   : > { %v710_v20 = vpop.permute.xlu1 %709  ;;  %v722_v21 = vpop.permute.xlu0 %721 }
 0x1a2   : > { %v727_v32 = vadd.f32 %v722_v21, %v713_v44  ;;  %v714_v39 = vadd.f32 %v710_v20, %v700_v19  ;;  %v1404_v20 = vstv %s2774_s28  ;;  %v810_v21 = vstv %s2778_s29  ;;  %s2842_s28 = sld [smem:[#allocation3 + $0x113]] }
 0x1a3   : > { %1311 = vrot.lane.b32.xlu1 %v1306_v23, %s2173_s23  ;;  %1331 = vrot.lane.b32.xlu0 %v1327_v26, %s2170_s11  ;;  %v1405_v19 = vmul.f32 %v1404_v20, %v2782_v40  ;;  %v1406_v8 = vmul.f32 %v1404_v20, %v2791_v18  ;;  %s2844_s29 = sld [smem:[#allocation6]] }
 0x1a5   : > { %v724_v22 = vpop.permute.xlu1 %723  ;;  %v736_v34 = vpop.permute.xlu0 %735 }
 0x1a6   : > { %v741_v42 = vadd.f32 %v736_v34, %v727_v32  ;;  %v728_v29 = vadd.f32 %v724_v22, %v714_v39  ;;  %v811_v34 = vmul.f32 %v810_v21, %v2510_v14  ;;  %v812_v14 = vmul.f32 %v810_v21, %v2522_v37 }
 0x1a7   : > { %1333 = vrot.lane.b32.xlu1 %v1328_v49, %s2170_s11  ;;  %1345 = vrot.lane.b32.xlu0 %v1341_v38, %s2171_s13  ;;  %v1113_v49 = vstv %s2785_s30  ;;  %v1432_v37 = vstv %s2803_s7  ;;  %s2850_s30 = sld [smem:[#allocation6 + $0x1]] }
 0x1a8   : > { %v749_v30 = vadd.f32 %v747_v47, %v741_v42  ;;  %v1433_v62 = vmul.f32 %v1432_v37, %v2782_v40  ;;  %v1434_v21 = vmul.f32 %v1432_v37, %v2791_v18  ;;  %s2856_s7 = sld [smem:[#allocation6 + $0x3]] }
 0x1a9   : > { %v738_v48 = vpop.permute.xlu1 %737  ;;  %v758_v50 = vpop.permute.xlu0 %757 }
 0x1aa   : > { %v742_v35 = vadd.f32 %v738_v48, %v728_v29  ;;  %v763_v10 = vadd.f32 %v758_v50, %v749_v30  ;;  %v1114_v29 = vmul.f32 %v1113_v49, %v2670_v0  ;;  %v1418_v50 = vstv %s2794_s6  ;;  %s2854_s6 = sld [smem:[#allocation6 + $0x2]] }
 0x1ab   : > { %1347 = vrot.lane.b32.xlu1 %v1342_v54, %s2171_s13  ;;  %1359 = vrot.lane.b32.xlu0 %v1355_v55, %s2172_s20  ;;  %v1419_v56 = vmul.f32 %v1418_v50, %v2782_v40 }
 0x1ac   : > { %v750_v61 = vadd.f32 %v748_v60, %v742_v35  ;;  %v1115_v60 = vmul.f32 %v1113_v49, %v2685_v6 }
 0x1ad   : > { %v760_v2 = vpop.permute.xlu1 %759  ;;  %v772_v5 = vpop.permute.xlu0 %771 }
 0x1ae   : > { %v777_v46 = vadd.f32 %v772_v5, %v763_v10  ;;  %v764_v23 = vadd.f32 %v760_v2, %v750_v61 }
 0x1af   : > { %1361 = vrot.lane.b32.xlu1 %v1356_v58, %s2172_s20  ;;  %1373 = vrot.lane.b32.xlu0 %v1369_v7, %s2173_s23  ;;  %v1420_v7 = vmul.f32 %v1418_v50, %v2791_v18 }
 0x1b1   : > { %v774_v11 = vpop.permute.xlu1 %773  ;;  %v786_v12 = vpop.permute.xlu0 %785 }
 0x1b2   : > { %v791_v26 = vadd.f32 %v786_v12, %v777_v46  ;;  %v778_v32 = vadd.f32 %v774_v11, %v764_v23  ;;  %v2828_v12 = vld [vmem:[#allocation2 + $0x33] sm:$0xff] }
 0x1b3   : > { %1375 = vrot.lane.b32.xlu1 %v1370_v15, %s2173_s23  ;;  %1395 = vrot.lane.b32.xlu0 %v1391_v63, %s2170_s11  ;;  %v1135_v15 = vstv %s2811_s8  ;;  %v874_v63 = vstv %s2815_s9  ;;  %s2864_s8 = sld [smem:[#allocation6 + $0x80]] }
 0x1b4   : > { %v1136_v23 = vmul.f32 %v1135_v15, %v2828_v12  ;;  %s2868_s9 = sld [smem:[#allocation6 + $0x81]] }
 0x1b5   : > { %v788_v44 = vpop.permute.xlu1 %787  ;;  %v800_v28 = vpop.permute.xlu0 %799 }
 0x1b6   : > { %v805_v22 = vadd.f32 %v800_v28, %v791_v26  ;;  %v792_v38 = vadd.f32 %v788_v44, %v778_v32  ;;  %v875_v28 = vmul.f32 %v874_v63, %v2547_v1 }
 0x1b7   : > { %1397 = vrot.lane.b32.xlu1 %v1392_v31, %s2170_s11  ;;  %1409 = vrot.lane.b32.xlu0 %v1405_v19, %s2171_s13  ;;  %v2847_v31 = vld [vmem:[#allocation2 + $0x3b] sm:$0xff]  ;;  %v1149_v19 = vstv %s2820_s10  ;;  %s2872_s10 = sld [smem:[#allocation6 + $0x82]] }
 0x1b8   : > { %v813_v39 = vadd.f32 %v811_v34, %v805_v22  ;;  %v1137_v49 = vmul.f32 %v1135_v15, %v2847_v31  ;;  %v1150_v1 = vmul.f32 %v1149_v19, %v2828_v12 }
 0x1b9   : > { %v802_v42 = vpop.permute.xlu1 %801  ;;  %v822_v47 = vpop.permute.xlu0 %821 }
 0x1ba   : > { %v806_v30 = vadd.f32 %v802_v42, %v792_v38  ;;  %v827_v48 = vadd.f32 %v822_v47, %v813_v39  ;;  %v876_v42 = vmul.f32 %v874_v63, %v2559_v17  ;;  %v2861_v47 = vld [vmem:[#allocation2 + $0x4b] sm:$0xff]  ;;  %v1645_v63 = vstv %s2854_s6  ;;  %s2965_s6 = sld [smem:[#allocation3 + $0x117]] }
 0x1bb   : > { %1411 = vrot.lane.b32.xlu1 %v1406_v8, %s2171_s13  ;;  %1118 = vrot.lane.b32.xlu0 %v1114_v29, %s2173_s23  ;;  %v1454_v8 = vstv %s2826_s12  ;;  %v572_v29 = vadd.f32 %v2641_v45, %v2639_v41  ;;  %s2876_s12 = sld [smem:[#allocation6 + $0x83]]  ;;  %v1163_v41 = vstv %s2831_s14 }
 0x1bc   : > { %v814_v54 = vadd.f32 %v812_v14, %v806_v30  ;;  %v1151_v14 = vmul.f32 %v1149_v19, %v2847_v31  ;;  %v1455_v50 = vmul.f32 %v1454_v8, %v2861_v47  ;;  %s2899_s14 = sld [smem:[#allocation3 + $0x192]] }
 0x1bd   : > { %v824_v55 = vpop.permute.xlu1 %823  ;;  %v836_v35 = vpop.permute.xlu0 %835 }
 0x1be   : > { %v828_v61 = vadd.f32 %v824_v55, %v814_v54  ;;  %v841_v2 = vadd.f32 %v836_v35, %v827_v48  ;;  %v586_v54 = vadd.f32 %v2655_v53, %v572_v29 }
 0x1bf   : > { %1120 = vrot.lane.b32.xlu1 %v1115_v60, %s2173_s23  ;;  %1423 = vrot.lane.b32.xlu0 %v1419_v56, %s2172_s20  ;;  %v2879_v60 = vld [vmem:[#allocation2 + $0x53] sm:$0xff]  ;;  %v1468_v56 = vstv %s2836_s22  ;;  %s2909_s22 = sld [smem:[#allocation3 + $0x193]] }
 0x1c0   : > { %v600_v45 = vadd.f32 %v2666_v59, %v586_v54  ;;  %v1456_v37 = vmul.f32 %v1454_v8, %v2879_v60  ;;  %v1469_v15 = vmul.f32 %v1468_v56, %v2861_v47 }
 0x1c1   : > { %v838_v5 = vpop.permute.xlu1 %837  ;;  %v850_v58 = vpop.permute.xlu0 %849 }
 0x1c2   : > { %v842_v10 = vadd.f32 %v838_v5, %v828_v61  ;;  %v855_v11 = vadd.f32 %v850_v58, %v841_v2  ;;  %v573_v61 = vadd.f32 %v2653_v52, %v2651_v51  ;;  %v1164_v5 = vmul.f32 %v1163_v41, %v2828_v12 }
 0x1c3   : > { %1425 = vrot.lane.b32.xlu1 %v1420_v7, %s2172_s20  ;;  %1437 = vrot.lane.b32.xlu0 %v1433_v62, %s2173_s23  ;;  %v1165_v58 = vmul.f32 %v1163_v41, %v2847_v31  ;;  %v614_v7 = vadd.f32 %v2681_v4, %v600_v45  ;;  %v1574_v52 = vstv %s2844_s29  ;;  %v1681_v4 = vstv %s2856_s7  ;;  %s2945_s29 = sld [smem:[#allocation3 + $0x116]] }
 0x1c4   : > { %v587_v51 = vadd.f32 %v2664_v13, %v573_v61  ;;  %v1685_v13 = vstv %s2876_s12  ;;  %s2971_s7 = sld [smem:[#allocation3 + $0x196]] }
 0x1c5   : > { %v852_v46 = vpop.permute.xlu1 %851  ;;  %v864_v20 = vpop.permute.xlu0 %863  ;;  %v1575_v19 = vmul.f32 %v1574_v52, %v614_v7  ;;  %s3006_s12 = sld [smem:[#allocation3 + $0x180]] }
 0x1c6   : > { %v856_v26 = vadd.f32 %v852_v46, %v842_v10  ;;  %v869_v44 = vadd.f32 %v864_v20, %v855_v11  ;;  %v939_v10 = vstv %s2838_s27  ;;  %v1609_v11 = vstv %s2850_s30  ;;  %s2926_s27 = sld [smem:[#allocation3 + $0x115]] }
 0x1c7   : > { %1439 = vrot.lane.b32.xlu1 %v1434_v21, %s2173_s23  ;;  %1140 = vrot.lane.b32.xlu0 %v1136_v23, %s2170_s11  ;;  %v1578_v46 = vstv %s2864_s8  ;;  %v1177_v20 = vstv %s2842_s28  ;;  %v601_v21 = vadd.f32 %v2679_v3, %v587_v51  ;;  %s2932_s28 = sld [smem:[#allocation3 + $0x105]] }
 0x1c8   : > { %v877_v32 = vadd.f32 %v875_v28, %v869_v44  ;;  %v1649_v44 = vstv %s2872_s10  ;;  %s2955_s30 = sld [smem:[#allocation3 + $0x195]] }
 0x1c9   : > { %v866_v22 = vpop.permute.xlu1 %865  ;;  %v886_v34 = vpop.permute.xlu0 %885  ;;  %s2977_s8 = sld [smem:[#allocation3 + $0x10a]] }
 0x1ca   : > { %v870_v38 = vadd.f32 %v866_v22, %v856_v26  ;;  %v891_v39 = vadd.f32 %v886_v34, %v877_v32  ;;  %v1613_v26 = vstv %s2868_s9  ;;  %v1610_v32 = vmul.f32 %v1609_v11, %v614_v7  ;;  %s2986_s9 = sld [smem:[#allocation3 + $0x118]] }
 0x1cb   : > { %1142 = vrot.lane.b32.xlu1 %v1137_v49, %s2170_s11  ;;  %1154 = vrot.lane.b32.xlu0 %v1150_v1, %s2171_s13  ;;  %v1646_v49 = vmul.f32 %v1645_v63, %v614_v7  ;;  %v1682_v1 = vmul.f32 %v1681_v4, %v614_v7  ;;  %s2994_s10 = sld [smem:[#allocation3 + $0x197]] }
 0x1cc   : > { %v878_v30 = vadd.f32 %v876_v42, %v870_v38  ;;  %v615_v38 = vadd.f32 %v2692_v9, %v601_v21  ;;  %v1496_v21 = vstv %s2909_s22  ;;  %s1905_s22 = sld [smem:[#allocation3 + $0x114]] }
 0x1cd   : > { %v888_v17 = vpop.permute.xlu1 %887  ;;  %v900_v48 = vpop.permute.xlu0 %899 }
 0x1ce   : > { %v892_v55 = vadd.f32 %v888_v17, %v878_v30  ;;  %v905_v35 = vadd.f32 %v900_v48, %v891_v39  ;;  %v940_v30 = vmul.f32 %v939_v10, %v2584_v43  ;;  %v1470_v48 = vmul.f32 %v1468_v56, %v2879_v60 }
 0x1cf   : > { %1156 = vrot.lane.b32.xlu1 %v1151_v14, %s2171_s13  ;;  %1459 = vrot.lane.b32.xlu0 %v1455_v50, %s2170_s11  ;;  %v1178_v14 = vmul.f32 %v1177_v20, %v2828_v12  ;;  %v941_v50 = vmul.f32 %v939_v10, %v2595_v57  ;;  %v1179_v43 = vmul.f32 %v1177_v20, %v2847_v31  ;;  %v1482_v57 = vstv %s2899_s14  ;;  %s1925_s14 = sld [smem:[#allocation3 + $0x18f]] }
 0x1d0   : > { %v1576_v56 = vmul.f32 %v1574_v52, %v615_v38  ;;  %v1611_v61 = vmul.f32 %v1609_v11, %v615_v38 }
 0x1d1   : > { %v902_v2 = vpop.permute.xlu1 %901  ;;  %v914_v53 = vpop.permute.xlu0 %913 }
 0x1d2   : > { %v906_v62 = vadd.f32 %v902_v2, %v892_v55  ;;  %v919_v59 = vadd.f32 %v914_v53, %v905_v35  ;;  %v1647_v2 = vmul.f32 %v1645_v63, %v615_v38  ;;  %v1683_v53 = vmul.f32 %v1681_v4, %v615_v38 }
 0x1d3   : > { %1461 = vrot.lane.b32.xlu1 %v1456_v37, %s2170_s11  ;;  %1168 = vrot.lane.b32.xlu0 %v1164_v5, %s2172_s20 }
 0x1d5   : > { %v916_v23 = vpop.permute.xlu1 %915  ;;  %v928_v28 = vpop.permute.xlu0 %927 }
 0x1d6   : > { %v920_v22 = vadd.f32 %v916_v23, %v906_v62  ;;  %v933_v34 = vadd.f32 %v928_v28, %v919_v59  ;;  %v2951_v28 = vld [vmem:[#allocation2 + $0x34] sm:$0xff] }
 0x1d7   : > { %1170 = vrot.lane.b32.xlu1 %v1165_v58, %s2172_s20  ;;  %1473 = vrot.lane.b32.xlu0 %v1469_v15, %s2171_s13  ;;  %v1483_v15 = vmul.f32 %v1482_v57, %v2861_v47 }
 0x1d8   : > { %v1579_v3 = vmul.f32 %v1578_v46, %v933_v34  ;;  %v1614_v39 = vmul.f32 %v1613_v26, %v933_v34  ;;  %v1650_v42 = vmul.f32 %v1649_v44, %v933_v34  ;;  %v1686_v8 = vmul.f32 %v1685_v13, %v933_v34 }
 0x1d9   : > { %v930_v29 = vpop.permute.xlu1 %929  ;;  %v949_v17 = vpop.permute.xlu0 %948 }
 0x1da   : > { %v2918_v9 = vadd.f32 %v1579_v3, %v1575_v19  ;;  %v2920_v54 = vadd.f32 %v1614_v39, %v1610_v32  ;;  %v2922_v55 = vadd.f32 %v1650_v42, %v1646_v49  ;;  %v2924_v35 = vadd.f32 %v1686_v8, %v1682_v1  ;;  %v2961_v42 = vld [vmem:[#allocation2 + $0x3c] sm:$0xff] }
 0x1db   : > { %v934_v41 = vadd.f32 %v930_v29, %v920_v22  ;;  %v954_v45 = vadd.f32 %v949_v17, %v940_v30  ;;  %1475 = vrot.lane.b32.xlu1 %v1470_v48, %s2171_s13  ;;  %1182 = vrot.lane.b32.xlu0 %v1178_v14, %s2173_s23  ;;  %v1199_v19 = vstv %s2926_s27  ;;  %v1001_v32 = vstv %s2932_s28  ;;  %s1930_s27 = sld [smem:[#allocation3 + $0x194]] }
 0x1dc   : > { %v1498_v49 = vmul.f32 %v1496_v21, %v2879_v60  ;;  %v1200_v3 = vmul.f32 %v1199_v19, %v2951_v28  ;;  %v1002_v39 = vmul.f32 %v1001_v32, %v2621_v24  ;;  %v1213_v8 = vstv %s2945_s29  ;;  %s3039_s28 = sld [smem:[#allocation6 + $0x100]] }
 0x1dd   : > { %v1580_v37 = vmul.f32 %v1578_v46, %v934_v41  ;;  %v1615_v5 = vmul.f32 %v1613_v26, %v934_v41  ;;  %v1651_v58 = vmul.f32 %v1649_v44, %v934_v41  ;;  %v1687_v7 = vmul.f32 %v1685_v13, %v934_v41  ;;  %v951_v62 = vpop.permute.xlu1 %950  ;;  %v963_v59 = vpop.permute.xlu0 %962  ;;  %s3041_s29 = sld [smem:[#allocation6 + $0x101]] }
 0x1de   : > { %v955_v10 = vadd.f32 %v951_v62, %v941_v50  ;;  %v968_v51 = vadd.f32 %v963_v59, %v954_v45  ;;  %v1484_v46 = vmul.f32 %v1482_v57, %v2879_v60  ;;  %v1497_v13 = vmul.f32 %v1496_v21, %v2861_v47  ;;  %v2974_v45 = vld [vmem:[#allocation2 + $0x4c] sm:$0xff] }
 0x1df   : > { %v2936_v20 = vadd.f32 %v1580_v37, %v1576_v56  ;;  %v2938_v23 = vadd.f32 %v1615_v5, %v1611_v61  ;;  %v2940_v52 = vadd.f32 %v1651_v58, %v1647_v2  ;;  %v2942_v11 = vadd.f32 %v1687_v7, %v1683_v53  ;;  %1184 = vrot.lane.b32.xlu1 %v1179_v43, %s2173_s23  ;;  %v2982_v5 = vld [vmem:[#allocation2 + $0x54] sm:$0xff] }
 0x1e0   : > { %1487 = vrot.lane.b32.xlu0 %v1483_v15, %s2172_s20  ;;  %v1201_v48 = vmul.f32 %v1199_v19, %v2961_v42  ;;  %v1214_v41 = vmul.f32 %v1213_v8, %v2951_v28  ;;  %v1003_v24 = vmul.f32 %v1001_v32, %v2632_v36  ;;  %v1518_v43 = vstv %s2955_s30  ;;  %s3043_s30 = sld [smem:[#allocation6 + $0x102]] }
 0x1e1   : > { %v965_v63 = vpop.permute.xlu1 %964  ;;  %v977_v4 = vpop.permute.xlu0 %976  ;;  %v1215_v2 = vmul.f32 %v1213_v8, %v2961_v42  ;;  %v1519_v37 = vmul.f32 %v1518_v43, %v2974_v45  ;;  %v1227_v58 = vstv %s2965_s6  ;;  %v1520_v59 = vmul.f32 %v1518_v43, %v2982_v5  ;;  %s3045_s6 = sld [smem:[#allocation6 + $0x103]] }
 0x1e2   : > { %v969_v26 = vadd.f32 %v965_v63, %v955_v10  ;;  %v982_v44 = vadd.f32 %v977_v4, %v968_v51  ;;  %v1228_v15 = vmul.f32 %v1227_v58, %v2951_v28  ;;  %v1532_v21 = vstv %s2971_s7  ;;  %s3047_s7 = sld [smem:[#allocation6 + $0x180]] }
 0x1e3   : > { %1489 = vrot.lane.b32.xlu1 %v1484_v46, %s2172_s20  ;;  %v1065_v63 = vstv %s2977_s8  ;;  %v1533_v19 = vmul.f32 %v1532_v21, %v2974_v45  ;;  %s3049_s8 = sld [smem:[#allocation6 + $0x181]] }
 0x1e4   : > { %1501 = vrot.lane.b32.xlu0 %v1497_v13, %s2173_s23  ;;  %v1066_v32 = vmul.f32 %v1065_v63, %v2670_v0  ;;  %v1067_v0 = vmul.f32 %v1065_v63, %v2685_v6 }
 0x1e5   : > { %v979_v22 = vpop.permute.xlu1 %978  ;;  %v991_v34 = vpop.permute.xlu0 %990 }
 0x1e6   : > { %v983_v1 = vadd.f32 %v979_v22, %v969_v26  ;;  %v996_v38 = vadd.f32 %v991_v34, %v982_v44  ;;  %v1229_v26 = vmul.f32 %v1227_v58, %v2961_v42  ;;  %v1241_v22 = vstv %s2986_s9  ;;  %s3051_s9 = sld [smem:[#allocation6 + $0x182]] }
 0x1e7   : > { %1503 = vrot.lane.b32.xlu1 %v1498_v49, %s2173_s23  ;;  %v1242_v8 = vmul.f32 %v1241_v22, %v2951_v28 }
 0x1e8   : > { %1204 = vrot.lane.b32.xlu0 %v1200_v3, %s2170_s11  ;;  %v1004_v29 = vadd.f32 %v1002_v39, %v996_v38  ;;  %v1534_v38 = vmul.f32 %v1532_v21, %v2982_v5 }
 0x1e9   : > { %v993_v30 = vpop.permute.xlu1 %992  ;;  %v1013_v17 = vpop.permute.xlu0 %1012 }
 0x1ea   : > { %v997_v14 = vadd.f32 %v993_v30, %v983_v1  ;;  %v1018_v50 = vadd.f32 %v1013_v17, %v1004_v29  ;;  %v1546_v29 = vstv %s2994_s10  ;;  %s3054_s10 = sld [smem:[#allocation6 + $0x183]] }
 0x1eb   : > { %1206 = vrot.lane.b32.xlu1 %v1201_v48, %s2170_s11 }
 0x1ec   : > { %1218 = vrot.lane.b32.xlu0 %v1214_v41, %s2171_s13  ;;  %v1005_v57 = vadd.f32 %v1003_v24, %v997_v14  ;;  %v1243_v14 = vmul.f32 %v1241_v22, %v2961_v42  ;;  %v1547_v24 = vmul.f32 %v1546_v29, %v2974_v45 }
 0x1ed   : > { %v1015_v56 = vpop.permute.xlu1 %1014  ;;  %v1027_v61 = vpop.permute.xlu0 %1026 }
 0x1ee   : > { %v1019_v53 = vadd.f32 %v1015_v56, %v1005_v57  ;;  %v1032_v36 = vadd.f32 %v1027_v61, %v1018_v50  ;;  %v1548_v56 = vmul.f32 %v1546_v29, %v2982_v5  ;;  %v1258_v61 = vstv %s3006_s12  ;;  %s3062_s12 = sld [smem:[#allocation8 + $0x1]] }
 0x1ef   : > { %1220 = vrot.lane.b32.xlu1 %v1215_v2, %s2171_s13 }
 0x1f0   : > { %1523 = vrot.lane.b32.xlu0 %v1519_v37, %s2170_s11  ;;  %v1259_v37 = vmul.f32 %v1258_v61, %v2707_v25 }
 0x1f1   : > { %v1029_v7 = vpop.permute.xlu1 %1028  ;;  %v1041_v62 = vpop.permute.xlu0 %1040 }
 0x1f2   : > { %v1033_v10 = vadd.f32 %v1029_v7, %v1019_v53  ;;  %v1046_v51 = vadd.f32 %v1041_v62, %v1032_v36 }
 0x1f3   : > { %1525 = vrot.lane.b32.xlu1 %v1520_v59, %s2170_s11  ;;  %s3002_s11 = sld [smem:[#allocation3 + $0x198]] }
 0x1f4   : > { %1232 = vrot.lane.b32.xlu0 %v1228_v15, %s2172_s20 }
 0x1f5   : > { %v1043_v4 = vpop.permute.xlu1 %1042  ;;  %v1055_v46 = vpop.permute.xlu0 %1054 }
 0x1f6   : > { %v1047_v44 = vadd.f32 %v1043_v4, %v1033_v10  ;;  %v1060_v13 = vadd.f32 %v1055_v46, %v1046_v51  ;;  %v1260_v51 = vmul.f32 %v1258_v61, %v2717_v33 }
 0x1f7   : > { %1234 = vrot.lane.b32.xlu1 %v1229_v26, %s2172_s20 }
 0x1f8   : > { %1537 = vrot.lane.b32.xlu0 %v1533_v19, %s2171_s13  ;;  %v1068_v34 = vadd.f32 %v1066_v32, %v1060_v13 }
 0x1f9   : > { %v1057_v49 = vpop.permute.xlu1 %1056  ;;  %v1077_v1 = vpop.permute.xlu0 %1076  ;;  %v1560_v43 = vstv %s3002_s11  ;;  %s3059_s11 = sld [smem:[#allocation8]] }
 0x1fa   : > { %v1061_v3 = vadd.f32 %v1057_v49, %v1047_v44  ;;  %v1082_v39 = vadd.f32 %v1077_v1, %v1068_v34  ;;  %v1561_v36 = vmul.f32 %v1560_v43, %v2974_v45  ;;  %v1562_v62 = vmul.f32 %v1560_v43, %v2982_v5 }
 0x1fb   : > { %1539 = vrot.lane.b32.xlu1 %v1534_v38, %s2171_s13  ;;  %s1915_s13 = sld [smem:[#allocation3 + $0x185]] }
 0x1fc   : > { %1246 = vrot.lane.b32.xlu0 %v1242_v8, %s2173_s23  ;;  %v1069_v30 = vadd.f32 %v1067_v0, %v1061_v3 }
 0x1fd   : > { %v1079_v17 = vpop.permute.xlu1 %1078  ;;  %v1091_v48 = vpop.permute.xlu0 %1090 }
 0x1fe   : > { %v1083_v50 = vadd.f32 %v1079_v17, %v1069_v30  ;;  %v1096_v41 = vadd.f32 %v1091_v48, %v1082_v39 }
 0x1ff   : > { %1248 = vrot.lane.b32.xlu1 %v1243_v14, %s2173_s23 }
 0x200   : > { %1551 = vrot.lane.b32.xlu0 %v1547_v24, %s2172_s20 }
 0x201   : > { %v1093_v6 = vpop.permute.xlu1 %1092  ;;  %v1105_v57 = vpop.permute.xlu0 %1104  ;;  %v1320_v13 = vstv %s1915_s13  ;;  %s3064_s13 = sld [smem:[#allocation8 + $0x2]] }
 0x202   : > { %v1097_v2 = vadd.f32 %v1093_v6, %v1083_v50  ;;  %v1110_v53 = vadd.f32 %v1105_v57, %v1096_v41  ;;  %v1321_v34 = vmul.f32 %v1320_v13, %v2745_v16  ;;  %v1322_v33 = vmul.f32 %v1320_v13, %v2754_v27 }
 0x203   : > { %1553 = vrot.lane.b32.xlu1 %v1548_v56, %s2172_s20  ;;  %s1920_s20 = sld [smem:[#allocation3 + $0x18a]] }
 0x204   : > { %1565 = vrot.lane.b32.xlu0 %v1561_v36, %s2173_s23 }
 0x205   : > { %v1107_v58 = vpop.permute.xlu1 %1106  ;;  %v1268_v7 = vpop.permute.xlu0 %1267 }
 0x206   : > { %v1111_v59 = vadd.f32 %v1107_v58, %v1097_v2  ;;  %v1273_v10 = vadd.f32 %v1268_v7, %v1259_v37 }
 0x207   : > { %1567 = vrot.lane.b32.xlu1 %v1562_v62, %s2173_s23  ;;  %s1900_s23 = sld [smem:[#allocation3 + $0x10f]] }
 0x209   : > { %v1270_v15 = vpop.permute.xlu1 %1269  ;;  %v1282_v21 = vpop.permute.xlu0 %1281  ;;  %v1384_v50 = vstv %s1920_s20  ;;  %s3067_s20 = sld [smem:[#allocation8 + $0x3]] }
 0x20a   : > { %v1274_v63 = vadd.f32 %v1270_v15, %v1260_v51  ;;  %v1287_v4 = vadd.f32 %v1282_v21, %v1273_v10  ;;  %v1385_v56 = vmul.f32 %v1384_v50, %v2782_v40  ;;  %v1386_v58 = vmul.f32 %v1384_v50, %v2791_v18 }
 0x20d   : > { %v1284_v46 = vpop.permute.xlu1 %1283  ;;  %v1296_v26 = vpop.permute.xlu0 %1295  ;;  %v1129_v51 = vstv %s1900_s23  ;;  %s227_s23 = sand.u32 1, %s2155_s16  }
 0x20e   : > { %v1288_v44 = vadd.f32 %v1284_v46, %v1274_v63  ;;  %v1301_v25 = vadd.f32 %v1296_v26, %v1287_v4  ;;  %v1130_v4 = vmul.f32 %v1129_v51, %v2828_v12 }
 0x211   : > { %v1298_v19 = vpop.permute.xlu1 %1297  ;;  %v1310_v32 = vpop.permute.xlu0 %1309 }
 0x212   : > { %v1315_v22 = vadd.f32 %v1310_v32, %v1301_v25  ;;  %v1302_v49 = vadd.f32 %v1298_v19, %v1288_v44  ;;  %v1131_v19 = vmul.f32 %v1129_v51, %v2847_v31  ;;  %v1448_v32 = vstv %s1925_s14  ;;  %s1833_s14 = sshll.u32 %s227_s23, 6 }
 0x214   : > { %v1323_v1 = vadd.f32 %v1321_v34, %v1315_v22 }
 0x215   : > { %v1312_v38 = vpop.permute.xlu1 %1311  ;;  %v1332_v3 = vpop.permute.xlu0 %1331 }
 0x216   : > { %v1316_v39 = vadd.f32 %v1312_v38, %v1302_v49  ;;  %v1337_v30 = vadd.f32 %v1332_v3, %v1323_v1 }
 0x218   : > { %v1324_v8 = vadd.f32 %v1322_v33, %v1316_v39 }
 0x219   : > { %v1334_v0 = vpop.permute.xlu1 %1333  ;;  %v1346_v29 = vpop.permute.xlu0 %1345 }
 0x21a   : > { %v1351_v14 = vadd.f32 %v1346_v29, %v1337_v30  ;;  %v1338_v41 = vadd.f32 %v1334_v0, %v1324_v8  ;;  %v1450_v29 = vmul.f32 %v1448_v32, %v2879_v60 }
 0x21d   : > { %v1348_v17 = vpop.permute.xlu1 %1347  ;;  %v1360_v48 = vpop.permute.xlu0 %1359 }
 0x21e   : > { %v1365_v24 = vadd.f32 %v1360_v48, %v1351_v14  ;;  %v1352_v6 = vadd.f32 %v1348_v17, %v1338_v41 }
 0x221   : > { %v1362_v43 = vpop.permute.xlu1 %1361  ;;  %v1374_v16 = vpop.permute.xlu0 %1373 }
 0x222   : > { %v1379_v57 = vadd.f32 %v1374_v16, %v1365_v24  ;;  %v1366_v61 = vadd.f32 %v1362_v43, %v1352_v6 }
 0x224   : > { %v1387_v27 = vadd.f32 %v1385_v56, %v1379_v57 }
 0x225   : > { %v1376_v2 = vpop.permute.xlu1 %1375  ;;  %v1396_v36 = vpop.permute.xlu0 %1395 }
 0x226   : > { %v1380_v37 = vadd.f32 %v1376_v2, %v1366_v61  ;;  %v1401_v46 = vadd.f32 %v1396_v36, %v1387_v27 }
 0x228   : > { %v1388_v7 = vadd.f32 %v1386_v58, %v1380_v37 }
 0x229   : > { %v1398_v62 = vpop.permute.xlu1 %1397  ;;  %v1410_v10 = vpop.permute.xlu0 %1409 }
 0x22a   : > { %v1415_v13 = vadd.f32 %v1410_v10, %v1401_v46  ;;  %v1402_v18 = vadd.f32 %v1398_v62, %v1388_v7 }
 0x22d   : > { %v1412_v15 = vpop.permute.xlu1 %1411  ;;  %v1119_v21 = vpop.permute.xlu0 %1118 }
 0x22e   : > { %v1124_v63 = vadd.f32 %v1119_v21, %v1110_v53  ;;  %v1416_v38 = vadd.f32 %v1412_v15, %v1402_v18  ;;  %v1449_v53 = vmul.f32 %v1448_v32, %v2861_v47  ;;  %v1193_v47 = vstv %s1905_s22  ;;  %s1971_s22 = sshll.u32 %s2223_s19, 10 }
 0x22f   : > { %v1194_v2 = vmul.f32 %v1193_v47, %v2951_v28  ;;  %v1195_v51 = vmul.f32 %v1193_v47, %v2961_v42 }
 0x230   : > { %v1132_v40 = vadd.f32 %v1130_v4, %v1124_v63  ;;  %v1512_v4 = vstv %s1930_s27  ;;  %s229_s27 = scalar_lea.vmem [#allocation9], %s1833_s14 }
 0x231   : > { %v1121_v26 = vpop.permute.xlu1 %1120  ;;  %v1424_v44 = vpop.permute.xlu0 %1423 }
 0x232   : > { %v1125_v25 = vadd.f32 %v1121_v26, %v1111_v59  ;;  %v1429_v22 = vadd.f32 %v1424_v44, %v1415_v13 }
 0x234   : > { %v1133_v34 = vadd.f32 %v1131_v19, %v1125_v25  ;;  %v1513_v25 = vmul.f32 %v1512_v4, %v2974_v45 }
 0x235   : > { %v1426_v49 = vpop.permute.xlu1 %1425  ;;  %v1438_v1 = vpop.permute.xlu0 %1437 }
 0x236   : > { %v1443_v3 = vadd.f32 %v1438_v1, %v1429_v22  ;;  %v1430_v39 = vadd.f32 %v1426_v49, %v1416_v38 }
 0x238   : > { %v1451_v12 = vadd.f32 %v1449_v53, %v1443_v3 }
 0x239   : > { %v1440_v33 = vpop.permute.xlu1 %1439  ;;  %v1141_v8 = vpop.permute.xlu0 %1140 }
 0x23a   : > { %v1444_v0 = vadd.f32 %v1440_v33, %v1430_v39  ;;  %v1146_v41 = vadd.f32 %v1141_v8, %v1132_v40 }
 0x23c   : > { %v1452_v59 = vadd.f32 %v1450_v29, %v1444_v0 }
 0x23d   : > { %v1143_v30 = vpop.permute.xlu1 %1142  ;;  %v1155_v31 = vpop.permute.xlu0 %1154 }
 0x23e   : > { %v1160_v16 = vadd.f32 %v1155_v31, %v1146_v41  ;;  %v1147_v6 = vadd.f32 %v1143_v30, %v1133_v34  ;;  %v1514_v34 = vmul.f32 %v1512_v4, %v2982_v5  ;;  %v1619_v31 = vstv %s3041_s29  ;;  %s3102_s29 = scalar_lea.hbm %s3156_s4, %s1971_s22 }
 0x241   : > { %v1157_v17 = vpop.permute.xlu1 %1156  ;;  %v1460_v48 = vpop.permute.xlu0 %1459 }
 0x242   : > { %v1161_v27 = vadd.f32 %v1157_v17, %v1147_v6  ;;  %v1465_v58 = vadd.f32 %v1460_v48, %v1451_v12  ;;  %v1655_v17 = vstv %s3043_s30  ;;  %v1691_v48 = vstv %s3045_s6  ;;  %s3112_s30 = scalar_lea.sflag [#allocation4], %s227_s23 }
 0x245   : > { %v1462_v14 = vpop.permute.xlu1 %1461  ;;  %v1169_v50 = vpop.permute.xlu0 %1168 }
 0x246   : > { %v1174_v57 = vadd.f32 %v1169_v50, %v1160_v16  ;;  %v1466_v21 = vadd.f32 %v1462_v14, %v1452_v59  ;;  %v1584_v59 = vstv %s3039_s28  ;;  %s1730_s28 = sshll.u32 %s229_s27, 4  ;;  %s3104_s28 = int_to_ptr.vmem [resolvable:$true] %s1730_s28 }
 0x247   : > { %s2095_s6 = scalar_lea.vmem %s3104_s28, 1024 }
 0x248   : > { %p2096_p12 = scmp.ne.s32.totalorder %s3104_s28, %s2095_s6 }
 0x249   : > { %v1171_v24 = vpop.permute.xlu1 %1170  ;;  %v1474_v43 = vpop.permute.xlu0 %1473 }
 0x24a   : > { %v1175_v36 = vadd.f32 %v1171_v24, %v1161_v27  ;;  %v1479_v15 = vadd.f32 %v1474_v43, %v1465_v58  ;;  %v1590_v43 = vstv %s3047_s7  ;;  %p2097_p3 = pnand %p2096_p12, %p3169_p2  ;;  %s2174_s7 = smov [#allocation9]  }
 0x24c   : > { %p2098_p4 = pneg %p2097_p3 }
 0x24d   : > { %v1476_v56 = vpop.permute.xlu1 %1475  ;;  %v1183_v61 = vpop.permute.xlu0 %1182 }
 0x24e   : > { %v1188_v60 = vadd.f32 %v1183_v61, %v1174_v57  ;;  %v1480_v26 = vadd.f32 %v1476_v56, %v1466_v21 }
 0x250   : > { %v1196_v37 = vadd.f32 %v1194_v2, %v1188_v60 }
 0x251   : > { %v1185_v7 = vpop.permute.xlu1 %1184 }
 0x252   : > { %v1189_v62 = vadd.f32 %v1185_v7, %v1175_v36  ;;  %v1488_v10 = vpop.permute.xlu0 %1487  ;;  %v1625_v36 = vstv %s3049_s8  ;;  %s2099_s8 = sshll.u32 %s2174_s7, 4  ;;  %s2100_s8 = int_to_ptr.vmem [resolvable:$false] %s2099_s8 }
 0x253   : > { %v1493_v46 = vadd.f32 %v1488_v10, %v1479_v15  ;;  %p2102_p9 = scmp.lt.s32.totalorder %s3104_s28, %s2100_s8 }
 0x254   : > { %v1197_v63 = vadd.f32 %v1195_v51, %v1189_v62 }
 0x255   : > { %v1490_v40 = vpop.permute.xlu1 %1489 }
 0x256   : > { %v1502_v44 = vpop.permute.xlu0 %1501  ;;  %v1494_v28 = vadd.f32 %v1490_v40, %v1480_v26  ;;  %v1661_v40 = vstv %s3051_s9  ;;  %v1697_v26 = vstv %s3054_s10  ;;  %s2101_s9 = scalar_lea.vmem %s2100_s8, 2048 }
 0x257   : > { %v1507_v13 = vadd.f32 %v1502_v44, %v1493_v46  ;;  %p2103_p7 = scmp.lt.s32.totalorder %s2101_s9, %s2095_s6 }
 0x259   : > { %v1504_v19 = vpop.permute.xlu1 %1503  ;;  %v1515_v32 = vadd.f32 %v1513_v25, %v1507_v13  ;;  %p2104_p5 = por %p2103_p7, %p2102_p9 }
 0x25a   : > { %v1508_v18 = vadd.f32 %v1504_v19, %v1494_v28  ;;  %v1205_v22 = vpop.permute.xlu0 %1204  ;;  %v1596_v28 = vstv %s3059_s11 }
 0x25b   : > { %v1210_v5 = vadd.f32 %v1205_v22, %v1196_v37  ;;  %v1631_v22 = vstv %s3062_s12  ;;  %p2105_p6 = pnand %p2104_p5, %p2098_p4 }
 0x25c   : > { %v1516_v49 = vadd.f32 %v1514_v34, %v1508_v18  ;;  %v1703_v34 = vstv %s3067_s20 }
 0x25d   : > { %v1207_v42 = vpop.permute.xlu1 %1206 }
 0x25e   : > { %v1219_v1 = vpop.permute.xlu0 %1218  ;;  %v1211_v8 = vadd.f32 %v1207_v42, %v1197_v63 }
 0x25f   : > { %v1224_v33 = vadd.f32 %v1219_v1, %v1210_v5  ;;  %v1961_v5 = vld [vmem:[%s2313_s5 + $0x30] sm:$0xff] }
 0x261   : > { %v1221_v38 = vpop.permute.xlu1 %1220 }
 0x262   : > { %v1524_v3 = vpop.permute.xlu0 %1523  ;;  %v1225_v30 = vadd.f32 %v1221_v38, %v1211_v8 }
 0x263   : > { %v1529_v41 = vadd.f32 %v1524_v3, %v1515_v32 }
 0x265   : > { %v1526_v53 = vpop.permute.xlu1 %1525 }
 0x266   : > { %v1233_v45 = vpop.permute.xlu0 %1232  ;;  %v1530_v61 = vadd.f32 %v1526_v53, %v1516_v49  ;;  %v1599_v49 = vld [vmem:[%s2313_s5] sm:$0xff]  ;;  %v1943_v53 = vld [vmem:[%s2313_s5 + $0x10] sm:$0xff] }
 0x267   : > { %v1238_v0 = vadd.f32 %v1233_v45, %v1224_v33  ;;  %v1952_v45 = vld [vmem:[%s2313_s5 + $0x20] sm:$0xff] }
 0x269   : > { %v1235_v39 = vpop.permute.xlu1 %1234 }
 0x26a   : > { %v1538_v12 = vpop.permute.xlu0 %1537  ;;  %v1239_v24 = vadd.f32 %v1235_v39, %v1225_v30 }
 0x26b   : > { %v1543_v27 = vadd.f32 %v1538_v12, %v1529_v41 }
 0x26d   : > { %v1540_v29 = vpop.permute.xlu1 %1539 }
 0x26e   : > { %v1247_v14 = vpop.permute.xlu0 %1246  ;;  %v1544_v63 = vadd.f32 %v1540_v29, %v1530_v61 }
 0x26f   : > { %v1252_v50 = vadd.f32 %v1247_v14, %v1238_v0 }
 0x271   : > { %v1585_v16 = vmul.f32 %v1584_v59, %v1252_v50  ;;  %v1620_v47 = vmul.f32 %v1619_v31, %v1252_v50  ;;  %v1656_v6 = vmul.f32 %v1655_v17, %v1252_v50  ;;  %v1692_v57 = vmul.f32 %v1691_v48, %v1252_v50  ;;  %v1249_v56 = vpop.permute.xlu1 %1248 }
 0x272   : > { %v1253_v60 = vadd.f32 %v1249_v56, %v1239_v24  ;;  %v1552_v2 = vpop.permute.xlu0 %1551 }
 0x273   : > { %v1587_v37 = vadd.f32 %v1585_v16, %v2918_v9  ;;  %v1622_v58 = vadd.f32 %v1620_v47, %v2920_v54  ;;  %v1658_v7 = vadd.f32 %v1656_v6, %v2922_v55  ;;  %v1694_v62 = vadd.f32 %v1692_v57, %v2924_v35  ;;  %v1944_v47 = vld [vmem:[%s2313_s5 + $0x18] sm:$0xff]  ;;  %v1953_v6 = vld [vmem:[%s2313_s5 + $0x28] sm:$0xff] }
 0x274   : > { %v1586_v10 = vmul.f32 %v1584_v59, %v1253_v60  ;;  %v1621_v51 = vmul.f32 %v1619_v31, %v1253_v60  ;;  %v1657_v15 = vmul.f32 %v1655_v17, %v1253_v60  ;;  %v1693_v21 = vmul.f32 %v1691_v48, %v1253_v60  ;;  %v1600_v31 = vld [vmem:[%s2313_s5 + $0x8] sm:$0xff]  ;;  %v1962_v57 = vld [vmem:[%s2313_s5 + $0x38] sm:$0xff] }
 0x275   : > { %v1557_v4 = vadd.f32 %v1552_v2, %v1543_v27  ;;  %v1554_v46 = vpop.permute.xlu1 %1553 }
 0x276   : > { %v1588_v9 = vadd.f32 %v1586_v10, %v2936_v20  ;;  %v1623_v54 = vadd.f32 %v1621_v51, %v2938_v23  ;;  %v1659_v55 = vadd.f32 %v1657_v15, %v2940_v52  ;;  %v1695_v35 = vadd.f32 %v1693_v21, %v2942_v11  ;;  %v1566_v44 = vpop.permute.xlu0 %1565 }
 0x277   : > { %v1571_v13 = vadd.f32 %v1566_v44, %v1557_v4  ;;  %v1558_v25 = vadd.f32 %v1554_v46, %v1544_v63  ;;  %v1667_v52 = vstv %s3064_s13 }
 0x279   : > { %v1591_v19 = vmul.f32 %v1590_v43, %v1571_v13  ;;  %v1626_v20 = vmul.f32 %v1625_v36, %v1571_v13  ;;  %v1662_v32 = vmul.f32 %v1661_v40, %v1571_v13  ;;  %v1698_v23 = vmul.f32 %v1697_v26, %v1571_v13  ;;  %v1568_v18 = vpop.permute.xlu1 %1567 }
 0x27a   : > { %v1572_v11 = vadd.f32 %v1568_v18, %v1558_v25 }
 0x27b   : > { %v1593_v42 = vadd.f32 %v1591_v19, %v1587_v37  ;;  %v1628_v1 = vadd.f32 %v1626_v20, %v1622_v58  ;;  %v1664_v38 = vadd.f32 %v1662_v32, %v1658_v7  ;;  %v1700_v3 = vadd.f32 %v1698_v23, %v1694_v62 }
 0x27c   : > { %v1592_v39 = vmul.f32 %v1590_v43, %v1572_v11  ;;  %v1627_v12 = vmul.f32 %v1625_v36, %v1572_v11  ;;  %v1663_v33 = vmul.f32 %v1661_v40, %v1572_v11  ;;  %v1699_v8 = vmul.f32 %v1697_v26, %v1572_v11 }
 0x27d   : > { %v1597_v0 = vadd.f32 %v1596_v28, %v1593_v42  ;;  %v1632_v29 = vadd.f32 %v1631_v22, %v1628_v1  ;;  %v1668_v59 = vadd.f32 %v1667_v52, %v1664_v38  ;;  %v1704_v30 = vadd.f32 %v1703_v34, %v1700_v3 }
 0x27e   : > { %v1594_v17 = vadd.f32 %v1592_v39, %v1588_v9  ;;  %v1629_v48 = vadd.f32 %v1627_v12, %v1623_v54  ;;  %v1665_v14 = vadd.f32 %v1663_v33, %v1659_v55  ;;  %v1701_v50 = vadd.f32 %v1699_v8, %v1695_v35 }
 0x27f   : > { %v1601_v41 = vadd.f32 %v1599_v49, %v1597_v0  ;;  %v1637_v24 = vadd.f32 %v1943_v53, %v1632_v29  ;;  %v1673_v16 = vadd.f32 %v1952_v45, %v1668_v59  ;;  %v1709_v43 = vadd.f32 %v1961_v5, %v1704_v30 }
 0x280   : > { %v1598_v56 = vadd.f32 %v1596_v28, %v1594_v17  ;;  %v1633_v61 = vadd.f32 %v1631_v22, %v1629_v48  ;;  %v1669_v27 = vadd.f32 %v1667_v52, %v1665_v14  ;;  %v1705_v60 = vadd.f32 %v1703_v34, %v1701_v50 }
 0x281   : > { %v1603_v2 = vmax.f32 %v1601_v41, 0.0  ;;  %v1639_v36 = vmax.f32 %v1637_v24, 0.0  ;;  %v1675_v37 = vmax.f32 %v1673_v16, 0.0  ;;  %v1711_v58 = vmax.f32 %v1709_v43, 0.0 }
 0x282   : > { %v1602_v7 = vadd.f32 %v1600_v31, %v1598_v56  ;;  %v1638_v62 = vadd.f32 %v1944_v47, %v1633_v61  ;;  %v1674_v10 = vadd.f32 %v1953_v6, %v1669_v27  ;;  %v1710_v51 = vadd.f32 %v1962_v57, %v1705_v60 }
 0x283   : > { %1606 = vst.msk [vmem:[%s229_s27] sm:$0xff] %vm1605_vm3, %v1603_v2  ;;  %1945 = vst.msk [vmem:[%s229_s27 + $0x10] sm:$0xff] %vm1605_vm3, %v1639_v36 }
 0x284   : > { %1954 = vst.msk [vmem:[%s229_s27 + $0x20] sm:$0xff] %vm1605_vm3, %v1675_v37  ;;  %1963 = vst.msk [vmem:[%s229_s27 + $0x30] sm:$0xff] %vm1605_vm3, %v1711_v58  ;;  %v1604_v15 = vmax.f32 %v1602_v7, 0.0  ;;  %v1640_v21 = vmax.f32 %v1638_v62, 0.0  ;;  %v1676_v63 = vmax.f32 %v1674_v10, 0.0  ;;  %v1712_v4 = vmax.f32 %v1710_v51, 0.0 }
 0x286   : > { %1607 = vst.msk [vmem:[%s229_s27 + $0x8] sm:$0xff] %vm1605_vm3, %v1604_v15  ;;  %1946 = vst.msk [vmem:[%s229_s27 + $0x18] sm:$0xff] %vm1605_vm3, %v1640_v21 }
 0x287   : > { %1955 = vst.msk [vmem:[%s229_s27 + $0x28] sm:$0xff] %vm1605_vm3, %v1676_v63  ;;  %1964 = vst.msk [vmem:[%s229_s27 + $0x38] sm:$0xff] %vm1605_vm3, %v1712_v4 }
 0x288   : > { %2108 = shalt.err (!%p2105_p6)
}
 0x289   : > { %s2109_s10 = scalar_lea.hbm %s3102_s29, 1024  ;;  %s2113_s13 = scalar_lea.hbm %s3156_s4, 2048 }
 0x28a   : > { %p2110_p10 = scmp.ne.s32.totalorder %s3102_s29, %s2109_s10  ;;  %p2114_p11 = scmp.lt.s32.totalorder %s3102_s29, %s3156_s4 }
 0x28b   : > { %p2115_p13 = scmp.lt.s32.totalorder %s2113_s13, %s2109_s10 }
 0x28c   : > { %p2111_p8 = pnand %p2110_p10, %p3169_p2 }
 0x28d   : > { %p2116_p1 = por %p2115_p13, %p2114_p11 }
 0x28e   : > { %p2112_p0 = pneg %p2111_p8 }
 0x290   : > { %p2117_p12 = pnand %p2116_p1, %p2112_p0 }
 0x292   : > { %2120 = shalt.err (!%p2117_p12)
}
 0x293   : > { %s2175_s14 = smov 128   ;;  %s2176_s22 = smov 8  }
 0x294   : > { %1984 = dma.vmem_to_hbm [thread:$0]  (%p3169_p2), %s3104_s28, 1024, %s3102_s29, %s3112_s30, %s2175_s14, %s2175_s14, %s2176_s22  }
 0x295 PF: > { %p2006_p3 = scmp.ge.s32.totalorder %s2163_s18, 2  ;;  %s1745_s27 = sand.u32 1, %s2151_s15  }
 0x296   : > { %p3170_p4 = scmp.ne.s32.totalorder %s3161_s26, 0  ;;  %s1746_s19 = scalar_lea.sflag [#allocation4], %s1745_s27 }
 0x298   : > { %p1997_p9 = pnand %p2006_p3, %p3170_p4 }
 0x29a   : > { %p1998_p7 = pneg %p1997_p9 }
 0x29c   : > { %2146 = dma.done.wait (%p1998_p7), %s1746_s19, 1024  }
 0x29d   : > { %2148 = vsyncadd (%p1998_p7), %s1746_s19, 4294966272  ;;  %p16_p5 = scmp.ge.s32.totalorder %s2227_s21, 4   ;;  %s3171_s15 = smov %s2155_s16 }
 0x29e   : > { %s3172_s16 = smov %s2159_s17  ;;  %s3173_s17 = smov %s2238_s24 }
 0x29f   : > { %s3174_s18 = smov %s2227_s21  ;;  %18 = sbr.rel (!%p16_p5) target bundleno = 5 (0x5), region = 93 }
 0x2a4   :  { %1751 = vsyncpa [#allocation4], 1 }
 0x2a5   :  { %1753 = vsyncpa [#allocation4 + $0x1], 1 }
 0x2a6   :  { %1754 = vsyncpa [#allocation5], 1 }
 0x2a7   :  { %1756 = vsyncpa [#allocation5 + $0x1], 1 }
 0x2a8   :  { %1757 = vsyncpa [#allocation7], 1 }

</bundles_post_ra>
